<compile_context>
chip_gen: v7x
topology: tpu7x:2x2x1
jax: 0.10.0
libtpu: 0.0.40
codegen_flags: <defaults>
</compile_context>

<pallas_src>
import math

import jax
import jax.numpy as jnp
from jax.experimental import pallas as pl
from jax.experimental.pallas import tpu as pltpu

IMG_SHAPE = (1, 28, 28)
IMG_DIM = int(math.prod(IMG_SHAPE))      # 784
LATENT_DIM = 100
N_CLASSES = 10
BN_EPS = 0.8                             # nn.BatchNorm1d(out_feat, 0.8) -> eps = 0.8
LRELU_SLOPE = 0.2

# (K, N) of every MXU matmul in the kernel
# (first layer split into one_hot@W1e' (emb folded) + noise@W1n).
_LAYER_DIMS = ((N_CLASSES, 128), (LATENT_DIM, 128),
               (128, 256), (256, 512), (512, 1024), (1024, IMG_DIM))


def _leaky_relu(y):
    # slope < 1  =>  leaky_relu(y) == max(y, slope*y): one vmax instead of cmp+sel+mul.
    return jnp.maximum(y, LRELU_SLOPE * y)


def generator_kernel(labels_ref, noise_ref,
                     w1e_ref, w1n_ref, b1_ref,
                     w2_ref, g2_ref, be2_ref,
                     w3_ref, g3_ref, be3_ref,
                     w4_ref, g4_ref, be4_ref,
                     w5_ref, g5_ref, be5_ref,
                     out_ref):
    """Whole generator in one invocation: folded embedding lookup, 5 MXU matmuls
    (bf16 weights, f32 accumulation), folded BN + LeakyReLU + Tanh on VPU/EUP."""
    B = noise_ref.shape[0]

    # --- nn.Embedding(10,10) + first-layer slice, folded offline into W1e' ------
    #   one_hot(labels) @ (emb_table @ W1[:10])  ==  Embedding(labels) @ W1[:10]
    labels = labels_ref[...]                                          # (B, 1) int32
    class_ids = jax.lax.broadcasted_iota(jnp.int32, (B, N_CLASSES), 1)
    one_hot = (labels == class_ids).astype(jnp.bfloat16)              # (B, 10), exact 0/1

    def dot_bf16(h, w_ref):
        # Weights are stored in bf16; cast activations to bf16 (MXU native rate),
        # accumulate in f32.
        return jnp.dot(h.astype(jnp.bfloat16), w_ref[...],
                       preferred_element_type=jnp.float32)

    def bn_lrelu(x, g_ref, be_ref):
        # PyTorch BatchNorm1d (training): biased (1/N) full-batch statistics.
        # Single-pass moments: var = E[x^2] - mean^2 (eps=0.8 >> cancellation error),
        # folded to a single per-feature scale/shift: y = x*scale + shift.
        mean = jnp.mean(x, axis=0, keepdims=True)
        mean_sq = jnp.mean(x * x, axis=0, keepdims=True)
        var = mean_sq - mean * mean
        scale = g_ref[...] * jax.lax.rsqrt(var + BN_EPS)              # rsqrt -> EUP slot
        shift = be_ref[...] - mean * scale
        return _leaky_relu(x * scale + shift)

    # block(110 -> 128, normalize=False):
    #   concat(emb, noise) @ W1 + b1  ==  one_hot @ W1e' + noise @ W1[10:] + b1
    # (split avoids any in-kernel concat / K-padding; embedding matmul folded away).
    h = (jnp.dot(one_hot, w1e_ref[...], preferred_element_type=jnp.float32)
         + dot_bf16(noise_ref[...], w1n_ref) + b1_ref[...])
    h = _leaky_relu(h)
    # blocks 2..5: Linear (bias dropped — a per-feature constant is exactly
    # cancelled by the BN mean subtraction) + BatchNorm1d(eps=0.8) + LeakyReLU.
    h = bn_lrelu(dot_bf16(h, w2_ref), g2_ref, be2_ref)
    h = bn_lrelu(dot_bf16(h, w3_ref), g3_ref, be3_ref)
    h = bn_lrelu(dot_bf16(h, w4_ref), g4_ref, be4_ref)
    h = bn_lrelu(dot_bf16(h, w5_ref), g5_ref, be5_ref)                # (B, 784)
    # Final Tanh; 784-wide store (tail 16 lanes masked — negligible at these B).
    out_ref[...] = jnp.tanh(h)


def init_params(key):
    """Deterministic synthetic parameters (PyTorch-like default init), packed in
    the kernel's layout: bf16 weights, f32 bias/gamma/beta, embedding folded into
    the first 10 rows of W1, W5 stored unpadded at (1024, 784)."""
    sizes = [(LATENT_DIM + N_CLASSES, 128), (128, 256), (256, 512),
             (512, 1024), (1024, IMG_DIM)]
    key, ek = jax.random.split(key)
    emb = jax.random.normal(ek, (N_CLASSES, N_CLASSES), jnp.float32)  # nn.Embedding default N(0,1)

    ws, bs = [], []
    for fan_in, fan_out in sizes:
        key, wk, bk = jax.random.split(key, 3)
        bound = 1.0 / (fan_in ** 0.5)
        # Stored as (in, out) so the kernel does x @ W directly (PyTorch stores (out, in)).
        ws.append(jax.random.uniform(wk, (fan_in, fan_out), jnp.float32, -bound, bound))
        bs.append(jax.random.uniform(bk, (1, fan_out), jnp.float32, -bound, bound))

    params = []
    # Layer 1 (no BN): embedding folded offline into W1e' = emb @ W1[:10]; bias kept (f32).
    w1e_folded = jnp.dot(emb, ws[0][:N_CLASSES])                      # (10, 128) f32
    params += [w1e_folded.astype(jnp.bfloat16),                       # w1e' (10, 128)
               ws[0][N_CLASSES:].astype(jnp.bfloat16),                # w1n  (100, 128)
               bs[0]]                                                 # b1   (1, 128) f32
    # Layers 2..5: bias dropped (cancelled by BN); gamma=1, beta=0; W5 unpadded.
    for i in (1, 2, 3, 4):
        fout = sizes[i][1]
        params += [ws[i].astype(jnp.bfloat16),
                   jnp.ones((1, fout), jnp.float32),
                   jnp.zeros((1, fout), jnp.float32)]
    return tuple(params)


@jax.jit
def generator_forward(noise, labels, params):
    B = noise.shape[0]
    labels2d = labels.reshape(B, 1).astype(jnp.int32)
    inputs = (labels2d, noise, *params)

    # CostEstimate kept in sync with the folded-embedding / unpadded-W5 shapes.
    flops = 2 * B * sum(k * n for k, n in _LAYER_DIMS)
    transcendentals = B * IMG_DIM + (256 + 512 + 1024 + IMG_DIM)      # tanh + per-feature rsqrt
    bytes_accessed = sum(a.size * a.dtype.itemsize for a in inputs) + B * IMG_DIM * 4
    cost = pl.CostEstimate(flops=flops,
                           transcendentals=transcendentals,
                           bytes_accessed=bytes_accessed)

    out = pl.pallas_call(
        generator_kernel,
        out_shape=jax.ShapeDtypeStruct((B, IMG_DIM), jnp.float32),
        in_specs=[pl.BlockSpec(memory_space=pltpu.MemorySpace.VMEM)] * len(inputs),
        out_specs=pl.BlockSpec(memory_space=pltpu.MemorySpace.VMEM),
        cost_estimate=cost,
    )(*inputs)
    # TODO(synk): original forward does `print(self.label_emb(labels)[0])` when
    # labels[0]==0 — a debug side effect with no impact on the output; omitted.
    # TODO(synk): training-mode BatchNorm1d also updates running_mean/running_var
    # buffers as a side effect; not reproduced (forward output unaffected).
    return out.reshape(B, *IMG_SHAPE)


if __name__ == "__main__":
    key = jax.random.PRNGKey(0)
    pkey, nkey = jax.random.split(key)
    params = init_params(pkey)

    B = 8
    noise = jax.random.normal(nkey, (B, LATENT_DIM), jnp.float32)
    labels = jnp.arange(B, dtype=jnp.int32) % N_CLASSES

    img = generator_forward(noise, labels, params)
    jax.block_until_ready(img)
    assert img.shape == (B, *IMG_SHAPE), img.shape
    assert bool(jnp.all(jnp.isfinite(img)))
    print("KERNEL_OK")
</pallas_src>

<mosaic_0001>
module attributes {stable_mosaic.version = 11 : i64} {
  func.func @generator_kernel(%arg0: memref<8x1xi32, #tpu.memory_space<vmem>>, %arg1: memref<8x100xf32, #tpu.memory_space<vmem>>, %arg2: memref<10x128xbf16, #tpu.memory_space<vmem>>, %arg3: memref<100x128xbf16, #tpu.memory_space<vmem>>, %arg4: memref<1x128xf32, #tpu.memory_space<vmem>>, %arg5: memref<128x256xbf16, #tpu.memory_space<vmem>>, %arg6: memref<1x256xf32, #tpu.memory_space<vmem>>, %arg7: memref<1x256xf32, #tpu.memory_space<vmem>>, %arg8: memref<256x512xbf16, #tpu.memory_space<vmem>>, %arg9: memref<1x512xf32, #tpu.memory_space<vmem>>, %arg10: memref<1x512xf32, #tpu.memory_space<vmem>>, %arg11: memref<512x1024xbf16, #tpu.memory_space<vmem>>, %arg12: memref<1x1024xf32, #tpu.memory_space<vmem>>, %arg13: memref<1x1024xf32, #tpu.memory_space<vmem>>, %arg14: memref<1024x784xbf16, #tpu.memory_space<vmem>>, %arg15: memref<1x784xf32, #tpu.memory_space<vmem>>, %arg16: memref<1x784xf32, #tpu.memory_space<vmem>>, %arg17: memref<8x784xf32, #tpu.memory_space<vmem>>) attributes {dimension_semantics = [], scalar_prefetch = 0 : i64, scratch_operands = 0 : i64, tpu.core_type = #tpu.core_type<tc>} {
    %c0 = arith.constant 0 : index
    %c0_0 = arith.constant 0 : index
    %0 = vector.load %arg0[%c0, %c0_0] : memref<8x1xi32, #tpu.memory_space<vmem>>, vector<8x1xi32>
    %1 = tpu.iota {dimensions = array<i32: 1>} : vector<8x10xi32>
    %2 = vector.broadcast %0 : vector<8x1xi32> to vector<8x10xi32>
    %3 = arith.cmpi eq, %2, %1 : vector<8x10xi32>
    %4 = arith.extui %3 : vector<8x10xi1> to vector<8x10xi32>
    %5 = arith.sitofp %4 : vector<8x10xi32> to vector<8x10xf32>
    %6 = arith.truncf %5 : vector<8x10xf32> to vector<8x10xbf16>
    %c0_1 = arith.constant 0 : index
    %c0_2 = arith.constant 0 : index
    %7 = vector.load %arg2[%c0_1, %c0_2] : memref<10x128xbf16, #tpu.memory_space<vmem>>, vector<10x128xbf16>
    %cst = arith.constant dense<0.000000e+00> : vector<8x128xf32>
    %8 = tpu.matmul %6, %7, %cst {dimension_numbers = #tpu.dot_dimension_numbers<[1], [0], [0], [1], [0, 0, 1, 1], [], []>} : vector<8x10xbf16>, vector<10x128xbf16>, vector<8x128xf32> -> vector<8x128xf32>
    %c0_3 = arith.constant 0 : index
    %c0_4 = arith.constant 0 : index
    %9 = vector.load %arg1[%c0_3, %c0_4] : memref<8x100xf32, #tpu.memory_space<vmem>>, vector<8x100xf32>
    %10 = arith.truncf %9 : vector<8x100xf32> to vector<8x100xbf16>
    %c0_5 = arith.constant 0 : index
    %c0_6 = arith.constant 0 : index
    %11 = vector.load %arg3[%c0_5, %c0_6] : memref<100x128xbf16, #tpu.memory_space<vmem>>, vector<100x128xbf16>
    %cst_7 = arith.constant dense<0.000000e+00> : vector<8x128xf32>
    %12 = tpu.matmul %10, %11, %cst_7 {dimension_numbers = #tpu.dot_dimension_numbers<[1], [0], [0], [1], [0, 0, 1, 1], [], []>} : vector<8x100xbf16>, vector<100x128xbf16>, vector<8x128xf32> -> vector<8x128xf32>
    %13 = arith.addf %8, %12 : vector<8x128xf32>
    %c0_8 = arith.constant 0 : index
    %c0_9 = arith.constant 0 : index
    %14 = vector.load %arg4[%c0_8, %c0_9] : memref<1x128xf32, #tpu.memory_space<vmem>>, vector<1x128xf32>
    %15 = vector.broadcast %14 : vector<1x128xf32> to vector<8x128xf32>
    %16 = arith.addf %13, %15 : vector<8x128xf32>
    %cst_10 = arith.constant 2.000000e-01 : f32
    %17 = vector.broadcast %cst_10 : f32 to vector<8x128xf32>
    %18 = arith.mulf %17, %16 : vector<8x128xf32>
    %19 = arith.maximumf %16, %18 : vector<8x128xf32>
    %20 = arith.truncf %19 : vector<8x128xf32> to vector<8x128xbf16>
    %c0_11 = arith.constant 0 : index
    %c0_12 = arith.constant 0 : index
    %21 = vector.load %arg5[%c0_11, %c0_12] : memref<128x256xbf16, #tpu.memory_space<vmem>>, vector<128x256xbf16>
    %cst_13 = arith.constant dense<0.000000e+00> : vector<8x256xf32>
    %22 = tpu.matmul %20, %21, %cst_13 {dimension_numbers = #tpu.dot_dimension_numbers<[1], [0], [0], [1], [0, 0, 1, 1], [], []>} : vector<8x128xbf16>, vector<128x256xbf16>, vector<8x256xf32> -> vector<8x256xf32>
    %cst_14 = arith.constant dense<0.000000e+00> : vector<256xf32>
    %23 = vector.multi_reduction <add>, %22, %cst_14 [0] : vector<8x256xf32> to vector<256xf32>
    %24 = vector.shape_cast %23 : vector<256xf32> to vector<1x256xf32>
    %cst_15 = arith.constant 8.000000e+00 : f32
    %25 = vector.broadcast %cst_15 : f32 to vector<1x256xf32>
    %26 = arith.divf %24, %25 : vector<1x256xf32>
    %27 = arith.mulf %22, %22 : vector<8x256xf32>
    %cst_16 = arith.constant dense<0.000000e+00> : vector<256xf32>
    %28 = vector.multi_reduction <add>, %27, %cst_16 [0] : vector<8x256xf32> to vector<256xf32>
    %29 = vector.shape_cast %28 : vector<256xf32> to vector<1x256xf32>
    %cst_17 = arith.constant 8.000000e+00 : f32
    %30 = vector.broadcast %cst_17 : f32 to vector<1x256xf32>
    %31 = arith.divf %29, %30 : vector<1x256xf32>
    %32 = arith.mulf %26, %26 : vector<1x256xf32>
    %33 = arith.subf %31, %32 : vector<1x256xf32>
    %c0_18 = arith.constant 0 : index
    %c0_19 = arith.constant 0 : index
    %34 = vector.load %arg6[%c0_18, %c0_19] : memref<1x256xf32, #tpu.memory_space<vmem>>, vector<1x256xf32>
    %cst_20 = arith.constant 8.000000e-01 : f32
    %35 = vector.broadcast %cst_20 : f32 to vector<1x256xf32>
    %36 = arith.addf %33, %35 : vector<1x256xf32>
    %37 = math.rsqrt %36 : vector<1x256xf32>
    %38 = arith.mulf %34, %37 : vector<1x256xf32>
    %c0_21 = arith.constant 0 : index
    %c0_22 = arith.constant 0 : index
    %39 = vector.load %arg7[%c0_21, %c0_22] : memref<1x256xf32, #tpu.memory_space<vmem>>, vector<1x256xf32>
    %40 = arith.mulf %26, %38 : vector<1x256xf32>
    %41 = arith.subf %39, %40 : vector<1x256xf32>
    %42 = vector.broadcast %38 : vector<1x256xf32> to vector<8x256xf32>
    %43 = arith.mulf %22, %42 : vector<8x256xf32>
    %44 = vector.broadcast %41 : vector<1x256xf32> to vector<8x256xf32>
    %45 = arith.addf %43, %44 : vector<8x256xf32>
    %cst_23 = arith.constant 2.000000e-01 : f32
    %46 = vector.broadcast %cst_23 : f32 to vector<8x256xf32>
    %47 = arith.mulf %46, %45 : vector<8x256xf32>
    %48 = arith.maximumf %45, %47 : vector<8x256xf32>
    %49 = arith.truncf %48 : vector<8x256xf32> to vector<8x256xbf16>
    %c0_24 = arith.constant 0 : index
    %c0_25 = arith.constant 0 : index
    %50 = vector.load %arg8[%c0_24, %c0_25] : memref<256x512xbf16, #tpu.memory_space<vmem>>, vector<256x512xbf16>
    %cst_26 = arith.constant dense<0.000000e+00> : vector<8x512xf32>
    %51 = tpu.matmul %49, %50, %cst_26 {dimension_numbers = #tpu.dot_dimension_numbers<[1], [0], [0], [1], [0, 0, 1, 1], [], []>} : vector<8x256xbf16>, vector<256x512xbf16>, vector<8x512xf32> -> vector<8x512xf32>
    %cst_27 = arith.constant dense<0.000000e+00> : vector<512xf32>
    %52 = vector.multi_reduction <add>, %51, %cst_27 [0] : vector<8x512xf32> to vector<512xf32>
    %53 = vector.shape_cast %52 : vector<512xf32> to vector<1x512xf32>
    %cst_28 = arith.constant 8.000000e+00 : f32
    %54 = vector.broadcast %cst_28 : f32 to vector<1x512xf32>
    %55 = arith.divf %53, %54 : vector<1x512xf32>
    %56 = arith.mulf %51, %51 : vector<8x512xf32>
    %cst_29 = arith.constant dense<0.000000e+00> : vector<512xf32>
    %57 = vector.multi_reduction <add>, %56, %cst_29 [0] : vector<8x512xf32> to vector<512xf32>
    %58 = vector.shape_cast %57 : vector<512xf32> to vector<1x512xf32>
    %cst_30 = arith.constant 8.000000e+00 : f32
    %59 = vector.broadcast %cst_30 : f32 to vector<1x512xf32>
    %60 = arith.divf %58, %59 : vector<1x512xf32>
    %61 = arith.mulf %55, %55 : vector<1x512xf32>
    %62 = arith.subf %60, %61 : vector<1x512xf32>
    %c0_31 = arith.constant 0 : index
    %c0_32 = arith.constant 0 : index
    %63 = vector.load %arg9[%c0_31, %c0_32] : memref<1x512xf32, #tpu.memory_space<vmem>>, vector<1x512xf32>
    %cst_33 = arith.constant 8.000000e-01 : f32
    %64 = vector.broadcast %cst_33 : f32 to vector<1x512xf32>
    %65 = arith.addf %62, %64 : vector<1x512xf32>
    %66 = math.rsqrt %65 : vector<1x512xf32>
    %67 = arith.mulf %63, %66 : vector<1x512xf32>
    %c0_34 = arith.constant 0 : index
    %c0_35 = arith.constant 0 : index
    %68 = vector.load %arg10[%c0_34, %c0_35] : memref<1x512xf32, #tpu.memory_space<vmem>>, vector<1x512xf32>
    %69 = arith.mulf %55, %67 : vector<1x512xf32>
    %70 = arith.subf %68, %69 : vector<1x512xf32>
    %71 = vector.broadcast %67 : vector<1x512xf32> to vector<8x512xf32>
    %72 = arith.mulf %51, %71 : vector<8x512xf32>
    %73 = vector.broadcast %70 : vector<1x512xf32> to vector<8x512xf32>
    %74 = arith.addf %72, %73 : vector<8x512xf32>
    %cst_36 = arith.constant 2.000000e-01 : f32
    %75 = vector.broadcast %cst_36 : f32 to vector<8x512xf32>
    %76 = arith.mulf %75, %74 : vector<8x512xf32>
    %77 = arith.maximumf %74, %76 : vector<8x512xf32>
    %78 = arith.truncf %77 : vector<8x512xf32> to vector<8x512xbf16>
    %c0_37 = arith.constant 0 : index
    %c0_38 = arith.constant 0 : index
    %79 = vector.load %arg11[%c0_37, %c0_38] : memref<512x1024xbf16, #tpu.memory_space<vmem>>, vector<512x1024xbf16>
    %cst_39 = arith.constant dense<0.000000e+00> : vector<8x1024xf32>
    %80 = tpu.matmul %78, %79, %cst_39 {dimension_numbers = #tpu.dot_dimension_numbers<[1], [0], [0], [1], [0, 0, 1, 1], [], []>} : vector<8x512xbf16>, vector<512x1024xbf16>, vector<8x1024xf32> -> vector<8x1024xf32>
    %cst_40 = arith.constant dense<0.000000e+00> : vector<1024xf32>
    %81 = vector.multi_reduction <add>, %80, %cst_40 [0] : vector<8x1024xf32> to vector<1024xf32>
    %82 = vector.shape_cast %81 : vector<1024xf32> to vector<1x1024xf32>
    %cst_41 = arith.constant 8.000000e+00 : f32
    %83 = vector.broadcast %cst_41 : f32 to vector<1x1024xf32>
    %84 = arith.divf %82, %83 : vector<1x1024xf32>
    %85 = arith.mulf %80, %80 : vector<8x1024xf32>
    %cst_42 = arith.constant dense<0.000000e+00> : vector<1024xf32>
    %86 = vector.multi_reduction <add>, %85, %cst_42 [0] : vector<8x1024xf32> to vector<1024xf32>
    %87 = vector.shape_cast %86 : vector<1024xf32> to vector<1x1024xf32>
    %cst_43 = arith.constant 8.000000e+00 : f32
    %88 = vector.broadcast %cst_43 : f32 to vector<1x1024xf32>
    %89 = arith.divf %87, %88 : vector<1x1024xf32>
    %90 = arith.mulf %84, %84 : vector<1x1024xf32>
    %91 = arith.subf %89, %90 : vector<1x1024xf32>
    %c0_44 = arith.constant 0 : index
    %c0_45 = arith.constant 0 : index
    %92 = vector.load %arg12[%c0_44, %c0_45] : memref<1x1024xf32, #tpu.memory_space<vmem>>, vector<1x1024xf32>
    %cst_46 = arith.constant 8.000000e-01 : f32
    %93 = vector.broadcast %cst_46 : f32 to vector<1x1024xf32>
    %94 = arith.addf %91, %93 : vector<1x1024xf32>
    %95 = math.rsqrt %94 : vector<1x1024xf32>
    %96 = arith.mulf %92, %95 : vector<1x1024xf32>
    %c0_47 = arith.constant 0 : index
    %c0_48 = arith.constant 0 : index
    %97 = vector.load %arg13[%c0_47, %c0_48] : memref<1x1024xf32, #tpu.memory_space<vmem>>, vector<1x1024xf32>
    %98 = arith.mulf %84, %96 : vector<1x1024xf32>
    %99 = arith.subf %97, %98 : vector<1x1024xf32>
    %100 = vector.broadcast %96 : vector<1x1024xf32> to vector<8x1024xf32>
    %101 = arith.mulf %80, %100 : vector<8x1024xf32>
    %102 = vector.broadcast %99 : vector<1x1024xf32> to vector<8x1024xf32>
    %103 = arith.addf %101, %102 : vector<8x1024xf32>
    %cst_49 = arith.constant 2.000000e-01 : f32
    %104 = vector.broadcast %cst_49 : f32 to vector<8x1024xf32>
    %105 = arith.mulf %104, %103 : vector<8x1024xf32>
    %106 = arith.maximumf %103, %105 : vector<8x1024xf32>
    %107 = arith.truncf %106 : vector<8x1024xf32> to vector<8x1024xbf16>
    %c0_50 = arith.constant 0 : index
    %c0_51 = arith.constant 0 : index
    %108 = vector.load %arg14[%c0_50, %c0_51] : memref<1024x784xbf16, #tpu.memory_space<vmem>>, vector<1024x784xbf16>
    %cst_52 = arith.constant dense<0.000000e+00> : vector<8x784xf32>
    %109 = tpu.matmul %107, %108, %cst_52 {dimension_numbers = #tpu.dot_dimension_numbers<[1], [0], [0], [1], [0, 0, 1, 1], [], []>} : vector<8x1024xbf16>, vector<1024x784xbf16>, vector<8x784xf32> -> vector<8x784xf32>
    %cst_53 = arith.constant dense<0.000000e+00> : vector<784xf32>
    %110 = vector.multi_reduction <add>, %109, %cst_53 [0] : vector<8x784xf32> to vector<784xf32>
    %111 = vector.shape_cast %110 : vector<784xf32> to vector<1x784xf32>
    %cst_54 = arith.constant 8.000000e+00 : f32
    %112 = vector.broadcast %cst_54 : f32 to vector<1x784xf32>
    %113 = arith.divf %111, %112 : vector<1x784xf32>
    %114 = arith.mulf %109, %109 : vector<8x784xf32>
    %cst_55 = arith.constant dense<0.000000e+00> : vector<784xf32>
    %115 = vector.multi_reduction <add>, %114, %cst_55 [0] : vector<8x784xf32> to vector<784xf32>
    %116 = vector.shape_cast %115 : vector<784xf32> to vector<1x784xf32>
    %cst_56 = arith.constant 8.000000e+00 : f32
    %117 = vector.broadcast %cst_56 : f32 to vector<1x784xf32>
    %118 = arith.divf %116, %117 : vector<1x784xf32>
    %119 = arith.mulf %113, %113 : vector<1x784xf32>
    %120 = arith.subf %118, %119 : vector<1x784xf32>
    %c0_57 = arith.constant 0 : index
    %c0_58 = arith.constant 0 : index
    %121 = vector.load %arg15[%c0_57, %c0_58] : memref<1x784xf32, #tpu.memory_space<vmem>>, vector<1x784xf32>
    %cst_59 = arith.constant 8.000000e-01 : f32
    %122 = vector.broadcast %cst_59 : f32 to vector<1x784xf32>
    %123 = arith.addf %120, %122 : vector<1x784xf32>
    %124 = math.rsqrt %123 : vector<1x784xf32>
    %125 = arith.mulf %121, %124 : vector<1x784xf32>
    %c0_60 = arith.constant 0 : index
    %c0_61 = arith.constant 0 : index
    %126 = vector.load %arg16[%c0_60, %c0_61] : memref<1x784xf32, #tpu.memory_space<vmem>>, vector<1x784xf32>
    %127 = arith.mulf %113, %125 : vector<1x784xf32>
    %128 = arith.subf %126, %127 : vector<1x784xf32>
    %129 = vector.broadcast %125 : vector<1x784xf32> to vector<8x784xf32>
    %130 = arith.mulf %109, %129 : vector<8x784xf32>
    %131 = vector.broadcast %128 : vector<1x784xf32> to vector<8x784xf32>
    %132 = arith.addf %130, %131 : vector<8x784xf32>
    %cst_62 = arith.constant 2.000000e-01 : f32
    %133 = vector.broadcast %cst_62 : f32 to vector<8x784xf32>
    %134 = arith.mulf %133, %132 : vector<8x784xf32>
    %135 = arith.maximumf %132, %134 : vector<8x784xf32>
    %136 = math.tanh %135 : vector<8x784xf32>
    %c0_63 = arith.constant 0 : index
    %c0_64 = arith.constant 0 : index
    %137 = vector.load %arg17[%c0_63, %c0_64] : memref<8x784xf32, #tpu.memory_space<vmem>>, vector<8x784xf32>
    tpu.vector_store %arg17[%c0_63, %c0_64], %136 {strides = array<i32>} : memref<8x784xf32, #tpu.memory_space<vmem>>, vector<8x784xf32>,
    return
  }
}

</mosaic_0001>

<bundles_post_ra>
// kernel: generator_forward.1
= control target key start
LH: loop header
LB: loop body
LE: loop exit
PB: predicated region body
PF: predicated region fallthrough
CT: control target
= control target key end

     0   :  { %v9065_v0 = vmov 0   ;;  %v9066_v2 = vmov 0.0   ;;  %vm9067_vm0 = vmmov 0   ;;  %vm180_vm1 = vcmask 1044480   ;;  %s12015_s0 = inlined_call_operand.vmem [shape: s32[8,1], index: 0, kind: input, shape index: {}]   ;;  %s12016_s3 = inlined_call_operand.vmem [shape: bf16[100,128], index: 3, kind: input, shape index: {}]   ;;  %s12017_s2 = inlined_call_operand.vmem [shape: bf16[10,128], index: 2, kind: input, shape index: {}]   ;;  %s12018_s5 = inlined_call_operand.vmem [shape: bf16[128,256], index: 5, kind: input, shape index: {}]   ;;  %s12019_s1 = inlined_call_operand.vmem [shape: f32[8,100], index: 1, kind: input, shape index: {}]   ;;  %s12020_s8 = inlined_call_operand.vmem [shape: bf16[256,512], index: 8, kind: input, shape index: {}]   ;;  %s12021_s4 = inlined_call_operand.vmem [shape: f32[1,128], index: 4, kind: input, shape index: {}]   ;;  %s12022_s6 = inlined_call_operand.vmem [shape: f32[1,256], index: 6, kind: input, shape index: {}]   ;;  %s12023_s7 = inlined_call_operand.vmem [shape: f32[1,256], index: 7, kind: input, shape index: {}]   ;;  %s12024_s11 = inlined_call_operand.vmem [shape: bf16[512,1024], index: 11, kind: input, shape index: {}]   ;;  %s12025_s9 = inlined_call_operand.vmem [shape: f32[1,512], index: 9, kind: input, shape index: {}]   ;;  %s12026_s10 = inlined_call_operand.vmem [shape: f32[1,512], index: 10, kind: input, shape index: {}]   ;;  %s12027_s14 = inlined_call_operand.vmem [shape: bf16[1024,784], index: 14, kind: input, shape index: {}]   ;;  %s12028_s12 = inlined_call_operand.vmem [shape: f32[1,1024], index: 12, kind: input, shape index: {}]   ;;  %s12029_s13 = inlined_call_operand.vmem [shape: f32[1,1024], index: 13, kind: input, shape index: {}]   ;;  %s12030_s15 = inlined_call_operand.vmem [shape: f32[1,784], index: 15, kind: input, shape index: {}]   ;;  %s12031_s16 = inlined_call_operand.vmem [shape: f32[1,784], index: 16, kind: input, shape index: {}]   ;;  %s12032_s17 = inlined_call_operand.vmem [shape: f32[8,784], index: 17, kind: output, shape index: {}]  }
   0x1   :  { %12034 = sst [smem:[#allocation2_spill]] %s12015_s0  ;;  %8240 = vset.pattern.permute.xlu0 %v9065_v0  ;;  %8160 = vmatprep.subr.bf16.mxu0 %v9066_v2  ;;  %v8248_v6 = vld [vmem:[%s12017_s2] sm:$0x1f]   ;;  %vm127_vm2 = vcmask 1041408   ;;  %vm123_vm3 = vcmask 818176   ;;  %v58_v16 = vlaneseq  ;;  %vm176_vm5 = vcmask 80896  }
   0x2   :  { %12035 = sst [smem:[#allocation3_spill]] %s12016_s3  ;;  %s12036_s26 = sld [smem:[#allocation2_spill]]  ;;  %8174 = vmatprep.mubr.msk.bf16.mxu0 %vm9067_vm0, %v9066_v2  ;;  %8178 = vmatprep.subr.bf16.mxu1 %v9066_v2  ;;  %v8251_v7 = vld [vmem:[%s12018_s5 + $0x4] ss:$8 sps:$4 sm:$0xff]   ;;  %v182_v8 = vsel %vm180_vm1, %v8248_v6, 0  ;;  %vm6925_vm6 = vcmask 130048  }
   0x3   :  { %s12037_s29 = sld [smem:[#allocation3_spill]]  ;;  %8180 = vmatprep.mubr.msk.bf16.mxu1 %vm9067_vm0, %v9066_v2  ;;  %8179 = vmatpush3.bf16.msra.mxu1 %v182_v8  ;;  %v69_v13 = vld [vmem:[%s12019_s1] sm:$0xff]  ;;  %v59_v17 = vand.u32 127, %v58_v16  ;;  %v8254_v22 = vld [vmem:[%s12018_s5 + $0x14] ss:$8 sps:$4 sm:$0xff]  }
   0x4   :  { %331 = vmatprep.subr.bf16.mxu1 %v8251_v7  ;;  %v70_v15 = vpack.c.bf16 %v69_v13, %v69_v13  ;;  %v8249_v20 = vld [vmem:[%s12018_s5] ss:$8 sps:$4 sm:$0xff]   ;;  %v8252_v23 = vld [vmem:[%s12018_s5 + $0x10] ss:$8 sps:$4 sm:$0xff]   ;;  %v8257_v24 = vld [vmem:[%s12018_s5 + $0x24] ss:$8 sps:$4 sm:$0xff]  }
   0x5   :  { %v8255_v25 = vld [vmem:[%s12018_s5 + $0x20] ss:$8 sps:$4 sm:$0xff]   ;;  %v8260_v26 = vld [vmem:[%s12018_s5 + $0x34] ss:$8 sps:$4 sm:$0xff]   ;;  %v8258_v27 = vld [vmem:[%s12018_s5 + $0x30] ss:$8 sps:$4 sm:$0xff]  }
   0x6   :  { %v8263_v28 = vld [vmem:[%s12018_s5 + $0x44] ss:$8 sps:$4 sm:$0xff]   ;;  %v8261_v29 = vld [vmem:[%s12018_s5 + $0x40] ss:$8 sps:$4 sm:$0xff]   ;;  %v8266_v30 = vld [vmem:[%s12018_s5 + $0x54] ss:$8 sps:$4 sm:$0xff]  }
   0x7   :  { %v8264_v31 = vld [vmem:[%s12018_s5 + $0x50] ss:$8 sps:$4 sm:$0xff]   ;;  %v8269_v32 = vld [vmem:[%s12018_s5 + $0x64] ss:$8 sps:$4 sm:$0xff]   ;;  %v8267_v33 = vld [vmem:[%s12018_s5 + $0x60] ss:$8 sps:$4 sm:$0xff]  }
   0x8   :  { %v57_v1 = vld [vmem:[%s12036_s26] sm:$0xff]  ;;  %v8272_v34 = vld [vmem:[%s12018_s5 + $0x74] ss:$8 sps:$4 sm:$0xff]   ;;  %v8270_v35 = vld [vmem:[%s12018_s5 + $0x70] ss:$8 sps:$4 sm:$0xff]  }
   0x9   :  { %61 = vperm.xlu0 %8240, %v57_v1   ;;  %v8241_v3 = vld [vmem:[%s12037_s29] sm:$0xff]   ;;  %v8242_v4 = vld [vmem:[%s12037_s29 + $0x8] sm:$0xff]   ;;  %v8243_v5 = vld [vmem:[%s12037_s29 + $0x10] sm:$0xff]  }
   0xa   :  { %8161 = vmatpush3.bf16.msra.mxu0 %v8241_v3  ;;  %v8244_v9 = vld [vmem:[%s12037_s29 + $0x18] sm:$0xff]   ;;  %v8245_v10 = vld [vmem:[%s12037_s29 + $0x20] sm:$0xff]   ;;  %v8246_v11 = vld [vmem:[%s12037_s29 + $0x28] sm:$0xff]  }
   0xb   :  { %8162 = vmatprep.subr.bf16.mxu0 %v9066_v2  ;;  %v8247_v12 = vld [vmem:[%s12037_s29 + $0x30] ss:$0 sps:$4 sm:$0x33]   ;;  %v8275_v36 = vld [vmem:[%s12020_s8 + $0x4] ss:$16 sps:$4 sm:$0xff]  }
   0xc   :  { %v129_v14 = vsel %vm127_vm2, %v8247_v12, 0  ;;  %v7277_v42 = vld [vmem:[%s12021_s4] ss:$0 sm:$0xff]  ;;  %v8278_v52 = vld [vmem:[%s12020_s8 + $0x24] ss:$16 sps:$4 sm:$0xff]  }
   0xd   :  { %v8273_v50 = vld [vmem:[%s12020_s8] ss:$16 sps:$4 sm:$0xff]   ;;  %v8281_v54 = vld [vmem:[%s12020_s8 + $0x44] ss:$16 sps:$4 sm:$0xff]  }
   0xe   :  { %8163 = vmatpush3.bf16.msra.mxu0 %v8242_v4  ;;  %v8276_v53 = vld [vmem:[%s12020_s8 + $0x20] ss:$16 sps:$4 sm:$0xff]   ;;  %v8284_v56 = vld [vmem:[%s12020_s8 + $0x64] ss:$16 sps:$4 sm:$0xff]  }
   0xf   :  { %8164 = vmatprep.subr.bf16.mxu0 %v9066_v2  ;;  %v8279_v55 = vld [vmem:[%s12020_s8 + $0x40] ss:$16 sps:$4 sm:$0xff]   ;;  %v8287_v58 = vld [vmem:[%s12020_s8 + $0x84] ss:$16 sps:$4 sm:$0xff]  }
  0x10   :  { %v8282_v57 = vld [vmem:[%s12020_s8 + $0x60] ss:$16 sps:$4 sm:$0xff]   ;;  %v8290_v60 = vld [vmem:[%s12020_s8 + $0xa4] ss:$16 sps:$4 sm:$0xff]  }
  0x11   :  { %v8285_v59 = vld [vmem:[%s12020_s8 + $0x80] ss:$16 sps:$4 sm:$0xff]   ;;  %v8293_v62 = vld [vmem:[%s12020_s8 + $0xc4] ss:$16 sps:$4 sm:$0xff]  }
  0x12   :  { %8165 = vmatpush3.bf16.msra.mxu0 %v8243_v5  ;;  %v8288_v61 = vld [vmem:[%s12020_s8 + $0xa0] ss:$16 sps:$4 sm:$0xff]   ;;  %v8302_v4 = vld [vmem:[%s12020_s8 + $0x124] ss:$16 sps:$4 sm:$0xff]  }
  0x13   :  { %8166 = vmatprep.subr.bf16.mxu0 %v9066_v2  ;;  %v8291_v63 = vld [vmem:[%s12020_s8 + $0xc0] ss:$16 sps:$4 sm:$0xff]   ;;  %v8305_v6 = vld [vmem:[%s12020_s8 + $0x144] ss:$16 sps:$4 sm:$0xff]  }
  0x14   :  { %v8294_v1 = vld [vmem:[%s12020_s8 + $0xe0] ss:$16 sps:$4 sm:$0xff]   ;;  %v8308_v8 = vld [vmem:[%s12020_s8 + $0x164] ss:$16 sps:$4 sm:$0xff]  }
  0x15   :  { %v8297_v3 = vld [vmem:[%s12020_s8 + $0x100] ss:$16 sps:$4 sm:$0xff]   ;;  %v8314_v12 = vld [vmem:[%s12020_s8 + $0x1a4] ss:$16 sps:$4 sm:$0xff]  }
  0x16   :  { %8167 = vmatpush3.bf16.msra.mxu0 %v8244_v9  ;;  %v8300_v5 = vld [vmem:[%s12020_s8 + $0x120] ss:$16 sps:$4 sm:$0xff]  }
  0x17   :  { %8168 = vmatprep.subr.bf16.mxu0 %v9066_v2  ;;  %v8303_v7 = vld [vmem:[%s12020_s8 + $0x140] ss:$16 sps:$4 sm:$0xff]  }
  0x18   :  { %v8306_v9 = vld [vmem:[%s12020_s8 + $0x160] ss:$16 sps:$4 sm:$0xff]  }
  0x19   :  { %v8312_v13 = vld [vmem:[%s12020_s8 + $0x1a0] ss:$16 sps:$4 sm:$0xff]  }
  0x1a   :  { %8169 = vmatpush3.bf16.msra.mxu0 %v8245_v10  ;;  %v8311_v10 = vld [vmem:[%s12020_s8 + $0x184] ss:$16 sps:$4 sm:$0xff]  }
  0x1b   :  { %8170 = vmatprep.subr.bf16.mxu0 %v9066_v2 }
  0x1e   :  { %8171 = vmatpush3.bf16.msra.mxu0 %v8246_v11  ;;  %v8309_v11 = vld [vmem:[%s12020_s8 + $0x180] ss:$16 sps:$4 sm:$0xff]  }
  0x1f   :  { %8172 = vmatprep.subr.bf16.mxu0 %v9066_v2 }
  0x22   :  { %8173 = vmatpush3.bf16.msra.mxu0 %v129_v14  ;;  %v8317_v14 = vld [vmem:[%s12020_s8 + $0x1c4] ss:$16 sps:$4 sm:$0xff]  }
  0x25   :  { %8175 = vmatmul.mubr.msk.bf16.vlgmr.msra.gmra.mrb[0].mxu0 %vm123_vm3, %v70_v15  ;;  %v8315_v15 = vld [vmem:[%s12020_s8 + $0x1c0] ss:$16 sps:$4 sm:$0xff]  }
  0x88   :  { %v62_v18 = vpop.permute.xlu0 %61 }
  0x89   :  { %vm63_vm4 = vcmp.eq.s32.totalorder %v62_v18, %v59_v17  ;;  %v8320_v17 = vld [vmem:[%s12020_s8 + $0x1e4] ss:$16 sps:$4 sm:$0xff]   ;;  %v8318_v18 = vld [vmem:[%s12020_s8 + $0x1e0] ss:$16 sps:$4 sm:$0xff]  }
  0x8a   :  { %v7266_v19 = vsel %vm63_vm4, 1.0, %v9066_v2  ;;  %v8299_v2 = vld [vmem:[%s12020_s8 + $0x104] ss:$16 sps:$4 sm:$0xff]  }
  0x8b   :  { %v66_v21 = vpack.c.bf16 %v7266_v19, %v7266_v19  ;;  %v8323_v19 = vld [vmem:[%s12020_s8 + $0xc] ss:$16 sps:$4 sm:$0xff]  }
  0x8d   :  { %8181 = vmatmul.mubr.msk.bf16.vlgmr.msra.gmra.mrb[0].mxu1 %vm176_vm5, %v66_v21 }
  0x8e   :  { %332 = vmatpush1.bf16.msra.mxu1 %v8249_v20  ;;  %363 = vmatprep.mubr.bf16.mxu1 %v9065_v0  ;;  %v8296_v0 = vld [vmem:[%s12020_s8 + $0xe4] ss:$16 sps:$4 sm:$0xff]  }
  0x8f   :  { %333 = vmatprep.subr.bf16.mxu1 %v8254_v22 }
  0x92   :  { %334 = vmatpush1.bf16.msra.mxu1 %v8252_v23 }
  0x93   :  { %335 = vmatprep.subr.bf16.mxu1 %v8257_v24 }
  0x96   :  { %336 = vmatpush1.bf16.msra.mxu1 %v8255_v25 }
  0x97   :  { %337 = vmatprep.subr.bf16.mxu1 %v8260_v26 }
  0x9a   :  { %338 = vmatpush1.bf16.msra.mxu1 %v8258_v27 }
  0x9b   :  { %339 = vmatprep.subr.bf16.mxu1 %v8263_v28 }
  0x9e   :  { %340 = vmatpush1.bf16.msra.mxu1 %v8261_v29 }
  0x9f   :  { %341 = vmatprep.subr.bf16.mxu1 %v8266_v30 }
  0xa2   :  { %342 = vmatpush1.bf16.msra.mxu1 %v8264_v31 }
  0xa3   :  { %343 = vmatprep.subr.bf16.mxu1 %v8269_v32 }
  0xa6   :  { %344 = vmatpush1.bf16.msra.mxu1 %v8267_v33 }
  0xa7   :  { %345 = vmatprep.subr.bf16.mxu1 %v8272_v34 }
  0xaa   :  { %346 = vmatpush1.bf16.msra.mxu1 %v8270_v35 }
  0xab   :  { %869 = vmatprep.subr.bf16.mxu1 %v8275_v36 }
  0xf8   :  { %v165_v37 = vpop.f32.mrb[0].mxu0 }
  0xf9   :  { %v8176_v38 = vpop.f32.mrb[1].mxu0 }
  0xfa   :  { %v168_v39 = vpop.f32.mrb[2].mxu0 }
  0xfb   :  { %v8177_v40 = vpop.f32.mrb[3].mxu0 }
 0x160   :  { %v218_v41 = vpop.f32.mrb[0].mxu1 }
 0x161   :  { %v219_v43 = vadd.f32 %v218_v41, %v165_v37  ;;  %v8182_v44 = vpop.f32.mrb[1].mxu1 }
 0x162   :  { %v221_v45 = vpop.f32.mrb[2].mxu1 }
 0x163   :  { %v231_v46 = vadd.f32 %v7277_v42, %v219_v43  ;;  %v8183_v47 = vpop.f32.mrb[3].mxu1 }
 0x165   :  { %v232_v48 = vmul.f32 0.2, %v231_v46 }
 0x167   :  { %v233_v49 = vmax.f32 %v231_v46, %v232_v48 }
 0x169   :  { %v234_v51 = vpack.c.bf16 %v233_v49, %v233_v49 }
 0x16b   :  { %364 = vmatmul.mubr.bf16.vlgmr.msra.gmra.mrb[4].mxu1 %v234_v51 }
 0x16c   :  { %870 = vmatpush1.bf16.msra.mxu1 %v8273_v50 }
 0x16d   :  { %871 = vmatprep.subr.bf16.mxu1 %v8278_v52 }
 0x170   :  { %872 = vmatpush1.bf16.msra.mxu1 %v8276_v53 }
 0x171   :  { %873 = vmatprep.subr.bf16.mxu1 %v8281_v54 }
 0x174   :  { %874 = vmatpush1.bf16.msra.mxu1 %v8279_v55 }
 0x175   :  { %875 = vmatprep.subr.bf16.mxu1 %v8284_v56 }
 0x178   :  { %876 = vmatpush1.bf16.msra.mxu1 %v8282_v57 }
 0x179   :  { %877 = vmatprep.subr.bf16.mxu1 %v8287_v58 }
 0x17c   :  { %878 = vmatpush1.bf16.msra.mxu1 %v8285_v59 }
 0x17d   :  { %879 = vmatprep.subr.bf16.mxu1 %v8290_v60  ;;  %v9068_v60 = vmov 1966171168  }
 0x180   :  { %880 = vmatpush1.bf16.msra.mxu1 %v8288_v61  ;;  %v416_v61 = vunpack.c.l.s4 %v9068_v60  ;;  %v8368_v60 = vld [vmem:[%s12020_s8 + $0x1ec] ss:$16 sps:$4 sm:$0xff]  }
 0x181   :  { %881 = vmatprep.subr.bf16.mxu1 %v8293_v62 }
 0x182   :  { %v417_v62 = vunpack.c.0.s8 %v416_v61  ;;  %v8366_v61 = vld [vmem:[%s12020_s8 + $0x1e8] ss:$16 sps:$4 sm:$0xff]  }
 0x184   :  { %882 = vmatpush1.bf16.msra.mxu1 %v8291_v63  ;;  %v9341_v63 = vshrl.u32 %v58_v16, 7 }
 0x185   :  { %883 = vmatprep.subr.bf16.mxu1 %v8296_v0 }
 0x186   :  { %v9355_v16 = vsub.s32 1, %v9341_v63 }
 0x188   :  { %884 = vmatpush1.bf16.msra.mxu1 %v8294_v1  ;;  %v9344_v1 = vsub.s32 %v417_v62, %v9341_v63  ;;  %v1155_v62 = vld [vmem:[%s12024_s11] sm:$0xff] }
 0x189   :  { %885 = vmatprep.subr.bf16.mxu1 %v8299_v2 }
 0x18c   :  { %886 = vmatpush1.bf16.msra.mxu1 %v8297_v3 }
 0x18d   :  { %887 = vmatprep.subr.bf16.mxu1 %v8302_v4 }
 0x190   :  { %888 = vmatpush1.bf16.msra.mxu1 %v8300_v5  ;;  %v407_v5 = vld [vmem:[%s12022_s6] sm:$0x3] }
 0x191   :  { %889 = vmatprep.subr.bf16.mxu1 %v8305_v6 }
 0x194   :  { %890 = vmatpush1.bf16.msra.mxu1 %v8303_v7  ;;  %v9352_v7 = vsub.s32 0, %v9341_v63 }
 0x195   :  { %891 = vmatprep.subr.bf16.mxu1 %v8308_v8 }
 0x198   :  { %892 = vmatpush1.bf16.msra.mxu1 %v8306_v9 }
 0x199   :  { %893 = vmatprep.subr.bf16.mxu1 %v8311_v10 }
 0x19c   :  { %894 = vmatpush1.bf16.msra.mxu1 %v8309_v11 }
 0x19d   :  { %895 = vmatprep.subr.bf16.mxu1 %v8314_v12 }
 0x1a0   :  { %896 = vmatpush1.bf16.msra.mxu1 %v8312_v13 }
 0x1a1   :  { %897 = vmatprep.subr.bf16.mxu1 %v8317_v14 }
 0x1a4   :  { %898 = vmatpush1.bf16.msra.mxu1 %v8315_v15 }
 0x1a5   :  { %899 = vmatprep.subr.bf16.mxu1 %v8320_v17 }
 0x1a8   :  { %900 = vmatpush1.bf16.msra.mxu1 %v8318_v18  ;;  %v431_v18 = vld [vmem:[%s12023_s7] sm:$0x3] }
 0x1a9   :  { %910 = vmatprep.subr.bf16.mxu1 %v8323_v19 }
 0x23e   :  { %v365_v20 = vpop.f32.mrb[4].mxu1 }
 0x23f   :  { %v372_v21 = vrot.slane %v365_v20, 4  ;;  %v387_v22 = vmul.f32 %v365_v20, %v365_v20  ;;  %v367_v23 = vpop.f32.mrb[5].mxu1 }
 0x240   :  { %v378_v24 = vrot.slane %v367_v23, 4  ;;  %v388_v25 = vmul.f32 %v367_v23, %v367_v23  ;;  %v369_v26 = vpop.f32.mrb[6].mxu1 }
 0x241   :  { %v373_v27 = vadd.f32 %v372_v21, %v365_v20  ;;  %v389_v28 = vrot.slane %v387_v22, 4  ;;  %v370_v29 = vpop.f32.mrb[7].mxu1 }
 0x242   :  { %v379_v30 = vadd.f32 %v378_v24, %v367_v23  ;;  %v395_v31 = vrot.slane %v388_v25, 4 }
 0x243   :  { %v374_v32 = vrot.slane %v373_v27, 2  ;;  %v390_v33 = vadd.f32 %v389_v28, %v387_v22 }
 0x244   :  { %v380_v34 = vrot.slane %v379_v30, 2  ;;  %v396_v35 = vadd.f32 %v395_v31, %v388_v25 }
 0x245   :  { %v375_v36 = vadd.f32 %v374_v32, %v373_v27  ;;  %v391_v37 = vrot.slane %v390_v33, 2  ;;  %v8326_v32 = vld [vmem:[%s12020_s8 + $0x2c] ss:$16 sps:$4 sm:$0xff]  }
 0x246   :  { %v381_v38 = vadd.f32 %v380_v34, %v379_v30  ;;  %v397_v39 = vrot.slane %v396_v35, 2  ;;  %v8321_v30 = vld [vmem:[%s12020_s8 + $0x8] ss:$16 sps:$4 sm:$0xff]   ;;  %v8329_v34 = vld [vmem:[%s12020_s8 + $0x4c] ss:$16 sps:$4 sm:$0xff]  }
 0x247   :  { %v376_v40 = vrot.slane %v375_v36, 1  ;;  %v392_v41 = vadd.f32 %v391_v37, %v390_v33  ;;  %v8324_v33 = vld [vmem:[%s12020_s8 + $0x28] ss:$16 sps:$4 sm:$0xff]  }
 0x248   :  { %v382_v42 = vrot.slane %v381_v38, 1  ;;  %v398_v43 = vadd.f32 %v397_v39, %v396_v35  ;;  %v8327_v35 = vld [vmem:[%s12020_s8 + $0x48] ss:$16 sps:$4 sm:$0xff]  }
 0x249   :  { %v377_v44 = vadd.f32 %v376_v40, %v375_v36  ;;  %v393_v45 = vrot.slane %v392_v41, 1  ;;  %v8332_v36 = vld [vmem:[%s12020_s8 + $0x6c] ss:$16 sps:$4 sm:$0xff]   ;;  %v8330_v37 = vld [vmem:[%s12020_s8 + $0x68] ss:$16 sps:$4 sm:$0xff]  }
 0x24a   :  { %v383_v46 = vadd.f32 %v382_v42, %v381_v38  ;;  %v399_v47 = vrot.slane %v398_v43, 1  ;;  %v8335_v38 = vld [vmem:[%s12020_s8 + $0x8c] ss:$16 sps:$4 sm:$0xff]   ;;  %v8333_v39 = vld [vmem:[%s12020_s8 + $0x88] ss:$16 sps:$4 sm:$0xff]  }
 0x24b   :  { %v385_v48 = vmul.f32 0.125, %v377_v44  ;;  %v394_v49 = vadd.f32 %v393_v45, %v392_v41  ;;  %v8338_v40 = vld [vmem:[%s12020_s8 + $0xac] ss:$16 sps:$4 sm:$0xff]   ;;  %v8336_v41 = vld [vmem:[%s12020_s8 + $0xa8] ss:$16 sps:$4 sm:$0xff]  }
 0x24c   :  { %v386_v50 = vmul.f32 0.125, %v383_v46  ;;  %v400_v51 = vadd.f32 %v399_v47, %v398_v43  ;;  %v8341_v42 = vld [vmem:[%s12020_s8 + $0xcc] ss:$16 sps:$4 sm:$0xff]   ;;  %v8339_v43 = vld [vmem:[%s12020_s8 + $0xc8] ss:$16 sps:$4 sm:$0xff]  }
 0x24d   :  { %v401_v52 = vmul.f32 0.125, %v394_v49  ;;  %v403_v53 = vmul.f32 %v385_v48, %v385_v48  ;;  %v8344_v44 = vld [vmem:[%s12020_s8 + $0xec] ss:$16 sps:$4 sm:$0xff]   ;;  %v8342_v45 = vld [vmem:[%s12020_s8 + $0xe8] ss:$16 sps:$4 sm:$0xff]  }
 0x24e   :  { %v402_v54 = vmul.f32 0.125, %v400_v51  ;;  %v404_v55 = vmul.f32 %v386_v50, %v386_v50  ;;  %v8347_v46 = vld [vmem:[%s12020_s8 + $0x10c] ss:$16 sps:$4 sm:$0xff]   ;;  %v8345_v47 = vld [vmem:[%s12020_s8 + $0x108] ss:$16 sps:$4 sm:$0xff]  }
 0x24f   :  { %v405_v56 = vsub.f32 %v401_v52, %v403_v53  ;;  %v8348_v49 = vld [vmem:[%s12020_s8 + $0x128] ss:$16 sps:$4 sm:$0xff]   ;;  %v8356_v52 = vld [vmem:[%s12020_s8 + $0x16c] ss:$16 sps:$4 sm:$0xff]  }
 0x250   :  { %v406_v57 = vsub.f32 %v402_v54, %v404_v55  ;;  %v8351_v51 = vld [vmem:[%s12020_s8 + $0x148] ss:$16 sps:$4 sm:$0xff]   ;;  %v8359_v54 = vld [vmem:[%s12020_s8 + $0x18c] ss:$16 sps:$4 sm:$0xff]  }
 0x251   :  { %v408_v58 = vadd.f32 0.8, %v405_v56  ;;  %v8354_v53 = vld [vmem:[%s12020_s8 + $0x168] ss:$16 sps:$4 sm:$0xff]   ;;  %v8362_v56 = vld [vmem:[%s12020_s8 + $0x1ac] ss:$16 sps:$4 sm:$0xff]  }
 0x252   :  { %v409_v59 = vadd.f32 0.8, %v406_v57  ;;  %v8357_v55 = vld [vmem:[%s12020_s8 + $0x188] ss:$16 sps:$4 sm:$0xff]  }
 0x253   :  { %9009 = vrsqrt.f32 %v408_v58  ;;  %v8360_v57 = vld [vmem:[%s12020_s8 + $0x1a8] ss:$16 sps:$4 sm:$0xff]   ;;  %v8365_v58 = vld [vmem:[%s12020_s8 + $0x1cc] ss:$16 sps:$4 sm:$0xff]  }
 0x254   :  { %9011 = vrsqrt.f32 %v409_v59  ;;  %v8363_v59 = vld [vmem:[%s12020_s8 + $0x1c8] ss:$16 sps:$4 sm:$0xff]  }
 0x25d   :  { %v9010_v0 = vpop.eup %9009 }
 0x25e   :  { %v9012_v2 = vpop.eup %9011 }
 0x25f   :  { %v414_v3 = vcombine.low %v9010_v0, %v9012_v2  ;;  %v1159_v0 = vld [vmem:[%s12024_s11 + $0x20] sm:$0xff]  ;;  %v1156_v2 = vld [vmem:[%s12024_s11 + $0x8] sm:$0xff] }
 0x261   :  { %v421_v4 = vrot.slane %v414_v3, %v9344_v1  ;;  %v7359_v3 = vcombine.high %v1155_v62, %v1159_v0 }
 0x263   :  { %v428_v6 = vrot.slane %v421_v4, %v9344_v1  ;;  %v1160_v4 = vld [vmem:[%s12024_s11 + $0x28] sm:$0xff]  ;;  %2691 = vmatprep.subr.bf16.mxu0 %v7359_v3 }
 0x265   :  { %v430_v8 = vmul.f32 %v428_v6, %v407_v5  ;;  %v7358_v5 = vcombine.low %v1155_v62, %v1159_v0  ;;  %v7360_v6 = vcombine.low %v1156_v2, %v1160_v4  ;;  %v1216_v62 = vld [vmem:[%s12024_s11 + $0x1e8] sm:$0xff] }
 0x267   :  { %v436_v9 = vrot.slane %v430_v8, %v9352_v7  ;;  %v440_v10 = vrot.slane %v430_v8, %v9355_v16  ;;  %v7361_v8 = vcombine.high %v1156_v2, %v1160_v4  ;;  %2692 = vmatpush1.bf16.msra.mxu0 %v7358_v5  ;;  %v1219_v4 = vld [vmem:[%s12024_s11 + $0x200] sm:$0xff] }
 0x268   :  { %v1223_v5 = vld [vmem:[%s12024_s11 + $0x220] sm:$0xff] }
 0x269   :  { %v443_v11 = vmul.f32 %v436_v9, %v385_v48  ;;  %v444_v12 = vmul.f32 %v440_v10, %v386_v50  ;;  %v465_v13 = vmul.f32 %v440_v10, %v367_v23  ;;  %v464_v14 = vmul.f32 %v436_v9, %v365_v20  ;;  %v8350_v48 = vld [vmem:[%s12020_s8 + $0x12c] ss:$16 sps:$4 sm:$0xff]   ;;  %v1163_v9 = vld [vmem:[%s12024_s11 + $0x40] sm:$0xff] }
 0x26a   :  { %v8353_v50 = vld [vmem:[%s12020_s8 + $0x14c] ss:$16 sps:$4 sm:$0xff]   ;;  %v1167_v10 = vld [vmem:[%s12024_s11 + $0x60] sm:$0xff] }
 0x26b   :  { %v447_v15 = vcombine.low %v443_v11, %v444_v12  ;;  %v1164_v11 = vld [vmem:[%s12024_s11 + $0x48] sm:$0xff]  ;;  %v7367_v12 = vcombine.high %v1163_v9, %v1167_v10 }
 0x26d   :  { %v454_v17 = vrot.slane %v447_v15, %v9344_v1  ;;  %2693 = vmatprep.subr.bf16.mxu0 %v7367_v12 }
 0x26f   :  { %v461_v19 = vrot.slane %v454_v17, %v9344_v1 }
 0x271   :  { %v463_v21 = vsub.f32 %v431_v18, %v461_v19  ;;  %v1171_v18 = vld [vmem:[%s12024_s11 + $0x80] sm:$0xff] }
 0x272   :  { %v1175_v19 = vld [vmem:[%s12024_s11 + $0xa0] sm:$0xff] }
 0x273   :  { %v474_v22 = vrot.slane %v463_v21, %v9355_v16  ;;  %v470_v24 = vrot.slane %v463_v21, %v9352_v7  ;;  %v1172_v21 = vld [vmem:[%s12024_s11 + $0x88] sm:$0xff] }
 0x275   :  { %v478_v25 = vadd.f32 %v474_v22, %v465_v13  ;;  %v477_v26 = vadd.f32 %v470_v24, %v464_v14  ;;  %v1168_v13 = vld [vmem:[%s12024_s11 + $0x68] sm:$0xff]  ;;  %v7366_v14 = vcombine.low %v1163_v9, %v1167_v10  ;;  %v7375_v22 = vcombine.high %v1171_v18, %v1175_v19 }
 0x276   :  { %v7368_v15 = vcombine.low %v1164_v11, %v1168_v13  ;;  %v7369_v17 = vcombine.high %v1164_v11, %v1168_v13  ;;  %v1176_v24 = vld [vmem:[%s12024_s11 + $0xa8] sm:$0xff]  ;;  %v7422_v10 = vcombine.low %v1219_v4, %v1223_v5  ;;  %v1227_v13 = vld [vmem:[%s12024_s11 + $0x240] sm:$0xff] }
 0x277   :  { %v480_v27 = vmul.f32 0.2, %v478_v25  ;;  %v479_v28 = vmul.f32 0.2, %v477_v26  ;;  %2694 = vmatpush1.bf16.msra.mxu0 %v7366_v14  ;;  %v1224_v9 = vld [vmem:[%s12024_s11 + $0x228] sm:$0xff]  ;;  %v1231_v14 = vld [vmem:[%s12024_s11 + $0x260] sm:$0xff] }
 0x278   :  { %2695 = vmatprep.subr.bf16.mxu0 %v7375_v22 }
 0x279   :  { %v482_v23 = vmax.f32 %v478_v25, %v480_v27  ;;  %v481_v20 = vmax.f32 %v477_v26, %v479_v28  ;;  %v7374_v25 = vcombine.low %v1171_v18, %v1175_v19  ;;  %v7376_v26 = vcombine.low %v1172_v21, %v1176_v24  ;;  %v1179_v28 = vld [vmem:[%s12024_s11 + $0xc0] sm:$0xff]  ;;  %v1232_v18 = vld [vmem:[%s12024_s11 + $0x268] sm:$0xff] }
 0x27a   :  { %v7377_v27 = vcombine.high %v1172_v21, %v1176_v24  ;;  %v7430_v19 = vcombine.low %v1227_v13, %v1231_v14  ;;  %v1235_v24 = vld [vmem:[%s12024_s11 + $0x280] sm:$0xff] }
 0x27b   :  { %v484_v29 = vpack.c.bf16 %v482_v23, %v482_v23  ;;  %v9369_v31 = vpack.c.bf16 %v481_v20, %v481_v20  ;;  %2696 = vmatpush1.bf16.msra.mxu0 %v7374_v25  ;;  %v1183_v23 = vld [vmem:[%s12024_s11 + $0xe0] sm:$0xff]  ;;  %v1180_v20 = vld [vmem:[%s12024_s11 + $0xc8] sm:$0xff] }
 0x27c   :  { %v1239_v25 = vld [vmem:[%s12024_s11 + $0x2a0] sm:$0xff] }
 0x27d   :  { %901 = vmatprep.mubr.bf16.mxu1 %v484_v29 }
 0x27e   :  { %902 = vmatmul.mubr.bf16.vlgmr.msra.gmra.mrb[8].mxu1 %v9369_v31 }
 0x27f   :  { %911 = vmatpush1.bf16.msra.mxu1 %v8321_v30  ;;  %942 = vmatprep.mubr.bf16.mxu1 %v484_v29  ;;  %v7383_v29 = vcombine.high %v1179_v28, %v1183_v23  ;;  %v1184_v30 = vld [vmem:[%s12024_s11 + $0xe8] sm:$0xff] }
 0x280   :  { %912 = vmatprep.subr.bf16.mxu1 %v8326_v32  ;;  %v7384_v32 = vcombine.low %v1180_v20, %v1184_v30 }
 0x281   :  { %2697 = vmatprep.subr.bf16.mxu0 %v7383_v29 }
 0x283   :  { %913 = vmatpush1.bf16.msra.mxu1 %v8324_v33  ;;  %v7385_v33 = vcombine.high %v1180_v20, %v1184_v30  ;;  %v1243_v30 = vld [vmem:[%s12024_s11 + $0x2c0] sm:$0xff] }
 0x284   :  { %914 = vmatprep.subr.bf16.mxu1 %v8329_v34  ;;  %v1187_v34 = vld [vmem:[%s12024_s11 + $0x100] sm:$0xff] }
 0x287   :  { %915 = vmatpush1.bf16.msra.mxu1 %v8327_v35  ;;  %v1191_v35 = vld [vmem:[%s12024_s11 + $0x120] sm:$0xff] }
 0x288   :  { %916 = vmatprep.subr.bf16.mxu1 %v8332_v36  ;;  %v1188_v36 = vld [vmem:[%s12024_s11 + $0x108] sm:$0xff] }
 0x28b   :  { %917 = vmatpush1.bf16.msra.mxu1 %v8330_v37  ;;  %v7391_v37 = vcombine.high %v1187_v34, %v1191_v35 }
 0x28c   :  { %918 = vmatprep.subr.bf16.mxu1 %v8335_v38  ;;  %v1192_v38 = vld [vmem:[%s12024_s11 + $0x128] sm:$0xff] }
 0x28f   :  { %919 = vmatpush1.bf16.msra.mxu1 %v8333_v39  ;;  %v7390_v39 = vcombine.low %v1187_v34, %v1191_v35  ;;  %v1248_v34 = vld [vmem:[%s12024_s11 + $0x2e8] sm:$0xff] }
 0x290   :  { %920 = vmatprep.subr.bf16.mxu1 %v8338_v40  ;;  %v7392_v40 = vcombine.low %v1188_v36, %v1192_v38 }
 0x293   :  { %921 = vmatpush1.bf16.msra.mxu1 %v8336_v41  ;;  %v7393_v41 = vcombine.high %v1188_v36, %v1192_v38  ;;  %v1251_v38 = vld [vmem:[%s12024_s11 + $0x300] sm:$0xff] }
 0x294   :  { %922 = vmatprep.subr.bf16.mxu1 %v8341_v42  ;;  %v1195_v42 = vld [vmem:[%s12024_s11 + $0x140] sm:$0xff] }
 0x297   :  { %923 = vmatpush1.bf16.msra.mxu1 %v8339_v43  ;;  %v1199_v43 = vld [vmem:[%s12024_s11 + $0x160] sm:$0xff] }
 0x298   :  { %924 = vmatprep.subr.bf16.mxu1 %v8344_v44  ;;  %v1196_v44 = vld [vmem:[%s12024_s11 + $0x148] sm:$0xff] }
 0x29b   :  { %925 = vmatpush1.bf16.msra.mxu1 %v8342_v45  ;;  %v7399_v45 = vcombine.high %v1195_v42, %v1199_v43 }
 0x29c   :  { %926 = vmatprep.subr.bf16.mxu1 %v8347_v46  ;;  %v1200_v46 = vld [vmem:[%s12024_s11 + $0x168] sm:$0xff] }
 0x29f   :  { %927 = vmatpush1.bf16.msra.mxu1 %v8345_v47  ;;  %v7398_v47 = vcombine.low %v1195_v42, %v1199_v43  ;;  %v1256_v42 = vld [vmem:[%s12024_s11 + $0x328] sm:$0xff] }
 0x2a0   :  { %928 = vmatprep.subr.bf16.mxu1 %v8350_v48  ;;  %v7400_v48 = vcombine.low %v1196_v44, %v1200_v46 }
 0x2a3   :  { %929 = vmatpush1.bf16.msra.mxu1 %v8348_v49  ;;  %v7401_v49 = vcombine.high %v1196_v44, %v1200_v46  ;;  %v1259_v46 = vld [vmem:[%s12024_s11 + $0x340] sm:$0xff] }
 0x2a4   :  { %930 = vmatprep.subr.bf16.mxu1 %v8353_v50  ;;  %v1203_v50 = vld [vmem:[%s12024_s11 + $0x180] sm:$0xff] }
 0x2a7   :  { %931 = vmatpush1.bf16.msra.mxu1 %v8351_v51  ;;  %v1207_v51 = vld [vmem:[%s12024_s11 + $0x1a0] sm:$0xff] }
 0x2a8   :  { %932 = vmatprep.subr.bf16.mxu1 %v8356_v52  ;;  %v1204_v52 = vld [vmem:[%s12024_s11 + $0x188] sm:$0xff] }
 0x2ab   :  { %933 = vmatpush1.bf16.msra.mxu1 %v8354_v53  ;;  %v7407_v53 = vcombine.high %v1203_v50, %v1207_v51 }
 0x2ac   :  { %934 = vmatprep.subr.bf16.mxu1 %v8359_v54  ;;  %v1208_v54 = vld [vmem:[%s12024_s11 + $0x1a8] sm:$0xff] }
 0x2af   :  { %935 = vmatpush1.bf16.msra.mxu1 %v8357_v55  ;;  %v7406_v55 = vcombine.low %v1203_v50, %v1207_v51  ;;  %v1264_v50 = vld [vmem:[%s12024_s11 + $0x368] sm:$0xff] }
 0x2b0   :  { %936 = vmatprep.subr.bf16.mxu1 %v8362_v56  ;;  %v7408_v56 = vcombine.low %v1204_v52, %v1208_v54 }
 0x2b3   :  { %937 = vmatpush1.bf16.msra.mxu1 %v8360_v57  ;;  %v7409_v57 = vcombine.high %v1204_v52, %v1208_v54  ;;  %v1267_v54 = vld [vmem:[%s12024_s11 + $0x380] sm:$0xff] }
 0x2b4   :  { %938 = vmatprep.subr.bf16.mxu1 %v8365_v58  ;;  %v1211_v58 = vld [vmem:[%s12024_s11 + $0x1c0] sm:$0xff] }
 0x2b7   :  { %939 = vmatpush1.bf16.msra.mxu1 %v8363_v59  ;;  %v1215_v59 = vld [vmem:[%s12024_s11 + $0x1e0] sm:$0xff] }
 0x2b8   :  { %940 = vmatprep.subr.bf16.mxu1 %v8368_v60  ;;  %v1212_v60 = vld [vmem:[%s12024_s11 + $0x1c8] sm:$0xff]  ;;  %v7414_v0 = vcombine.low %v1211_v58, %v1215_v59 }
 0x2b9   :  { %v7416_v2 = vcombine.low %v1212_v60, %v1216_v62  ;;  %v7417_v3 = vcombine.high %v1212_v60, %v1216_v62  ;;  %v1275_v62 = vld [vmem:[%s12024_s11 + $0x3c0] sm:$0xff] }
 0x2bb   :  { %941 = vmatpush1.bf16.msra.mxu1 %v8366_v61  ;;  %v7415_v61 = vcombine.high %v1211_v58, %v1215_v59  ;;  %v1272_v58 = vld [vmem:[%s12024_s11 + $0x3a8] sm:$0xff] }
 0x2bc   :  { %2773 = vmatprep.subr.bf16.mxu1 %v7361_v8  ;;  %v7423_v8 = vcombine.high %v1219_v4, %v1223_v5  ;;  %v1280_v5 = vld [vmem:[%s12024_s11 + $0x3e8] sm:$0xff] }
 0x2be   :  { %943 = vmatmul.mubr.bf16.vlgmr.msra.gmra.mrb[12].mxu1 %v9369_v31  ;;  %v7382_v31 = vcombine.low %v1179_v28, %v1183_v23  ;;  %v1240_v28 = vld [vmem:[%s12024_s11 + $0x2a8] sm:$0xff]  ;;  %v7438_v23 = vcombine.low %v1235_v24, %v1239_v25 }
 0x2bf   :  { %2774 = vmatpush1.bf16.msra.mxu1 %v7360_v6  ;;  %v1220_v6 = vld [vmem:[%s12024_s11 + $0x208] sm:$0xff] }
 0x2c0   :  { %2775 = vmatprep.subr.bf16.mxu1 %v7369_v17  ;;  %2698 = vmatpush1.bf16.msra.mxu0 %v7382_v31  ;;  %v7424_v11 = vcombine.low %v1220_v6, %v1224_v9  ;;  %v7425_v12 = vcombine.high %v1220_v6, %v1224_v9  ;;  %v7431_v17 = vcombine.high %v1227_v13, %v1231_v14  ;;  %v1247_v31 = vld [vmem:[%s12024_s11 + $0x2e0] sm:$0xff] }
 0x2c1   :  { %2699 = vmatprep.subr.bf16.mxu0 %v7391_v37  ;;  %v7446_v35 = vcombine.low %v1243_v30, %v1247_v31  ;;  %v9665_v13 = vld [vmem:[%s12024_s11 + $0x400] sm:$0xff] }
 0x2c2   :  { %v9670_v14 = vld [vmem:[%s12024_s11 + $0x420] sm:$0xff] }
 0x2c3   :  { %2776 = vmatpush1.bf16.msra.mxu1 %v7368_v15  ;;  %v1228_v15 = vld [vmem:[%s12024_s11 + $0x248] sm:$0xff] }
 0x2c4   :  { %2777 = vmatprep.subr.bf16.mxu1 %v7377_v27  ;;  %2700 = vmatpush1.bf16.msra.mxu0 %v7390_v39  ;;  %v7432_v21 = vcombine.low %v1228_v15, %v1232_v18  ;;  %v7433_v22 = vcombine.high %v1228_v15, %v1232_v18  ;;  %v1236_v27 = vld [vmem:[%s12024_s11 + $0x288] sm:$0xff]  ;;  %v1255_v39 = vld [vmem:[%s12024_s11 + $0x320] sm:$0xff] }
 0x2c5   :  { %2701 = vmatprep.subr.bf16.mxu0 %v7399_v45  ;;  %v7440_v20 = vcombine.low %v1236_v27, %v1240_v28  ;;  %v7441_v29 = vcombine.high %v1236_v27, %v1240_v28  ;;  %v7454_v43 = vcombine.low %v1251_v38, %v1255_v39  ;;  %v9675_v15 = vld [vmem:[%s12024_s11 + $0x408] sm:$0xff]  ;;  %v7486_v27 = vcombine.low %v9665_v13, %v9670_v14 }
 0x2c7   :  { %2778 = vmatpush1.bf16.msra.mxu1 %v7376_v26  ;;  %v7439_v26 = vcombine.high %v1235_v24, %v1239_v25 }
 0x2c8   :  { %2779 = vmatprep.subr.bf16.mxu1 %v7385_v33  ;;  %2702 = vmatpush1.bf16.msra.mxu0 %v7398_v47  ;;  %v7447_v33 = vcombine.high %v1243_v30, %v1247_v31  ;;  %v1263_v47 = vld [vmem:[%s12024_s11 + $0x360] sm:$0xff] }
 0x2c9   :  { %2703 = vmatprep.subr.bf16.mxu0 %v7407_v53  ;;  %v7462_v51 = vcombine.low %v1259_v46, %v1263_v47 }
 0x2cb   :  { %2780 = vmatpush1.bf16.msra.mxu1 %v7384_v32  ;;  %v1244_v32 = vld [vmem:[%s12024_s11 + $0x2c8] sm:$0xff] }
 0x2cc   :  { %2781 = vmatprep.subr.bf16.mxu1 %v7393_v41  ;;  %2704 = vmatpush1.bf16.msra.mxu0 %v7406_v55  ;;  %v7448_v36 = vcombine.low %v1244_v32, %v1248_v34  ;;  %v7449_v37 = vcombine.high %v1244_v32, %v1248_v34  ;;  %v7455_v41 = vcombine.high %v1251_v38, %v1255_v39  ;;  %v1271_v55 = vld [vmem:[%s12024_s11 + $0x3a0] sm:$0xff] }
 0x2cd   :  { %2705 = vmatprep.subr.bf16.mxu0 %v7415_v61  ;;  %v7470_v59 = vcombine.low %v1267_v54, %v1271_v55 }
 0x2cf   :  { %2782 = vmatpush1.bf16.msra.mxu1 %v7392_v40  ;;  %v1252_v40 = vld [vmem:[%s12024_s11 + $0x308] sm:$0xff] }
 0x2d0   :  { %2783 = vmatprep.subr.bf16.mxu1 %v7401_v49  ;;  %2706 = vmatpush1.bf16.msra.mxu0 %v7414_v0  ;;  %v7456_v44 = vcombine.low %v1252_v40, %v1256_v42  ;;  %v7457_v45 = vcombine.high %v1252_v40, %v1256_v42  ;;  %v7463_v49 = vcombine.high %v1259_v46, %v1263_v47  ;;  %v1279_v0 = vld [vmem:[%s12024_s11 + $0x3e0] sm:$0xff] }
 0x2d1   :  { %2707 = vmatprep.subr.bf16.mxu0 %v7423_v8  ;;  %v7479_v4 = vcombine.high %v1275_v62, %v1279_v0 }
 0x2d3   :  { %2784 = vmatpush1.bf16.msra.mxu1 %v7400_v48  ;;  %v1260_v48 = vld [vmem:[%s12024_s11 + $0x348] sm:$0xff] }
 0x2d4   :  { %2785 = vmatprep.subr.bf16.mxu1 %v7409_v57  ;;  %2708 = vmatpush1.bf16.msra.mxu0 %v7422_v10  ;;  %v7464_v52 = vcombine.low %v1260_v48, %v1264_v50  ;;  %v7465_v53 = vcombine.high %v1260_v48, %v1264_v50  ;;  %v7471_v57 = vcombine.high %v1267_v54, %v1271_v55 }
 0x2d5   :  { %2709 = vmatprep.subr.bf16.mxu0 %v7431_v17 }
 0x2d7   :  { %2786 = vmatpush1.bf16.msra.mxu1 %v7408_v56  ;;  %v1268_v56 = vld [vmem:[%s12024_s11 + $0x388] sm:$0xff] }
 0x2d8   :  { %2787 = vmatprep.subr.bf16.mxu1 %v7417_v3  ;;  %2710 = vmatpush1.bf16.msra.mxu0 %v7430_v19  ;;  %v7472_v60 = vcombine.low %v1268_v56, %v1272_v58  ;;  %v7473_v61 = vcombine.high %v1268_v56, %v1272_v58  ;;  %v7478_v3 = vcombine.low %v1275_v62, %v1279_v0 }
 0x2d9   :  { %2711 = vmatprep.subr.bf16.mxu0 %v7439_v26 }
 0x2db   :  { %2788 = vmatpush1.bf16.msra.mxu1 %v7416_v2  ;;  %v1276_v2 = vld [vmem:[%s12024_s11 + $0x3c8] sm:$0xff] }
 0x2dc   :  { %2789 = vmatprep.subr.bf16.mxu1 %v7425_v12  ;;  %2712 = vmatpush1.bf16.msra.mxu0 %v7438_v23  ;;  %v7480_v6 = vcombine.low %v1276_v2, %v1280_v5  ;;  %v7481_v8 = vcombine.high %v1276_v2, %v1280_v5 }
 0x2dd   :  { %2713 = vmatprep.subr.bf16.mxu0 %v7447_v33 }
 0x2df   :  { %2790 = vmatpush1.bf16.msra.mxu1 %v7424_v11 }
 0x2e0   :  { %2791 = vmatprep.subr.bf16.mxu1 %v7433_v22  ;;  %2714 = vmatpush1.bf16.msra.mxu0 %v7446_v35  ;;  %v9685_v22 = vld [vmem:[%s12024_s11 + $0x428] sm:$0xff] }
 0x2e1   :  { %2715 = vmatprep.subr.bf16.mxu0 %v7455_v41  ;;  %v7488_v28 = vcombine.low %v9675_v15, %v9685_v22 }
 0x2e3   :  { %2792 = vmatpush1.bf16.msra.mxu1 %v7432_v21  ;;  %v7487_v21 = vcombine.high %v9665_v13, %v9670_v14  ;;  %v1311_v13 = vld [vmem:[%s12024_s11 + $0x4e0] sm:$0xff]  ;;  %v1308_v14 = vld [vmem:[%s12024_s11 + $0x4c8] sm:$0xff] }
 0x2e4   :  { %2793 = vmatprep.subr.bf16.mxu1 %v7441_v29  ;;  %2716 = vmatpush1.bf16.msra.mxu0 %v7454_v43  ;;  %v7489_v29 = vcombine.high %v9675_v15, %v9685_v22  ;;  %v1312_v15 = vld [vmem:[%s12024_s11 + $0x4e8] sm:$0xff] }
 0x2e5   :  { %2717 = vmatprep.subr.bf16.mxu0 %v7463_v49 }
 0x2e7   :  { %2794 = vmatpush1.bf16.msra.mxu1 %v7440_v20 }
 0x2e8   :  { %2795 = vmatprep.subr.bf16.mxu1 %v7449_v37  ;;  %2718 = vmatpush1.bf16.msra.mxu0 %v7462_v51 }
 0x2e9   :  { %2719 = vmatprep.subr.bf16.mxu0 %v7471_v57 }
 0x2eb   :  { %2796 = vmatpush1.bf16.msra.mxu1 %v7448_v36 }
 0x2ec   :  { %2797 = vmatprep.subr.bf16.mxu1 %v7457_v45  ;;  %2720 = vmatpush1.bf16.msra.mxu0 %v7470_v59 }
 0x2ed   :  { %2721 = vmatprep.subr.bf16.mxu0 %v7479_v4 }
 0x2ef   :  { %2798 = vmatpush1.bf16.msra.mxu1 %v7456_v44 }
 0x2f0   :  { %2799 = vmatprep.subr.bf16.mxu1 %v7465_v53  ;;  %2722 = vmatpush1.bf16.msra.mxu0 %v7478_v3 }
 0x2f1   :  { %2732 = vmatprep.subr.bf16.mxu0 %v7487_v21 }
 0x2f3   :  { %2800 = vmatpush1.bf16.msra.mxu1 %v7464_v52 }
 0x2f4   :  { %2801 = vmatprep.subr.bf16.mxu1 %v7473_v61 }
 0x2f7   :  { %2802 = vmatpush1.bf16.msra.mxu1 %v7472_v60 }
 0x2f8   :  { %2803 = vmatprep.subr.bf16.mxu1 %v7481_v8 }
 0x2fb   :  { %2804 = vmatpush1.bf16.msra.mxu1 %v7480_v6 }
 0x2fc   :  { %2814 = vmatprep.subr.bf16.mxu1 %v7489_v29 }
 0x351   :  { %v9655_v9 = vpop.f32.mrb[8].mxu1 }
 0x352   :  { %v951_v10 = vrot.slane %v9655_v9, 4  ;;  %v979_v11 = vmul.f32 %v9655_v9, %v9655_v9  ;;  %v9660_v12 = vpop.f32.mrb[9].mxu1 }
 0x353   :  { %v957_v17 = vrot.slane %v9660_v12, 4  ;;  %v980_v18 = vmul.f32 %v9660_v12, %v9660_v12  ;;  %v907_v19 = vpop.f32.mrb[10].mxu1 }
 0x354   :  { %v952_v24 = vadd.f32 %v951_v10, %v9655_v9  ;;  %v983_v25 = vrot.slane %v979_v11, 4  ;;  %v908_v26 = vpop.f32.mrb[11].mxu1 }
 0x355   :  { %v958_v23 = vadd.f32 %v957_v17, %v9660_v12  ;;  %v989_v20 = vrot.slane %v980_v18, 4 }
 0x356   :  { %v953_v30 = vrot.slane %v952_v24, 2  ;;  %v984_v31 = vadd.f32 %v983_v25, %v979_v11 }
 0x357   :  { %v959_v32 = vrot.slane %v958_v23, 2  ;;  %v990_v33 = vadd.f32 %v989_v20, %v980_v18 }
 0x358   :  { %v954_v34 = vadd.f32 %v953_v30, %v952_v24  ;;  %v985_v35 = vrot.slane %v984_v31, 2 }
 0x359   :  { %v960_v36 = vadd.f32 %v959_v32, %v958_v23  ;;  %v991_v37 = vrot.slane %v990_v33, 2 }
 0x35a   :  { %v955_v38 = vrot.slane %v954_v34, 1  ;;  %v986_v39 = vadd.f32 %v985_v35, %v984_v31 }
 0x35b   :  { %v961_v40 = vrot.slane %v960_v36, 1  ;;  %v992_v41 = vadd.f32 %v991_v37, %v990_v33 }
 0x35c   :  { %v956_v42 = vadd.f32 %v955_v38, %v954_v34  ;;  %v987_v43 = vrot.slane %v986_v39, 1 }
 0x35d   :  { %v962_v44 = vadd.f32 %v961_v40, %v960_v36  ;;  %v993_v45 = vrot.slane %v992_v41, 1 }
 0x35e   :  { %v9695_v46 = vmul.f32 0.125, %v956_v42  ;;  %v988_v47 = vadd.f32 %v987_v43, %v986_v39 }
 0x35f   :  { %v9697_v48 = vmul.f32 0.125, %v962_v44  ;;  %v994_v49 = vadd.f32 %v993_v45, %v992_v41 }
 0x360   :  { %v1007_v50 = vmul.f32 0.125, %v988_v47  ;;  %v1011_v51 = vmul.f32 %v9695_v46, %v9695_v46 }
 0x361   :  { %v1008_v52 = vmul.f32 0.125, %v994_v49  ;;  %v1012_v53 = vmul.f32 %v9697_v48, %v9697_v48 }
 0x362   :  { %v1015_v54 = vsub.f32 %v1007_v50, %v1011_v51 }
 0x363   :  { %v1016_v55 = vsub.f32 %v1008_v52, %v1012_v53 }
 0x364   :  { %v1020_v56 = vadd.f32 0.8, %v1015_v54 }
 0x365   :  { %v1021_v57 = vadd.f32 0.8, %v1016_v55 }
 0x366   :  { %9013 = vrsqrt.f32 %v1020_v56 }
 0x367   :  { %9015 = vrsqrt.f32 %v1021_v57  ;;  %v1019_v57 = vld [vmem:[%s12025_s9] sm:$0xf] }
 0x370   :  { %v9014_v58 = vpop.eup %9013 }
 0x371   :  { %v9016_v59 = vpop.eup %9015 }
 0x372   :  { %v1032_v60 = vcombine.low %v9014_v58, %v9016_v59  ;;  %v9716_v59 = vsub.s32 2, %v9341_v63 }
 0x374   :  { %v1040_v54 = vrot.slane %v1032_v60, %v9344_v1 }
 0x391   :  { %v9703_v61 = vpop.f32.mrb[12].mxu1 }
 0x392   :  { %v963_v62 = vrot.slane %v9703_v61, 4  ;;  %v981_v0 = vmul.f32 %v9703_v61, %v9703_v61  ;;  %v946_v2 = vpop.f32.mrb[13].mxu1 }
 0x393   :  { %v969_v3 = vrot.slane %v946_v2, 4  ;;  %v982_v4 = vmul.f32 %v946_v2, %v946_v2  ;;  %v948_v5 = vpop.f32.mrb[14].mxu1 }
 0x394   :  { %v964_v6 = vadd.f32 %v963_v62, %v9703_v61  ;;  %v995_v8 = vrot.slane %v981_v0, 4  ;;  %v949_v10 = vpop.f32.mrb[15].mxu1  ;;  %v9719_v62 = vsub.s32 3, %v9341_v63 }
 0x395   :  { %v970_v11 = vadd.f32 %v969_v3, %v946_v2  ;;  %v1001_v17 = vrot.slane %v982_v4, 4 }
 0x396   :  { %v965_v18 = vrot.slane %v964_v6, 2  ;;  %v996_v19 = vadd.f32 %v995_v8, %v981_v0 }
 0x397   :  { %v971_v21 = vrot.slane %v970_v11, 2  ;;  %v1002_v24 = vadd.f32 %v1001_v17, %v982_v4 }
 0x398   :  { %v966_v25 = vadd.f32 %v965_v18, %v964_v6  ;;  %v997_v26 = vrot.slane %v996_v19, 2 }
 0x399   :  { %v972_v23 = vadd.f32 %v971_v21, %v970_v11  ;;  %v1003_v20 = vrot.slane %v1002_v24, 2 }
 0x39a   :  { %v967_v29 = vrot.slane %v966_v25, 1  ;;  %v998_v30 = vadd.f32 %v997_v26, %v996_v19 }
 0x39b   :  { %v973_v31 = vrot.slane %v972_v23, 1  ;;  %v1004_v32 = vadd.f32 %v1003_v20, %v1002_v24 }
 0x39c   :  { %v968_v33 = vadd.f32 %v967_v29, %v966_v25  ;;  %v999_v34 = vrot.slane %v998_v30, 1 }
 0x39d   :  { %v974_v35 = vadd.f32 %v973_v31, %v972_v23  ;;  %v1005_v36 = vrot.slane %v1004_v32, 1 }
 0x39e   :  { %v977_v37 = vmul.f32 0.125, %v968_v33  ;;  %v1000_v38 = vadd.f32 %v999_v34, %v998_v30 }
 0x39f   :  { %v978_v39 = vmul.f32 0.125, %v974_v35  ;;  %v1006_v40 = vadd.f32 %v1005_v36, %v1004_v32 }
 0x3a0   :  { %v1009_v41 = vmul.f32 0.125, %v1000_v38  ;;  %v1013_v42 = vmul.f32 %v977_v37, %v977_v37 }
 0x3a1   :  { %v1010_v43 = vmul.f32 0.125, %v1006_v40  ;;  %v1014_v44 = vmul.f32 %v978_v39, %v978_v39 }
 0x3a2   :  { %v1017_v45 = vsub.f32 %v1009_v41, %v1013_v42  ;;  %v1295_v41 = vld [vmem:[%s12024_s11 + $0x460] sm:$0xff]  ;;  %v1292_v42 = vld [vmem:[%s12024_s11 + $0x448] sm:$0xff] }
 0x3a3   :  { %v1018_v47 = vsub.f32 %v1010_v43, %v1014_v44  ;;  %v1296_v43 = vld [vmem:[%s12024_s11 + $0x468] sm:$0xff] }
 0x3a4   :  { %v1022_v49 = vadd.f32 0.8, %v1017_v45 }
 0x3a5   :  { %v1023_v50 = vadd.f32 0.8, %v1018_v47  ;;  %v1299_v47 = vld [vmem:[%s12024_s11 + $0x480] sm:$0xff] }
 0x3a6   :  { %9017 = vrsqrt.f32 %v1022_v49 }
 0x3a7   :  { %9019 = vrsqrt.f32 %v1023_v50  ;;  %v7497_v50 = vcombine.high %v1292_v42, %v1296_v43 }
 0x3b0   :  { %v9018_v51 = vpop.eup %9017 }
 0x3b1   :  { %v9020_v52 = vpop.eup %9019 }
 0x3b2   :  { %v1033_v53 = vcombine.low %v9018_v51, %v9020_v52  ;;  %v1303_v51 = vld [vmem:[%s12024_s11 + $0x4a0] sm:$0xff]  ;;  %v1300_v52 = vld [vmem:[%s12024_s11 + $0x488] sm:$0xff] }
 0x3b3   :  { %v7502_v22 = vcombine.low %v1299_v47, %v1303_v51 }
 0x3b4   :  { %v1047_v55 = vrot.slane %v1033_v53, %v9344_v1  ;;  %v1304_v53 = vld [vmem:[%s12024_s11 + $0x4a8] sm:$0xff] }
 0x3b6   :  { %v1048_v56 = vcombine.low %v1040_v54, %v1047_v55 }
 0x3b8   :  { %v1055_v58 = vrot.slane %v1048_v56, %v9344_v1  ;;  %v7496_v56 = vcombine.low %v1292_v42, %v1296_v43  ;;  %v1348_v42 = vld [vmem:[%s12024_s11 + $0x608] sm:$0xff] }
 0x3b9   :  { %v1352_v43 = vld [vmem:[%s12024_s11 + $0x628] sm:$0xff] }
 0x3ba   :  { %v1057_v0 = vmul.f32 %v1055_v58, %v1019_v57  ;;  %v7503_v57 = vcombine.high %v1299_v47, %v1303_v51  ;;  %v7505_v58 = vcombine.high %v1300_v52, %v1304_v53  ;;  %v7553_v51 = vcombine.high %v1348_v42, %v1352_v43 }
 0x3bc   :  { %v1063_v3 = vrot.slane %v1057_v0, %v9352_v7  ;;  %v1067_v60 = vrot.slane %v1057_v0, %v9355_v16  ;;  %v1071_v4 = vrot.slane %v1057_v0, %v9716_v59  ;;  %v1075_v5 = vrot.slane %v1057_v0, %v9719_v62  ;;  %v1307_v0 = vld [vmem:[%s12024_s11 + $0x4c0] sm:$0xff] }
 0x3be   :  { %v1080_v6 = vmul.f32 %v1063_v3, %v9695_v46  ;;  %v1081_v8 = vmul.f32 %v1067_v60, %v9697_v48  ;;  %v1082_v10 = vmul.f32 %v1071_v4, %v977_v37  ;;  %v1083_v11 = vmul.f32 %v1075_v5, %v978_v39  ;;  %v1058_v46 = vld [vmem:[%s12026_s10] sm:$0xf] }
 0x3bf   :  { %v1117_v17 = vmul.f32 %v1075_v5, %v946_v2  ;;  %v1115_v18 = vmul.f32 %v1067_v60, %v9660_v12  ;;  %v1114_v19 = vmul.f32 %v1063_v3, %v9655_v9  ;;  %v1116_v21 = vmul.f32 %v1071_v4, %v9703_v61  ;;  %v1291_v39 = vld [vmem:[%s12024_s11 + $0x440] sm:$0xff]  ;;  %v1316_v5 = vld [vmem:[%s12024_s11 + $0x508] sm:$0xff] }
 0x3c0   :  { %v1088_v24 = vcombine.low %v1080_v6, %v1081_v8  ;;  %v1089_v25 = vcombine.low %v1082_v10, %v1083_v11  ;;  %v7495_v49 = vcombine.high %v1291_v39, %v1295_v41  ;;  %v7494_v55 = vcombine.low %v1291_v39, %v1295_v41  ;;  %v1315_v60 = vld [vmem:[%s12024_s11 + $0x500] sm:$0xff]  ;;  %v1320_v6 = vld [vmem:[%s12024_s11 + $0x528] sm:$0xff] }
 0x3c1   :  { %v7513_v3 = vcombine.high %v1308_v14, %v1312_v15  ;;  %v1319_v4 = vld [vmem:[%s12024_s11 + $0x520] sm:$0xff]  ;;  %v7510_v8 = vcombine.low %v1307_v0, %v1311_v13  ;;  %v7512_v10 = vcombine.low %v1308_v14, %v1312_v15 }
 0x3c2   :  { %v1096_v26 = vrot.slane %v1088_v24, %v9344_v1  ;;  %v1103_v23 = vrot.slane %v1089_v25, %v9344_v1  ;;  %v7519_v11 = vcombine.high %v1315_v60, %v1319_v4  ;;  %v1328_v24 = vld [vmem:[%s12024_s11 + $0x568] sm:$0xff]  ;;  %v7518_v25 = vcombine.low %v1315_v60, %v1319_v4  ;;  %v1351_v41 = vld [vmem:[%s12024_s11 + $0x620] sm:$0xff] }
 0x3c3   :  { %v1363_v14 = vld [vmem:[%s12024_s11 + $0x680] sm:$0xff] }
 0x3c4   :  { %v1104_v20 = vcombine.low %v1096_v26, %v1103_v23  ;;  %v7520_v26 = vcombine.low %v1316_v5, %v1320_v6  ;;  %v1367_v15 = vld [vmem:[%s12024_s11 + $0x6a0] sm:$0xff] }
 0x3c5   :  { %v7567_v60 = vcombine.high %v1363_v14, %v1367_v15 }
 0x3c6   :  { %v1111_v48 = vrot.slane %v1104_v20, %v9344_v1 }
 0x3c8   :  { %v1113_v2 = vsub.f32 %v1058_v46, %v1111_v48  ;;  %v1331_v46 = vld [vmem:[%s12024_s11 + $0x580] sm:$0xff] }
 0x3c9   :  { %v1335_v48 = vld [vmem:[%s12024_s11 + $0x5a0] sm:$0xff] }
 0x3ca   :  { %v1134_v12 = vrot.slane %v1113_v2, %v9719_v62  ;;  %v1126_v9 = vrot.slane %v1113_v2, %v9355_v16  ;;  %v1122_v61 = vrot.slane %v1113_v2, %v9352_v7  ;;  %v1130_v29 = vrot.slane %v1113_v2, %v9716_v59  ;;  %v1332_v2 = vld [vmem:[%s12024_s11 + $0x588] sm:$0xff] }
 0x3cc   :  { %v1142_v30 = vadd.f32 %v1134_v12, %v1117_v17  ;;  %v1140_v31 = vadd.f32 %v1126_v9, %v1115_v18  ;;  %v1139_v32 = vadd.f32 %v1122_v61, %v1114_v19  ;;  %v9740_v33 = vadd.f32 %v1130_v29, %v1116_v21  ;;  %v1323_v18 = vld [vmem:[%s12024_s11 + $0x540] sm:$0xff]  ;;  %v1324_v21 = vld [vmem:[%s12024_s11 + $0x548] sm:$0xff] }
 0x3cd   :  { %v7521_v17 = vcombine.high %v1316_v5, %v1320_v6  ;;  %v1327_v19 = vld [vmem:[%s12024_s11 + $0x560] sm:$0xff]  ;;  %v7529_v20 = vcombine.high %v1324_v21, %v1328_v24  ;;  %v1336_v12 = vld [vmem:[%s12024_s11 + $0x5a8] sm:$0xff]  ;;  %v7528_v61 = vcombine.low %v1324_v21, %v1328_v24  ;;  %v7535_v29 = vcombine.high %v1331_v46, %v1335_v48 }
 0x3ce   :  { %v1146_v34 = vmul.f32 0.2, %v1142_v30  ;;  %v1144_v35 = vmul.f32 0.2, %v1140_v31  ;;  %v1143_v36 = vmul.f32 0.2, %v1139_v32  ;;  %v7527_v23 = vcombine.high %v1323_v18, %v1327_v19 }
 0x3cf   :  { %v7526_v9 = vcombine.low %v1323_v18, %v1327_v19  ;;  %v1371_v5 = vld [vmem:[%s12024_s11 + $0x6c0] sm:$0xff] }
 0x3d0   :  { %v1148_v37 = vmax.f32 %v1140_v31, %v1144_v35  ;;  %v1147_v38 = vmax.f32 %v1139_v32, %v1143_v36  ;;  %v1150_v40 = vmax.f32 %v1142_v30, %v1146_v34  ;;  %v7537_v30 = vcombine.high %v1332_v2, %v1336_v12  ;;  %v1339_v31 = vld [vmem:[%s12024_s11 + $0x5c0] sm:$0xff]  ;;  %v1340_v34 = vld [vmem:[%s12024_s11 + $0x5c8] sm:$0xff] }
 0x3d1   :  { %v1343_v32 = vld [vmem:[%s12024_s11 + $0x5e0] sm:$0xff]  ;;  %v1344_v35 = vld [vmem:[%s12024_s11 + $0x5e8] sm:$0xff]  ;;  %v7534_v36 = vcombine.low %v1331_v46, %v1335_v48 }
 0x3d2   :  { %v9754_v44 = vpack.c.bf16 %v1148_v37, %v1148_v37  ;;  %v9756_v45 = vpack.c.bf16 %v1147_v38, %v1147_v38  ;;  %v9774_v54 = vpack.c.bf16 %v1150_v40, %v1150_v40  ;;  %v7536_v37 = vcombine.low %v1332_v2, %v1336_v12  ;;  %v1347_v40 = vld [vmem:[%s12024_s11 + $0x600] sm:$0xff] }
 0x3d3   :  { %v7543_v38 = vcombine.high %v1339_v31, %v1343_v32  ;;  %v7545_v39 = vcombine.high %v1340_v34, %v1344_v35  ;;  %v7542_v47 = vcombine.low %v1339_v31, %v1343_v32  ;;  %v1375_v6 = vld [vmem:[%s12024_s11 + $0x6e0] sm:$0xff] }
 0x3d4   :  { %2723 = vmatprep.mubr.bf16.mxu0 %v9754_v44  ;;  %2805 = vmatprep.mubr.bf16.mxu1 %v9754_v44  ;;  %v7575_v18 = vcombine.high %v1371_v5, %v1375_v6  ;;  %v1379_v21 = vld [vmem:[%s12024_s11 + $0x700] sm:$0xff] }
 0x3d5   :  { %2724 = vmatmul.mubr.bf16.vlgmr.msra.gmra.mrb[4].mxu0 %v9756_v45  ;;  %2806 = vmatmul.mubr.bf16.vlgmr.msra.gmra.mrb[16].mxu1 %v9756_v45  ;;  %v1383_v24 = vld [vmem:[%s12024_s11 + $0x720] sm:$0xff] }
 0x3d6   :  { %2733 = vmatpush1.bf16.msra.mxu0 %v7486_v27  ;;  %2815 = vmatpush1.bf16.msra.mxu1 %v7488_v28  ;;  %v7504_v27 = vcombine.low %v1300_v52, %v1304_v53  ;;  %v7511_v28 = vcombine.high %v1307_v0, %v1311_v13  ;;  %v1355_v52 = vld [vmem:[%s12024_s11 + $0x640] sm:$0xff]  ;;  %v7583_v46 = vcombine.high %v1379_v21, %v1383_v24 }
 0x3d7   :  { %2764 = vmatprep.mubr.bf16.mxu0 %v9774_v54  ;;  %2846 = vmatprep.mubr.bf16.mxu1 %v9774_v54  ;;  %v1359_v53 = vld [vmem:[%s12024_s11 + $0x660] sm:$0xff] }
 0x3d8   :  { %2734 = vmatprep.subr.bf16.mxu0 %v7495_v49  ;;  %2816 = vmatprep.subr.bf16.mxu1 %v7497_v50  ;;  %v7544_v49 = vcombine.low %v1340_v34, %v1344_v35  ;;  %v7551_v50 = vcombine.high %v1347_v40, %v1351_v41  ;;  %v7559_v0 = vcombine.high %v1355_v52, %v1359_v53  ;;  %v1387_v2 = vld [vmem:[%s12024_s11 + $0x740] sm:$0xff] }
 0x3d9   :  { %v1391_v12 = vld [vmem:[%s12024_s11 + $0x760] sm:$0xff] }
 0x3da   :  { %2735 = vmatpush1.bf16.msra.mxu0 %v7494_v55  ;;  %2817 = vmatpush1.bf16.msra.mxu1 %v7496_v56  ;;  %v1356_v55 = vld [vmem:[%s12024_s11 + $0x648] sm:$0xff]  ;;  %v7591_v31 = vcombine.high %v1387_v2, %v1391_v12  ;;  %v1395_v34 = vld [vmem:[%s12024_s11 + $0x780] sm:$0xff] }
 0x3db   :  { %2736 = vmatprep.subr.bf16.mxu0 %v7503_v57  ;;  %2818 = vmatprep.subr.bf16.mxu1 %v7505_v58  ;;  %v1360_v56 = vld [vmem:[%s12024_s11 + $0x668] sm:$0xff]  ;;  %v7550_v57 = vcombine.low %v1347_v40, %v1351_v41  ;;  %v7552_v58 = vcombine.low %v1348_v42, %v1352_v43  ;;  %v1399_v35 = vld [vmem:[%s12024_s11 + $0x7a0] sm:$0xff] }
 0x3dc   :  { %v7561_v13 = vcombine.high %v1356_v55, %v1360_v56  ;;  %v7599_v40 = vcombine.high %v1395_v34, %v1399_v35  ;;  %v1403_v42 = vld [vmem:[%s12024_s11 + $0x7c0] sm:$0xff] }
 0x3dd   :  { %v1407_v43 = vld [vmem:[%s12024_s11 + $0x7e0] sm:$0xff] }
 0x3de   :  { %2737 = vmatpush1.bf16.msra.mxu0 %v7502_v22  ;;  %2819 = vmatpush1.bf16.msra.mxu1 %v7504_v27  ;;  %v1364_v22 = vld [vmem:[%s12024_s11 + $0x688] sm:$0xff] }
 0x3df   :  { %2738 = vmatprep.subr.bf16.mxu0 %v7511_v28  ;;  %2820 = vmatprep.subr.bf16.mxu1 %v7513_v3  ;;  %v1368_v27 = vld [vmem:[%s12024_s11 + $0x6a8] sm:$0xff]  ;;  %v7558_v28 = vcombine.low %v1355_v52, %v1359_v53  ;;  %v7560_v3 = vcombine.low %v1356_v55, %v1360_v56  ;;  %v7607_v52 = vcombine.high %v1403_v42, %v1407_v43  ;;  %v1145_v55 = vmul.f32 0.2, %v9740_v33  ;;  %v1157_v56 = vld [vmem:[%s12024_s11 + $0x10] sm:$0xff] }
 0x3e0   :  { %v7569_v4 = vcombine.high %v1364_v22, %v1368_v27 }
 0x3e2   :  { %2739 = vmatpush1.bf16.msra.mxu0 %v7510_v8  ;;  %2821 = vmatpush1.bf16.msra.mxu1 %v7512_v10  ;;  %v1372_v8 = vld [vmem:[%s12024_s11 + $0x6c8] sm:$0xff] }
 0x3e3   :  { %2740 = vmatprep.subr.bf16.mxu0 %v7519_v11  ;;  %2822 = vmatprep.subr.bf16.mxu1 %v7521_v17  ;;  %v1376_v10 = vld [vmem:[%s12024_s11 + $0x6e8] sm:$0xff]  ;;  %v7566_v11 = vcombine.low %v1363_v14, %v1367_v15  ;;  %v7568_v17 = vcombine.low %v1364_v22, %v1368_v27  ;;  %v1149_v15 = vmax.f32 %v9740_v33, %v1145_v55 }
 0x3e4   :  { %v7577_v19 = vcombine.high %v1372_v8, %v1376_v10 }
 0x3e6   :  { %2741 = vmatpush1.bf16.msra.mxu0 %v7518_v25  ;;  %2823 = vmatpush1.bf16.msra.mxu1 %v7520_v26  ;;  %v1380_v25 = vld [vmem:[%s12024_s11 + $0x708] sm:$0xff] }
 0x3e7   :  { %2742 = vmatprep.subr.bf16.mxu0 %v7527_v23  ;;  %2824 = vmatprep.subr.bf16.mxu1 %v7529_v20  ;;  %v1384_v26 = vld [vmem:[%s12024_s11 + $0x728] sm:$0xff]  ;;  %v7574_v23 = vcombine.low %v1371_v5, %v1375_v6  ;;  %v7576_v20 = vcombine.low %v1372_v8, %v1376_v10  ;;  %v9966_v5 = vpack.c.bf16 %v1149_v15, %v1149_v15 }
 0x3e8   :  { %v7585_v48 = vcombine.high %v1380_v25, %v1384_v26 }
 0x3ea   :  { %2743 = vmatpush1.bf16.msra.mxu0 %v7526_v9  ;;  %2825 = vmatpush1.bf16.msra.mxu1 %v7528_v61  ;;  %v1388_v9 = vld [vmem:[%s12024_s11 + $0x748] sm:$0xff] }
 0x3eb   :  { %2744 = vmatprep.subr.bf16.mxu0 %v7535_v29  ;;  %2826 = vmatprep.subr.bf16.mxu1 %v7537_v30  ;;  %v1392_v61 = vld [vmem:[%s12024_s11 + $0x768] sm:$0xff]  ;;  %v7582_v29 = vcombine.low %v1379_v21, %v1383_v24  ;;  %v7584_v30 = vcombine.low %v1380_v25, %v1384_v26 }
 0x3ec   :  { %v7593_v32 = vcombine.high %v1388_v9, %v1392_v61 }
 0x3ee   :  { %2745 = vmatpush1.bf16.msra.mxu0 %v7534_v36  ;;  %2827 = vmatpush1.bf16.msra.mxu1 %v7536_v37  ;;  %v1396_v36 = vld [vmem:[%s12024_s11 + $0x788] sm:$0xff] }
 0x3ef   :  { %2746 = vmatprep.subr.bf16.mxu0 %v7543_v38  ;;  %2828 = vmatprep.subr.bf16.mxu1 %v7545_v39  ;;  %v1400_v37 = vld [vmem:[%s12024_s11 + $0x7a8] sm:$0xff]  ;;  %v7590_v38 = vcombine.low %v1387_v2, %v1391_v12  ;;  %v7592_v39 = vcombine.low %v1388_v9, %v1392_v61  ;;  %v1189_v61 = vld [vmem:[%s12024_s11 + $0x110] sm:$0xff] }
 0x3f0   :  { %v7601_v41 = vcombine.high %v1396_v36, %v1400_v37 }
 0x3f2   :  { %2747 = vmatpush1.bf16.msra.mxu0 %v7542_v47  ;;  %2829 = vmatpush1.bf16.msra.mxu1 %v7544_v49  ;;  %v1404_v47 = vld [vmem:[%s12024_s11 + $0x7c8] sm:$0xff] }
 0x3f3   :  { %2748 = vmatprep.subr.bf16.mxu0 %v7551_v50  ;;  %2830 = vmatprep.subr.bf16.mxu1 %v7553_v51  ;;  %v1408_v49 = vld [vmem:[%s12024_s11 + $0x7e8] sm:$0xff]  ;;  %v7598_v50 = vcombine.low %v1395_v34, %v1399_v35  ;;  %v7600_v51 = vcombine.low %v1396_v36, %v1400_v37  ;;  %v1197_v37 = vld [vmem:[%s12024_s11 + $0x150] sm:$0xff] }
 0x3f4   :  { %v7609_v53 = vcombine.high %v1404_v47, %v1408_v49  ;;  %v7608_v14 = vcombine.low %v1404_v47, %v1408_v49  ;;  %v1205_v49 = vld [vmem:[%s12024_s11 + $0x190] sm:$0xff] }
 0x3f6   :  { %2749 = vmatpush1.bf16.msra.mxu0 %v7550_v57  ;;  %2831 = vmatpush1.bf16.msra.mxu1 %v7552_v58  ;;  %v1161_v57 = vld [vmem:[%s12024_s11 + $0x30] sm:$0xff]  ;;  %v1158_v58 = vld [vmem:[%s12024_s11 + $0x18] sm:$0xff] }
 0x3f7   :  { %2750 = vmatprep.subr.bf16.mxu0 %v7559_v0  ;;  %2832 = vmatprep.subr.bf16.mxu1 %v7561_v13  ;;  %v1162_v0 = vld [vmem:[%s12024_s11 + $0x38] sm:$0xff]  ;;  %v7606_v13 = vcombine.low %v1403_v42, %v1407_v43  ;;  %v7363_v22 = vcombine.high %v1157_v56, %v1161_v57  ;;  %v7362_v33 = vcombine.low %v1157_v56, %v1161_v57 }
 0x3f8   :  { %v7365_v27 = vcombine.high %v1158_v58, %v1162_v0  ;;  %v7364_v6 = vcombine.low %v1158_v58, %v1162_v0  ;;  %v1213_v58 = vld [vmem:[%s12024_s11 + $0x1d0] sm:$0xff] }
 0x3f9   :  { %v1217_v0 = vld [vmem:[%s12024_s11 + $0x1f0] sm:$0xff] }
 0x3fa   :  { %2751 = vmatpush1.bf16.msra.mxu0 %v7558_v28  ;;  %2833 = vmatpush1.bf16.msra.mxu1 %v7560_v3  ;;  %v1165_v28 = vld [vmem:[%s12024_s11 + $0x50] sm:$0xff] }
 0x3fb   :  { %2752 = vmatprep.subr.bf16.mxu0 %v7567_v60  ;;  %2834 = vmatprep.subr.bf16.mxu1 %v7569_v4  ;;  %v1169_v3 = vld [vmem:[%s12024_s11 + $0x70] sm:$0xff]  ;;  %v1166_v60 = vld [vmem:[%s12024_s11 + $0x58] sm:$0xff] }
 0x3fc   :  { %v1170_v4 = vld [vmem:[%s12024_s11 + $0x78] sm:$0xff]  ;;  %v7371_v8 = vcombine.high %v1165_v28, %v1169_v3  ;;  %v7370_v21 = vcombine.low %v1165_v28, %v1169_v3  ;;  %v1221_v3 = vld [vmem:[%s12024_s11 + $0x210] sm:$0xff] }
 0x3fd   :  { %v7373_v10 = vcombine.high %v1166_v60, %v1170_v4  ;;  %v7372_v24 = vcombine.low %v1166_v60, %v1170_v4  ;;  %v1225_v60 = vld [vmem:[%s12024_s11 + $0x230] sm:$0xff]  ;;  %v1222_v4 = vld [vmem:[%s12024_s11 + $0x218] sm:$0xff] }
 0x3fe   :  { %2753 = vmatpush1.bf16.msra.mxu0 %v7566_v11  ;;  %2835 = vmatpush1.bf16.msra.mxu1 %v7568_v17  ;;  %v1173_v11 = vld [vmem:[%s12024_s11 + $0x90] sm:$0xff] }
 0x3ff   :  { %2754 = vmatprep.subr.bf16.mxu0 %v7575_v18  ;;  %2836 = vmatprep.subr.bf16.mxu1 %v7577_v19  ;;  %v1177_v17 = vld [vmem:[%s12024_s11 + $0xb0] sm:$0xff]  ;;  %v1174_v18 = vld [vmem:[%s12024_s11 + $0x98] sm:$0xff] }
 0x400   :  { %v1178_v19 = vld [vmem:[%s12024_s11 + $0xb8] sm:$0xff]  ;;  %v7379_v25 = vcombine.high %v1173_v11, %v1177_v17 }
 0x401   :  { %v7381_v26 = vcombine.high %v1174_v18, %v1178_v19  ;;  %v7380_v2 = vcombine.low %v1174_v18, %v1178_v19  ;;  %v1233_v18 = vld [vmem:[%s12024_s11 + $0x270] sm:$0xff]  ;;  %v1230_v19 = vld [vmem:[%s12024_s11 + $0x258] sm:$0xff] }
 0x402   :  { %2755 = vmatpush1.bf16.msra.mxu0 %v7574_v23  ;;  %2837 = vmatpush1.bf16.msra.mxu1 %v7576_v20  ;;  %v1181_v23 = vld [vmem:[%s12024_s11 + $0xd0] sm:$0xff] }
 0x403   :  { %2756 = vmatprep.subr.bf16.mxu0 %v7583_v46  ;;  %2838 = vmatprep.subr.bf16.mxu1 %v7585_v48  ;;  %v1185_v20 = vld [vmem:[%s12024_s11 + $0xf0] sm:$0xff]  ;;  %v1182_v46 = vld [vmem:[%s12024_s11 + $0xd8] sm:$0xff]  ;;  %v7378_v48 = vcombine.low %v1173_v11, %v1177_v17 }
 0x404   :  { %v7387_v12 = vcombine.high %v1181_v23, %v1185_v20  ;;  %v1229_v17 = vld [vmem:[%s12024_s11 + $0x250] sm:$0xff] }
 0x406   :  { %2757 = vmatpush1.bf16.msra.mxu0 %v7582_v29  ;;  %2839 = vmatpush1.bf16.msra.mxu1 %v7584_v30  ;;  %v1193_v29 = vld [vmem:[%s12024_s11 + $0x130] sm:$0xff]  ;;  %v1190_v30 = vld [vmem:[%s12024_s11 + $0x118] sm:$0xff] }
 0x407   :  { %2758 = vmatprep.subr.bf16.mxu0 %v7591_v31  ;;  %2840 = vmatprep.subr.bf16.mxu1 %v7593_v32  ;;  %v1194_v31 = vld [vmem:[%s12024_s11 + $0x138] sm:$0xff]  ;;  %v7386_v32 = vcombine.low %v1181_v23, %v1185_v20  ;;  %v7395_v35 = vcombine.high %v1189_v61, %v1193_v29  ;;  %v1237_v20 = vld [vmem:[%s12024_s11 + $0x290] sm:$0xff] }
 0x408   :  { %v7397_v36 = vcombine.high %v1190_v30, %v1194_v31  ;;  %v7396_v42 = vcombine.low %v1190_v30, %v1194_v31  ;;  %v1249_v30 = vld [vmem:[%s12024_s11 + $0x2f0] sm:$0xff]  ;;  %v1246_v31 = vld [vmem:[%s12024_s11 + $0x2d8] sm:$0xff] }
 0x40a   :  { %2759 = vmatpush1.bf16.msra.mxu0 %v7590_v38  ;;  %2841 = vmatpush1.bf16.msra.mxu1 %v7592_v39  ;;  %v1201_v38 = vld [vmem:[%s12024_s11 + $0x170] sm:$0xff]  ;;  %v1198_v39 = vld [vmem:[%s12024_s11 + $0x158] sm:$0xff] }
 0x40b   :  { %2760 = vmatprep.subr.bf16.mxu0 %v7599_v40  ;;  %2842 = vmatprep.subr.bf16.mxu1 %v7601_v41  ;;  %v1202_v40 = vld [vmem:[%s12024_s11 + $0x178] sm:$0xff]  ;;  %v7394_v41 = vcombine.low %v1189_v61, %v1193_v29  ;;  %v7403_v43 = vcombine.high %v1197_v37, %v1201_v38  ;;  %v1245_v29 = vld [vmem:[%s12024_s11 + $0x2d0] sm:$0xff] }
 0x40c   :  { %v7405_v47 = vcombine.high %v1198_v39, %v1202_v40  ;;  %v7404_v55 = vcombine.low %v1198_v39, %v1202_v40  ;;  %v1257_v39 = vld [vmem:[%s12024_s11 + $0x330] sm:$0xff]  ;;  %v1254_v40 = vld [vmem:[%s12024_s11 + $0x318] sm:$0xff] }
 0x40e   :  { %2761 = vmatpush1.bf16.msra.mxu0 %v7598_v50  ;;  %2843 = vmatpush1.bf16.msra.mxu1 %v7600_v51  ;;  %v1209_v50 = vld [vmem:[%s12024_s11 + $0x1b0] sm:$0xff]  ;;  %v1206_v51 = vld [vmem:[%s12024_s11 + $0x198] sm:$0xff] }
 0x40f   :  { %2762 = vmatprep.subr.bf16.mxu0 %v7607_v52  ;;  %2844 = vmatprep.subr.bf16.mxu1 %v7609_v53  ;;  %v1210_v52 = vld [vmem:[%s12024_s11 + $0x1b8] sm:$0xff]  ;;  %v7402_v53 = vcombine.low %v1197_v37, %v1201_v38  ;;  %v7411_v56 = vcombine.high %v1205_v49, %v1209_v50  ;;  %v7410_v15 = vcombine.low %v1205_v49, %v1209_v50  ;;  %v1253_v38 = vld [vmem:[%s12024_s11 + $0x310] sm:$0xff] }
 0x410   :  { %v7413_v57 = vcombine.high %v1206_v51, %v1210_v52  ;;  %v1261_v50 = vld [vmem:[%s12024_s11 + $0x350] sm:$0xff] }
 0x412   :  { %2763 = vmatpush1.bf16.msra.mxu0 %v7606_v13  ;;  %2845 = vmatpush1.bf16.msra.mxu1 %v7608_v14  ;;  %v1214_v13 = vld [vmem:[%s12024_s11 + $0x1d8] sm:$0xff] }
 0x413   :  { %2855 = vmatprep.subr.bf16.mxu0 %v7363_v22  ;;  %2937 = vmatprep.subr.bf16.mxu1 %v7365_v27  ;;  %v1218_v14 = vld [vmem:[%s12024_s11 + $0x1f8] sm:$0xff]  ;;  %v7412_v22 = vcombine.low %v1206_v51, %v1210_v52  ;;  %v7419_v27 = vcombine.high %v1213_v58, %v1217_v0  ;;  %v1265_v51 = vld [vmem:[%s12024_s11 + $0x370] sm:$0xff] }
 0x414   :  { %v7421_v28 = vcombine.high %v1214_v13, %v1218_v14  ;;  %v1262_v52 = vld [vmem:[%s12024_s11 + $0x358] sm:$0xff] }
 0x415   :  { %2765 = vmatmul.mubr.bf16.vlgmr.msra.gmra.mrb[4].mxu0 %v9966_v5  ;;  %2847 = vmatmul.mubr.bf16.vlgmr.msra.gmra.mrb[16].mxu1 %v9966_v5 }
 0x416   :  { %2856 = vmatpush1.bf16.msra.mxu0 %v7362_v33  ;;  %2887 = vmatprep.mubr.bf16.mxu0 %v9754_v44  ;;  %v1226_v33 = vld [vmem:[%s12024_s11 + $0x238] sm:$0xff] }
 0x417   :  { %2938 = vmatpush1.bf16.msra.mxu1 %v7364_v6  ;;  %2969 = vmatprep.mubr.bf16.mxu1 %v9754_v44  ;;  %v1186_v44 = vld [vmem:[%s12024_s11 + $0xf8] sm:$0xff]  ;;  %v7418_v6 = vcombine.low %v1213_v58, %v1217_v0  ;;  %v7429_v11 = vcombine.high %v1222_v4, %v1226_v33  ;;  %v1269_v0 = vld [vmem:[%s12024_s11 + $0x390] sm:$0xff] }
 0x418   :  { %2857 = vmatprep.subr.bf16.mxu0 %v7371_v8  ;;  %2939 = vmatprep.subr.bf16.mxu1 %v7373_v10  ;;  %v7389_v9 = vcombine.high %v1182_v46, %v1186_v44  ;;  %v7388_v34 = vcombine.low %v1182_v46, %v1186_v44  ;;  %v7420_v8 = vcombine.low %v1214_v13, %v1218_v14  ;;  %v1241_v46 = vld [vmem:[%s12024_s11 + $0x2b0] sm:$0xff]  ;;  %v1238_v44 = vld [vmem:[%s12024_s11 + $0x298] sm:$0xff] }
 0x419   :  { %v7427_v10 = vcombine.high %v1221_v3, %v1225_v60  ;;  %v1273_v13 = vld [vmem:[%s12024_s11 + $0x3b0] sm:$0xff]  ;;  %v1270_v14 = vld [vmem:[%s12024_s11 + $0x398] sm:$0xff] }
 0x41a   :  { %2858 = vmatpush1.bf16.msra.mxu0 %v7370_v21  ;;  %v1234_v21 = vld [vmem:[%s12024_s11 + $0x278] sm:$0xff] }
 0x41b   :  { %2940 = vmatpush1.bf16.msra.mxu1 %v7372_v24  ;;  %2859 = vmatprep.subr.bf16.mxu0 %v7379_v25  ;;  %v7426_v24 = vcombine.low %v1221_v3, %v1225_v60  ;;  %v7428_v25 = vcombine.low %v1222_v4, %v1226_v33  ;;  %v7437_v23 = vcombine.high %v1230_v19, %v1234_v21  ;;  %v1277_v60 = vld [vmem:[%s12024_s11 + $0x3d0] sm:$0xff]  ;;  %v1278_v33 = vld [vmem:[%s12024_s11 + $0x3d8] sm:$0xff] }
 0x41c   :  { %2941 = vmatprep.subr.bf16.mxu1 %v7381_v26  ;;  %v7435_v26 = vcombine.high %v1229_v17, %v1233_v18  ;;  %v1281_v4 = vld [vmem:[%s12024_s11 + $0x3f0] sm:$0xff] }
 0x41e   :  { %2860 = vmatpush1.bf16.msra.mxu0 %v7378_v48  ;;  %v1242_v48 = vld [vmem:[%s12024_s11 + $0x2b8] sm:$0xff] }
 0x41f   :  { %2942 = vmatpush1.bf16.msra.mxu1 %v7380_v2  ;;  %2861 = vmatprep.subr.bf16.mxu0 %v7387_v12  ;;  %v7434_v2 = vcombine.low %v1229_v17, %v1233_v18  ;;  %v7436_v12 = vcombine.low %v1230_v19, %v1234_v21  ;;  %v7445_v61 = vcombine.high %v1238_v44, %v1242_v48  ;;  %v1285_v18 = vld [vmem:[%s12024_s11 + $0x410] sm:$0xff]  ;;  %v1286_v21 = vld [vmem:[%s12024_s11 + $0x418] sm:$0xff] }
 0x420   :  { %2943 = vmatprep.subr.bf16.mxu1 %v7389_v9  ;;  %v7443_v9 = vcombine.high %v1237_v20, %v1241_v46  ;;  %v1289_v19 = vld [vmem:[%s12024_s11 + $0x430] sm:$0xff] }
 0x422   :  { %2862 = vmatpush1.bf16.msra.mxu0 %v7386_v32  ;;  %v1250_v32 = vld [vmem:[%s12024_s11 + $0x2f8] sm:$0xff] }
 0x423   :  { %2944 = vmatpush1.bf16.msra.mxu1 %v7388_v34  ;;  %2863 = vmatprep.subr.bf16.mxu0 %v7395_v35  ;;  %v7442_v34 = vcombine.low %v1237_v20, %v1241_v46  ;;  %v7444_v35 = vcombine.low %v1238_v44, %v1242_v48  ;;  %v7453_v37 = vcombine.high %v1246_v31, %v1250_v32  ;;  %v1293_v46 = vld [vmem:[%s12024_s11 + $0x450] sm:$0xff] }
 0x424   :  { %2945 = vmatprep.subr.bf16.mxu1 %v7397_v36  ;;  %v7451_v36 = vcombine.high %v1245_v29, %v1249_v30  ;;  %v1297_v44 = vld [vmem:[%s12024_s11 + $0x470] sm:$0xff]  ;;  %v7490_v48 = vcombine.low %v1285_v18, %v1289_v19 }
 0x426   :  { %2864 = vmatpush1.bf16.msra.mxu0 %v7394_v41  ;;  %v1258_v41 = vld [vmem:[%s12024_s11 + $0x338] sm:$0xff] }
 0x427   :  { %2946 = vmatpush1.bf16.msra.mxu1 %v7396_v42  ;;  %2865 = vmatprep.subr.bf16.mxu0 %v7403_v43  ;;  %v7450_v42 = vcombine.low %v1245_v29, %v1249_v30  ;;  %v7452_v43 = vcombine.low %v1246_v31, %v1250_v32  ;;  %v7461_v49 = vcombine.high %v1254_v40, %v1258_v41  ;;  %v1301_v29 = vld [vmem:[%s12024_s11 + $0x490] sm:$0xff]  ;;  %v1302_v32 = vld [vmem:[%s12024_s11 + $0x498] sm:$0xff] }
 0x428   :  { %2947 = vmatprep.subr.bf16.mxu1 %v7405_v47  ;;  %v7459_v47 = vcombine.high %v1253_v38, %v1257_v39  ;;  %v1305_v30 = vld [vmem:[%s12024_s11 + $0x4b0] sm:$0xff] }
 0x42a   :  { %2866 = vmatpush1.bf16.msra.mxu0 %v7402_v53  ;;  %v1266_v53 = vld [vmem:[%s12024_s11 + $0x378] sm:$0xff] }
 0x42b   :  { %2948 = vmatpush1.bf16.msra.mxu1 %v7404_v55  ;;  %2867 = vmatprep.subr.bf16.mxu0 %v7411_v56  ;;  %v7458_v55 = vcombine.low %v1253_v38, %v1257_v39  ;;  %v7460_v56 = vcombine.low %v1254_v40, %v1258_v41  ;;  %v7469_v58 = vcombine.high %v1262_v52, %v1266_v53  ;;  %v1309_v39 = vld [vmem:[%s12024_s11 + $0x4d0] sm:$0xff]  ;;  %v1314_v41 = vld [vmem:[%s12024_s11 + $0x4f8] sm:$0xff] }
 0x42c   :  { %2949 = vmatprep.subr.bf16.mxu1 %v7413_v57  ;;  %v7467_v57 = vcombine.high %v1261_v50, %v1265_v51  ;;  %v1313_v40 = vld [vmem:[%s12024_s11 + $0x4f0] sm:$0xff] }
 0x42e   :  { %2868 = vmatpush1.bf16.msra.mxu0 %v7410_v15  ;;  %v1274_v15 = vld [vmem:[%s12024_s11 + $0x3b8] sm:$0xff] }
 0x42f   :  { %2950 = vmatpush1.bf16.msra.mxu1 %v7412_v22  ;;  %2869 = vmatprep.subr.bf16.mxu0 %v7419_v27  ;;  %v7466_v22 = vcombine.low %v1261_v50, %v1265_v51  ;;  %v7468_v27 = vcombine.low %v1262_v52, %v1266_v53  ;;  %v7477_v3 = vcombine.high %v1270_v14, %v1274_v15  ;;  %v1321_v50 = vld [vmem:[%s12024_s11 + $0x530] sm:$0xff]  ;;  %v1318_v51 = vld [vmem:[%s12024_s11 + $0x518] sm:$0xff] }
 0x430   :  { %2951 = vmatprep.subr.bf16.mxu1 %v7421_v28  ;;  %v7475_v28 = vcombine.high %v1269_v0, %v1273_v13  ;;  %v1322_v52 = vld [vmem:[%s12024_s11 + $0x538] sm:$0xff]  ;;  %v7514_v53 = vcombine.low %v1309_v39, %v1313_v40 }
 0x432   :  { %2870 = vmatpush1.bf16.msra.mxu0 %v7418_v6  ;;  %v1282_v6 = vld [vmem:[%s12024_s11 + $0x3f8] sm:$0xff] }
 0x433   :  { %2952 = vmatpush1.bf16.msra.mxu1 %v7420_v8  ;;  %2871 = vmatprep.subr.bf16.mxu0 %v7427_v10  ;;  %v7474_v8 = vcombine.low %v1269_v0, %v1273_v13  ;;  %v7476_v10 = vcombine.low %v1270_v14, %v1274_v15  ;;  %v7485_v17 = vcombine.high %v1278_v33, %v1282_v6  ;;  %v1329_v0 = vld [vmem:[%s12024_s11 + $0x570] sm:$0xff]  ;;  %v1326_v13 = vld [vmem:[%s12024_s11 + $0x558] sm:$0xff] }
 0x434   :  { %2953 = vmatprep.subr.bf16.mxu1 %v7429_v11  ;;  %v7483_v11 = vcombine.high %v1277_v60, %v1281_v4  ;;  %v1330_v14 = vld [vmem:[%s12024_s11 + $0x578] sm:$0xff] }
 0x436   :  { %2872 = vmatpush1.bf16.msra.mxu0 %v7426_v24  ;;  %v1290_v24 = vld [vmem:[%s12024_s11 + $0x438] sm:$0xff] }
 0x437   :  { %2954 = vmatpush1.bf16.msra.mxu1 %v7428_v25  ;;  %2873 = vmatprep.subr.bf16.mxu0 %v7435_v26  ;;  %v7482_v25 = vcombine.low %v1277_v60, %v1281_v4  ;;  %v7484_v26 = vcombine.low %v1278_v33, %v1282_v6  ;;  %v7493_v20 = vcombine.high %v1286_v21, %v1290_v24  ;;  %v1337_v60 = vld [vmem:[%s12024_s11 + $0x5b0] sm:$0xff]  ;;  %v1334_v4 = vld [vmem:[%s12024_s11 + $0x598] sm:$0xff] }
 0x438   :  { %2955 = vmatprep.subr.bf16.mxu1 %v7437_v23  ;;  %v7491_v23 = vcombine.high %v1285_v18, %v1289_v19  ;;  %v1338_v33 = vld [vmem:[%s12024_s11 + $0x5b8] sm:$0xff]  ;;  %v1345_v18 = vld [vmem:[%s12024_s11 + $0x5f0] sm:$0xff] }
 0x439   :  { %v1342_v19 = vld [vmem:[%s12024_s11 + $0x5d8] sm:$0xff] }
 0x43a   :  { %2874 = vmatpush1.bf16.msra.mxu0 %v7434_v2  ;;  %v1294_v2 = vld [vmem:[%s12024_s11 + $0x458] sm:$0xff] }
 0x43b   :  { %2956 = vmatpush1.bf16.msra.mxu1 %v7436_v12  ;;  %2875 = vmatprep.subr.bf16.mxu0 %v7443_v9  ;;  %v1298_v12 = vld [vmem:[%s12024_s11 + $0x478] sm:$0xff]  ;;  %v7492_v9 = vcombine.low %v1286_v21, %v1290_v24 }
 0x43c   :  { %2957 = vmatprep.subr.bf16.mxu1 %v7445_v61  ;;  %v7499_v61 = vcombine.high %v1293_v46, %v1297_v44  ;;  %v7501_v31 = vcombine.high %v1294_v2, %v1298_v12  ;;  %v1346_v21 = vld [vmem:[%s12024_s11 + $0x5f8] sm:$0xff] }
 0x43e   :  { %2876 = vmatpush1.bf16.msra.mxu0 %v7442_v34  ;;  %v1306_v34 = vld [vmem:[%s12024_s11 + $0x4b8] sm:$0xff] }
 0x43f   :  { %2958 = vmatpush1.bf16.msra.mxu1 %v7444_v35  ;;  %2877 = vmatprep.subr.bf16.mxu0 %v7451_v36  ;;  %v7498_v35 = vcombine.low %v1293_v46, %v1297_v44  ;;  %v7500_v36 = vcombine.low %v1294_v2, %v1298_v12  ;;  %v7509_v38 = vcombine.high %v1302_v32, %v1306_v34  ;;  %v1353_v46 = vld [vmem:[%s12024_s11 + $0x630] sm:$0xff]  ;;  %v1350_v44 = vld [vmem:[%s12024_s11 + $0x618] sm:$0xff] }
 0x440   :  { %2959 = vmatprep.subr.bf16.mxu1 %v7453_v37  ;;  %v7507_v37 = vcombine.high %v1301_v29, %v1305_v30  ;;  %v7548_v12 = vcombine.low %v1342_v19, %v1346_v21 }
 0x442   :  { %2878 = vmatpush1.bf16.msra.mxu0 %v7450_v42  ;;  %v7508_v42 = vcombine.low %v1302_v32, %v1306_v34  ;;  %v1362_v32 = vld [vmem:[%s12024_s11 + $0x678] sm:$0xff] }
 0x443   :  { %2960 = vmatpush1.bf16.msra.mxu1 %v7452_v43  ;;  %2879 = vmatprep.subr.bf16.mxu0 %v7459_v47  ;;  %v7515_v43 = vcombine.high %v1309_v39, %v1313_v40  ;;  %v1369_v39 = vld [vmem:[%s12024_s11 + $0x6b0] sm:$0xff]  ;;  %v1366_v40 = vld [vmem:[%s12024_s11 + $0x698] sm:$0xff] }
 0x444   :  { %2961 = vmatprep.subr.bf16.mxu1 %v7461_v49  ;;  %v1317_v49 = vld [vmem:[%s12024_s11 + $0x510] sm:$0xff] }
 0x445   :  { %v7522_v15 = vcombine.low %v1317_v49, %v1321_v50 }
 0x446   :  { %2880 = vmatpush1.bf16.msra.mxu0 %v7458_v55 }
 0x447   :  { %2962 = vmatpush1.bf16.msra.mxu1 %v7460_v56  ;;  %2881 = vmatprep.subr.bf16.mxu0 %v7467_v57  ;;  %v7523_v56 = vcombine.high %v1317_v49, %v1321_v50  ;;  %v7525_v57 = vcombine.high %v1318_v51, %v1322_v52  ;;  %v1377_v49 = vld [vmem:[%s12024_s11 + $0x6f0] sm:$0xff]  ;;  %v1374_v50 = vld [vmem:[%s12024_s11 + $0x6d8] sm:$0xff] }
 0x448   :  { %2963 = vmatprep.subr.bf16.mxu1 %v7469_v58  ;;  %v1325_v58 = vld [vmem:[%s12024_s11 + $0x550] sm:$0xff] }
 0x449   :  { %v7530_v6 = vcombine.low %v1325_v58, %v1329_v0 }
 0x44a   :  { %2882 = vmatpush1.bf16.msra.mxu0 %v7466_v22  ;;  %v7524_v22 = vcombine.low %v1318_v51, %v1322_v52  ;;  %v1378_v51 = vld [vmem:[%s12024_s11 + $0x6f8] sm:$0xff] }
 0x44b   :  { %2964 = vmatpush1.bf16.msra.mxu1 %v7468_v27  ;;  %2883 = vmatprep.subr.bf16.mxu0 %v7475_v28  ;;  %v7531_v27 = vcombine.high %v1325_v58, %v1329_v0  ;;  %v7533_v28 = vcombine.high %v1326_v13, %v1330_v14  ;;  %v1385_v58 = vld [vmem:[%s12024_s11 + $0x730] sm:$0xff]  ;;  %v1382_v0 = vld [vmem:[%s12024_s11 + $0x718] sm:$0xff] }
 0x44c   :  { %2965 = vmatprep.subr.bf16.mxu1 %v7477_v3  ;;  %v1333_v3 = vld [vmem:[%s12024_s11 + $0x590] sm:$0xff] }
 0x44d   :  { %v7538_v24 = vcombine.low %v1333_v3, %v1337_v60 }
 0x44e   :  { %2884 = vmatpush1.bf16.msra.mxu0 %v7474_v8  ;;  %v7532_v8 = vcombine.low %v1326_v13, %v1330_v14  ;;  %v1386_v13 = vld [vmem:[%s12024_s11 + $0x738] sm:$0xff] }
 0x44f   :  { %2966 = vmatpush1.bf16.msra.mxu1 %v7476_v10  ;;  %2885 = vmatprep.subr.bf16.mxu0 %v7483_v11  ;;  %v7539_v10 = vcombine.high %v1333_v3, %v1337_v60  ;;  %v7541_v11 = vcombine.high %v1334_v4, %v1338_v33  ;;  %v1393_v3 = vld [vmem:[%s12024_s11 + $0x770] sm:$0xff]  ;;  %v1390_v60 = vld [vmem:[%s12024_s11 + $0x758] sm:$0xff] }
 0x450   :  { %2967 = vmatprep.subr.bf16.mxu1 %v7485_v17  ;;  %v1341_v17 = vld [vmem:[%s12024_s11 + $0x5d0] sm:$0xff] }
 0x451   :  { %v7546_v2 = vcombine.low %v1341_v17, %v1345_v18 }
 0x452   :  { %2886 = vmatpush1.bf16.msra.mxu0 %v7482_v25  ;;  %v7540_v25 = vcombine.low %v1334_v4, %v1338_v33  ;;  %v1394_v4 = vld [vmem:[%s12024_s11 + $0x778] sm:$0xff] }
 0x453   :  { %2968 = vmatpush1.bf16.msra.mxu1 %v7484_v26  ;;  %2896 = vmatprep.subr.bf16.mxu0 %v7491_v23  ;;  %v7547_v26 = vcombine.high %v1341_v17, %v1345_v18  ;;  %v7549_v23 = vcombine.high %v1342_v19, %v1346_v21  ;;  %v1401_v17 = vld [vmem:[%s12024_s11 + $0x7b0] sm:$0xff]  ;;  %v1398_v18 = vld [vmem:[%s12024_s11 + $0x798] sm:$0xff] }
 0x454   :  { %2978 = vmatprep.subr.bf16.mxu1 %v7493_v20  ;;  %v1349_v20 = vld [vmem:[%s12024_s11 + $0x610] sm:$0xff]  ;;  %v1402_v19 = vld [vmem:[%s12024_s11 + $0x7b8] sm:$0xff] }
 0x455   :  { %2888 = vmatmul.mubr.bf16.vlgmr.msra.gmra.mrb[8].mxu0 %v9756_v45  ;;  %v7554_v34 = vcombine.low %v1349_v20, %v1353_v46 }
 0x456   :  { %2970 = vmatmul.mubr.bf16.vlgmr.msra.gmra.mrb[20].mxu1 %v9756_v45  ;;  %2897 = vmatpush1.bf16.msra.mxu0 %v7490_v48  ;;  %v1310_v45 = vld [vmem:[%s12024_s11 + $0x4d8] sm:$0xff] }
 0x457   :  { %2928 = vmatprep.mubr.bf16.mxu0 %v9774_v54  ;;  %2979 = vmatpush1.bf16.msra.mxu1 %v7492_v9  ;;  %v7517_v47 = vcombine.high %v1310_v45, %v1314_v41  ;;  %v7516_v55 = vcombine.low %v1310_v45, %v1314_v41  ;;  %v1354_v48 = vld [vmem:[%s12024_s11 + $0x638] sm:$0xff]  ;;  %v7555_v9 = vcombine.high %v1349_v20, %v1353_v46  ;;  %v1409_v20 = vld [vmem:[%s12024_s11 + $0x7f0] sm:$0xff] }
 0x458   :  { %3010 = vmatprep.mubr.bf16.mxu1 %v9774_v54  ;;  %2898 = vmatprep.subr.bf16.mxu0 %v7499_v61  ;;  %v7506_v54 = vcombine.low %v1301_v29, %v1305_v30  ;;  %v7557_v61 = vcombine.high %v1350_v44, %v1354_v48  ;;  %v1357_v29 = vld [vmem:[%s12024_s11 + $0x650] sm:$0xff]  ;;  %v1370_v45 = vld [vmem:[%s12024_s11 + $0x6b8] sm:$0xff] }
 0x459   :  { %2980 = vmatprep.subr.bf16.mxu1 %v7501_v31  ;;  %v1361_v30 = vld [vmem:[%s12024_s11 + $0x670] sm:$0xff]  ;;  %v1358_v31 = vld [vmem:[%s12024_s11 + $0x658] sm:$0xff] }
 0x45a   :  { %2899 = vmatpush1.bf16.msra.mxu0 %v7498_v35  ;;  %v7556_v35 = vcombine.low %v1350_v44, %v1354_v48  ;;  %v7562_v41 = vcombine.low %v1357_v29, %v1361_v30  ;;  %v1406_v46 = vld [vmem:[%s12024_s11 + $0x7d8] sm:$0xff] }
 0x45b   :  { %2981 = vmatpush1.bf16.msra.mxu1 %v7500_v36  ;;  %2900 = vmatprep.subr.bf16.mxu0 %v7507_v37  ;;  %v7563_v36 = vcombine.high %v1357_v29, %v1361_v30  ;;  %v7565_v37 = vcombine.high %v1358_v31, %v1362_v32  ;;  %v1410_v44 = vld [vmem:[%s12024_s11 + $0x7f8] sm:$0xff] }
 0x45c   :  { %2982 = vmatprep.subr.bf16.mxu1 %v7509_v38  ;;  %v1365_v38 = vld [vmem:[%s12024_s11 + $0x690] sm:$0xff]  ;;  %v7612_v29 = vcombine.low %v1406_v46, %v1410_v44 }
 0x45d   :  { %v7570_v52 = vcombine.low %v1365_v38, %v1369_v39 }
 0x45e   :  { %2901 = vmatpush1.bf16.msra.mxu0 %v7506_v54  ;;  %v7564_v54 = vcombine.low %v1358_v31, %v1362_v32 }
 0x45f   :  { %2983 = vmatpush1.bf16.msra.mxu1 %v7508_v42  ;;  %2902 = vmatprep.subr.bf16.mxu0 %v7515_v43  ;;  %v7571_v42 = vcombine.high %v1365_v38, %v1369_v39  ;;  %v7573_v43 = vcombine.high %v1366_v40, %v1370_v45 }
 0x460   :  { %2984 = vmatprep.subr.bf16.mxu1 %v7517_v47  ;;  %v1373_v47 = vld [vmem:[%s12024_s11 + $0x6d0] sm:$0xff] }
 0x461   :  { %v7578_v14 = vcombine.low %v1373_v47, %v1377_v49 }
 0x462   :  { %2903 = vmatpush1.bf16.msra.mxu0 %v7514_v53  ;;  %v7572_v53 = vcombine.low %v1366_v40, %v1370_v45 }
 0x463   :  { %2985 = vmatpush1.bf16.msra.mxu1 %v7516_v55  ;;  %2904 = vmatprep.subr.bf16.mxu0 %v7523_v56  ;;  %v7579_v55 = vcombine.high %v1373_v47, %v1377_v49  ;;  %v7581_v56 = vcombine.high %v1374_v50, %v1378_v51 }
 0x464   :  { %2986 = vmatprep.subr.bf16.mxu1 %v7525_v57  ;;  %v1381_v57 = vld [vmem:[%s12024_s11 + $0x710] sm:$0xff] }
 0x465   :  { %v7586_v33 = vcombine.low %v1381_v57, %v1385_v58 }
 0x466   :  { %2905 = vmatpush1.bf16.msra.mxu0 %v7522_v15  ;;  %v7580_v15 = vcombine.low %v1374_v50, %v1378_v51 }
 0x467   :  { %2987 = vmatpush1.bf16.msra.mxu1 %v7524_v22  ;;  %2906 = vmatprep.subr.bf16.mxu0 %v7531_v27  ;;  %v7587_v22 = vcombine.high %v1381_v57, %v1385_v58  ;;  %v7589_v27 = vcombine.high %v1382_v0, %v1386_v13 }
 0x468   :  { %2988 = vmatprep.subr.bf16.mxu1 %v7533_v28  ;;  %v1389_v28 = vld [vmem:[%s12024_s11 + $0x750] sm:$0xff] }
 0x469   :  { %v7594_v21 = vcombine.low %v1389_v28, %v1393_v3 }
 0x46a   :  { %2907 = vmatpush1.bf16.msra.mxu0 %v7530_v6  ;;  %v7588_v6 = vcombine.low %v1382_v0, %v1386_v13 }
 0x46b   :  { %2989 = vmatpush1.bf16.msra.mxu1 %v7532_v8  ;;  %2908 = vmatprep.subr.bf16.mxu0 %v7539_v10  ;;  %v7595_v8 = vcombine.high %v1389_v28, %v1393_v3  ;;  %v7597_v10 = vcombine.high %v1390_v60, %v1394_v4 }
 0x46c   :  { %2990 = vmatprep.subr.bf16.mxu1 %v7541_v11  ;;  %v1397_v11 = vld [vmem:[%s12024_s11 + $0x790] sm:$0xff] }
 0x46d   :  { %v7602_v48 = vcombine.low %v1397_v11, %v1401_v17 }
 0x46e   :  { %2909 = vmatpush1.bf16.msra.mxu0 %v7538_v24  ;;  %v7596_v24 = vcombine.low %v1390_v60, %v1394_v4 }
 0x46f   :  { %2991 = vmatpush1.bf16.msra.mxu1 %v7540_v25  ;;  %2910 = vmatprep.subr.bf16.mxu0 %v7547_v26  ;;  %v7603_v25 = vcombine.high %v1397_v11, %v1401_v17  ;;  %v7605_v26 = vcombine.high %v1398_v18, %v1402_v19 }
 0x470   :  { %2992 = vmatprep.subr.bf16.mxu1 %v7549_v23  ;;  %v1405_v23 = vld [vmem:[%s12024_s11 + $0x7d0] sm:$0xff] }
 0x472   :  { %2911 = vmatpush1.bf16.msra.mxu0 %v7546_v2  ;;  %v7604_v2 = vcombine.low %v1398_v18, %v1402_v19 }
 0x473   :  { %2993 = vmatpush1.bf16.msra.mxu1 %v7548_v12  ;;  %2912 = vmatprep.subr.bf16.mxu0 %v7555_v9  ;;  %v7611_v12 = vcombine.high %v1405_v23, %v1409_v20  ;;  %v7613_v9 = vcombine.high %v1406_v46, %v1410_v44 }
 0x474   :  { %2994 = vmatprep.subr.bf16.mxu1 %v7557_v61  ;;  %v7610_v61 = vcombine.low %v1405_v23, %v1409_v20  ;;  %v8369_v20 = vld [vmem:[%s12027_s14] ss:$28 sps:$4 sm:$0xff]  }
 0x476   :  { %2913 = vmatpush1.bf16.msra.mxu0 %v7554_v34 }
 0x477   :  { %2995 = vmatpush1.bf16.msra.mxu1 %v7556_v35  ;;  %2914 = vmatprep.subr.bf16.mxu0 %v7563_v36 }
 0x478   :  { %2996 = vmatprep.subr.bf16.mxu1 %v7565_v37 }
 0x47a   :  { %2915 = vmatpush1.bf16.msra.mxu0 %v7562_v41 }
 0x47b   :  { %2997 = vmatpush1.bf16.msra.mxu1 %v7564_v54  ;;  %2916 = vmatprep.subr.bf16.mxu0 %v7571_v42 }
 0x47c   :  { %2998 = vmatprep.subr.bf16.mxu1 %v7573_v43 }
 0x47e   :  { %2917 = vmatpush1.bf16.msra.mxu0 %v7570_v52 }
 0x47f   :  { %2999 = vmatpush1.bf16.msra.mxu1 %v7572_v53  ;;  %2918 = vmatprep.subr.bf16.mxu0 %v7579_v55 }
 0x480   :  { %3000 = vmatprep.subr.bf16.mxu1 %v7581_v56 }
 0x482   :  { %2919 = vmatpush1.bf16.msra.mxu0 %v7578_v14 }
 0x483   :  { %3001 = vmatpush1.bf16.msra.mxu1 %v7580_v15  ;;  %2920 = vmatprep.subr.bf16.mxu0 %v7587_v22 }
 0x484   :  { %3002 = vmatprep.subr.bf16.mxu1 %v7589_v27 }
 0x486   :  { %2921 = vmatpush1.bf16.msra.mxu0 %v7586_v33 }
 0x487   :  { %3003 = vmatpush1.bf16.msra.mxu1 %v7588_v6  ;;  %2922 = vmatprep.subr.bf16.mxu0 %v7595_v8 }
 0x488   :  { %3004 = vmatprep.subr.bf16.mxu1 %v7597_v10 }
 0x48a   :  { %2923 = vmatpush1.bf16.msra.mxu0 %v7594_v21  ;;  %v8371_v21 = vld [vmem:[%s12027_s14 + $0x4] ss:$28 sps:$4 sm:$0xff]  }
 0x48b   :  { %3005 = vmatpush1.bf16.msra.mxu1 %v7596_v24  ;;  %2924 = vmatprep.subr.bf16.mxu0 %v7603_v25 }
 0x48c   :  { %3006 = vmatprep.subr.bf16.mxu1 %v7605_v26 }
 0x48e   :  { %2925 = vmatpush1.bf16.msra.mxu0 %v7602_v48 }
 0x48f   :  { %3007 = vmatpush1.bf16.msra.mxu1 %v7604_v2  ;;  %2926 = vmatprep.subr.bf16.mxu0 %v7611_v12  ;;  %v8372_v12 = vld [vmem:[%s12027_s14 + $0x8] ss:$28 sps:$4 sm:$0xff]  }
 0x490   :  { %3008 = vmatprep.subr.bf16.mxu1 %v7613_v9  ;;  %v8374_v9 = vld [vmem:[%s12027_s14 + $0xc] ss:$28 sps:$4 sm:$0xff]  }
 0x492   :  { %2927 = vmatpush1.bf16.msra.mxu0 %v7610_v61 }
 0x493   :  { %3009 = vmatpush1.bf16.msra.mxu1 %v7612_v29  ;;  %6237 = vmatprep.subr.bf16.mxu0 %v8371_v21  ;;  %v8393_v21 = vld [vmem:[%s12027_s14 + $0xe0] ss:$28 sps:$4 sm:$0xff]  }
 0x494   :  { %6401 = vmatprep.subr.bf16.mxu1 %v8374_v9 }
 0x495   :  { %2929 = vmatmul.mubr.bf16.vlgmr.msra.gmra.mrb[8].mxu0 %v9966_v5 }
 0x496   :  { %3011 = vmatmul.mubr.bf16.vlgmr.msra.gmra.mrb[20].mxu1 %v9966_v5  ;;  %6238 = vmatpush1.bf16.msra.mxu0 %v8369_v20  ;;  %v8402_v20 = vld [vmem:[%s12027_s14 + $0x120] ss:$28 sps:$4 sm:$0xff]  }
 0x497   :  { %6402 = vmatpush1.bf16.msra.mxu1 %v8372_v12  ;;  %v8410_v12 = vld [vmem:[%s12027_s14 + $0x15c] ss:$28 sps:$4 sm:$0xff]  }
 0x4e8   :  { %v10338_v30 = vpop.f32.mrb[4].mxu0  ;;  %v10340_v31 = vpop.f32.mrb[16].mxu1 }
 0x4e9   :  { %v3019_v32 = vrot.slane %v10338_v30, 4  ;;  %v3075_v34 = vmul.f32 %v10338_v30, %v10338_v30  ;;  %v3031_v35 = vrot.slane %v10340_v31, 4  ;;  %v3077_v36 = vmul.f32 %v10340_v31, %v10340_v31  ;;  %v10348_v37 = vpop.f32.mrb[5].mxu0  ;;  %v10350_v38 = vpop.f32.mrb[17].mxu1 }
 0x4ea   :  { %v3025_v5 = vrot.slane %v10348_v37, 4  ;;  %v3076_v39 = vmul.f32 %v10348_v37, %v10348_v37  ;;  %v3037_v40 = vrot.slane %v10350_v38, 4  ;;  %v3078_v45 = vmul.f32 %v10350_v38, %v10350_v38  ;;  %v2770_v41 = vpop.f32.mrb[6].mxu0  ;;  %v2852_v54 = vpop.f32.mrb[18].mxu1 }
 0x4eb   :  { %v3020_v42 = vadd.f32 %v3019_v32, %v10338_v30  ;;  %v3083_v43 = vrot.slane %v3075_v34, 4  ;;  %v3032_v47 = vadd.f32 %v3031_v35, %v10340_v31  ;;  %v3095_v49 = vrot.slane %v3077_v36, 4  ;;  %v2771_v50 = vpop.f32.mrb[7].mxu0  ;;  %v2853_v51 = vpop.f32.mrb[19].mxu1 }
 0x4ec   :  { %v3026_v52 = vadd.f32 %v3025_v5, %v10348_v37  ;;  %v3089_v53 = vrot.slane %v3076_v39, 4  ;;  %v3038_v55 = vadd.f32 %v3037_v40, %v10350_v38  ;;  %v3101_v56 = vrot.slane %v3078_v45, 4  ;;  %v8377_v40 = vld [vmem:[%s12027_s14 + $0x3c] ss:$28 sps:$4 sm:$0xff]  }
 0x4ed   :  { %v3021_v57 = vrot.slane %v3020_v42, 2  ;;  %v3084_v58 = vadd.f32 %v3083_v43, %v3075_v34  ;;  %v3033_v0 = vrot.slane %v3032_v47, 2  ;;  %v3096_v13 = vadd.f32 %v3095_v49, %v3077_v36  ;;  %v8375_v43 = vld [vmem:[%s12027_s14 + $0x38] ss:$28 sps:$4 sm:$0xff]   ;;  %6239 = vmatprep.subr.bf16.mxu0 %v8377_v40  ;;  %v8413_v40 = vld [vmem:[%s12027_s14 + $0x18c] ss:$28 sps:$4 sm:$0xff]  }
 0x4ee   :  { %v3027_v14 = vrot.slane %v3026_v52, 2  ;;  %v3090_v15 = vadd.f32 %v3089_v53, %v3076_v39  ;;  %v3039_v22 = vrot.slane %v3038_v55, 2  ;;  %v3102_v27 = vadd.f32 %v3101_v56, %v3078_v45  ;;  %v8380_v53 = vld [vmem:[%s12027_s14 + $0x44] ss:$28 sps:$4 sm:$0xff]   ;;  %6240 = vmatpush1.bf16.msra.mxu0 %v8375_v43  ;;  %v8414_v43 = vld [vmem:[%s12027_s14 + $0x190] ss:$28 sps:$4 sm:$0xff]  }
 0x4ef   :  { %v3022_v28 = vadd.f32 %v3021_v57, %v3020_v42  ;;  %v3085_v3 = vrot.slane %v3084_v58, 2  ;;  %v3034_v60 = vadd.f32 %v3033_v0, %v3032_v47  ;;  %v3097_v4 = vrot.slane %v3096_v13, 2  ;;  %v8378_v47 = vld [vmem:[%s12027_s14 + $0x40] ss:$28 sps:$4 sm:$0xff]   ;;  %6403 = vmatprep.subr.bf16.mxu1 %v8380_v53 }
 0x4f0   :  { %v3028_v33 = vadd.f32 %v3027_v14, %v3026_v52  ;;  %v3091_v6 = vrot.slane %v3090_v15, 2  ;;  %v3040_v8 = vadd.f32 %v3039_v22, %v3038_v55  ;;  %v3103_v10 = vrot.slane %v3102_v27, 2  ;;  %v8383_v14 = vld [vmem:[%s12027_s14 + $0x74] ss:$28 sps:$4 sm:$0xff]   ;;  %6404 = vmatpush1.bf16.msra.mxu1 %v8378_v47  ;;  %v8425_v53 = vld [vmem:[%s12027_s14 + $0x1fc] ss:$28 sps:$4 sm:$0xff]  }
 0x4f1   :  { %v3023_v11 = vrot.slane %v3022_v28, 1  ;;  %v3086_v17 = vadd.f32 %v3085_v3, %v3084_v58  ;;  %v3035_v18 = vrot.slane %v3034_v60, 1  ;;  %v3098_v19 = vadd.f32 %v3097_v4, %v3096_v13  ;;  %v8384_v3 = vld [vmem:[%s12027_s14 + $0x78] ss:$28 sps:$4 sm:$0xff]   ;;  %6241 = vmatprep.subr.bf16.mxu0 %v8383_v14 }
 0x4f2   :  { %v3029_v24 = vrot.slane %v3028_v33, 1  ;;  %v3092_v25 = vadd.f32 %v3091_v6, %v3090_v15  ;;  %v3041_v26 = vrot.slane %v3040_v8, 1  ;;  %v3104_v23 = vadd.f32 %v3103_v10, %v3102_v27  ;;  %v8386_v15 = vld [vmem:[%s12027_s14 + $0x7c] ss:$28 sps:$4 sm:$0xff]   ;;  %v8392_v10 = vld [vmem:[%s12027_s14 + $0xb4] ss:$28 sps:$4 sm:$0xff]  }
 0x4f3   :  { %v3024_v46 = vadd.f32 %v3023_v11, %v3022_v28  ;;  %v3087_v44 = vrot.slane %v3086_v17, 1  ;;  %v3036_v48 = vadd.f32 %v3035_v18, %v3034_v60  ;;  %v3099_v2 = vrot.slane %v3098_v19, 1  ;;  %v8381_v28 = vld [vmem:[%s12027_s14 + $0x70] ss:$28 sps:$4 sm:$0xff]   ;;  %6405 = vmatprep.subr.bf16.mxu1 %v8386_v15  ;;  %v8387_v11 = vld [vmem:[%s12027_s14 + $0xa8] ss:$28 sps:$4 sm:$0xff]  }
 0x4f4   :  { %v3030_v61 = vadd.f32 %v3029_v24, %v3028_v33  ;;  %v3093_v29 = vrot.slane %v3092_v25, 1  ;;  %v3042_v32 = vadd.f32 %v3041_v26, %v3040_v8  ;;  %v3105_v34 = vrot.slane %v3104_v23, 1  ;;  %6242 = vmatpush1.bf16.msra.mxu0 %v8381_v28  ;;  %v8389_v8 = vld [vmem:[%s12027_s14 + $0xac] ss:$28 sps:$4 sm:$0xff]   ;;  %6406 = vmatpush1.bf16.msra.mxu1 %v8384_v3  ;;  %v8395_v18 = vld [vmem:[%s12027_s14 + $0xe4] ss:$28 sps:$4 sm:$0xff]  }
 0x4f5   :  { %v10374_v35 = vmul.f32 0.125, %v3024_v46  ;;  %v3088_v36 = vadd.f32 %v3087_v44, %v3086_v17  ;;  %v10376_v5 = vmul.f32 0.125, %v3036_v48  ;;  %v3100_v39 = vadd.f32 %v3099_v2, %v3098_v19  ;;  %v8390_v17 = vld [vmem:[%s12027_s14 + $0xb0] ss:$28 sps:$4 sm:$0xff]   ;;  %6243 = vmatprep.subr.bf16.mxu0 %v8389_v8  ;;  %6407 = vmatprep.subr.bf16.mxu1 %v8392_v10  ;;  %v8396_v24 = vld [vmem:[%s12027_s14 + $0xe8] ss:$28 sps:$4 sm:$0xff]  }
 0x4f6   :  { %v10381_v45 = vmul.f32 0.125, %v3030_v61  ;;  %v3094_v41 = vadd.f32 %v3093_v29, %v3092_v25  ;;  %v10383_v54 = vmul.f32 0.125, %v3042_v32  ;;  %v3106_v42 = vadd.f32 %v3105_v34, %v3104_v23  ;;  %v8398_v19 = vld [vmem:[%s12027_s14 + $0xec] ss:$28 sps:$4 sm:$0xff]   ;;  %v8401_v25 = vld [vmem:[%s12027_s14 + $0x11c] ss:$28 sps:$4 sm:$0xff]  }
 0x4f7   :  { %v3131_v49 = vmul.f32 0.125, %v3088_v36  ;;  %v3139_v50 = vmul.f32 %v10374_v35, %v10374_v35  ;;  %v3133_v51 = vmul.f32 0.125, %v3100_v39  ;;  %v3141_v52 = vmul.f32 %v10376_v5, %v10376_v5  ;;  %v8404_v26 = vld [vmem:[%s12027_s14 + $0x124] ss:$28 sps:$4 sm:$0xff]   ;;  %v8399_v23 = vld [vmem:[%s12027_s14 + $0x118] ss:$28 sps:$4 sm:$0xff]  }
 0x4f8   :  { %v3132_v55 = vmul.f32 0.125, %v3094_v41  ;;  %v3140_v56 = vmul.f32 %v10381_v45, %v10381_v45  ;;  %v3134_v57 = vmul.f32 0.125, %v3106_v42  ;;  %v3142_v58 = vmul.f32 %v10383_v54, %v10383_v54  ;;  %6244 = vmatpush1.bf16.msra.mxu0 %v8387_v11  ;;  %6408 = vmatpush1.bf16.msra.mxu1 %v8390_v17  ;;  %v8407_v2 = vld [vmem:[%s12027_s14 + $0x154] ss:$28 sps:$4 sm:$0xff]   ;;  %v8411_v42 = vld [vmem:[%s12027_s14 + $0x188] ss:$28 sps:$4 sm:$0xff]  }
 0x4f9   :  { %v3147_v0 = vsub.f32 %v3131_v49, %v3139_v50  ;;  %v3149_v13 = vsub.f32 %v3133_v51, %v3141_v52  ;;  %6245 = vmatprep.subr.bf16.mxu0 %v8395_v18  ;;  %6409 = vmatprep.subr.bf16.mxu1 %v8398_v19  ;;  %v8405_v29 = vld [vmem:[%s12027_s14 + $0x150] ss:$28 sps:$4 sm:$0xff]   ;;  %v8408_v32 = vld [vmem:[%s12027_s14 + $0x158] ss:$28 sps:$4 sm:$0xff]   ;;  %v8419_v49 = vld [vmem:[%s12027_s14 + $0x1c4] ss:$28 sps:$4 sm:$0xff]  }
 0x4fa   :  { %v3148_v22 = vsub.f32 %v3132_v55, %v3140_v56  ;;  %v3150_v27 = vsub.f32 %v3134_v57, %v3142_v58  ;;  %v8416_v41 = vld [vmem:[%s12027_s14 + $0x194] ss:$28 sps:$4 sm:$0xff]   ;;  %v8422_v50 = vld [vmem:[%s12027_s14 + $0x1cc] ss:$28 sps:$4 sm:$0xff]   ;;  %v8417_v51 = vld [vmem:[%s12027_s14 + $0x1c0] ss:$28 sps:$4 sm:$0xff]  }
 0x4fb   :  { %v3156_v60 = vadd.f32 0.8, %v3147_v0  ;;  %v3158_v4 = vadd.f32 0.8, %v3149_v13  ;;  %v8420_v52 = vld [vmem:[%s12027_s14 + $0x1c8] ss:$28 sps:$4 sm:$0xff]  }
 0x4fc   :  { %v3157_v33 = vadd.f32 0.8, %v3148_v22  ;;  %v3159_v6 = vadd.f32 0.8, %v3150_v27  ;;  %6246 = vmatpush1.bf16.msra.mxu0 %v8393_v21  ;;  %6410 = vmatpush1.bf16.msra.mxu1 %v8396_v24  ;;  %v8428_v55 = vld [vmem:[%s12027_s14 + $0x204] ss:$28 sps:$4 sm:$0xff]  }
 0x4fd   :  { %9021 = vrsqrt.f32 %v3156_v60  ;;  %6247 = vmatprep.subr.bf16.mxu0 %v8401_v25  ;;  %6411 = vmatprep.subr.bf16.mxu1 %v8404_v26  ;;  %v8423_v56 = vld [vmem:[%s12027_s14 + $0x1f8] ss:$28 sps:$4 sm:$0xff]   ;;  %v8426_v57 = vld [vmem:[%s12027_s14 + $0x200] ss:$28 sps:$4 sm:$0xff]   ;;  %v8429_v13 = vld [vmem:[%s12027_s14 + $0x230] ss:$28 sps:$4 sm:$0xff]  }
 0x4fe   :  { %9023 = vrsqrt.f32 %v3158_v4  ;;  %v8431_v58 = vld [vmem:[%s12027_s14 + $0x234] ss:$28 sps:$4 sm:$0xff]   ;;  %v8434_v0 = vld [vmem:[%s12027_s14 + $0x23c] ss:$28 sps:$4 sm:$0xff]   ;;  %v8437_v15 = vld [vmem:[%s12027_s14 + $0x26c] ss:$28 sps:$4 sm:$0xff]  }
 0x4ff   :  { %9025 = vrsqrt.f32 %v3157_v33  ;;  %v8432_v14 = vld [vmem:[%s12027_s14 + $0x238] ss:$28 sps:$4 sm:$0xff]   ;;  %v8435_v27 = vld [vmem:[%s12027_s14 + $0x268] ss:$28 sps:$4 sm:$0xff]   ;;  %v8438_v28 = vld [vmem:[%s12027_s14 + $0x270] ss:$28 sps:$4 sm:$0xff]  }
 0x500   :  { %9027 = vrsqrt.f32 %v3159_v6  ;;  %6248 = vmatpush1.bf16.msra.mxu0 %v8399_v23  ;;  %6412 = vmatpush1.bf16.msra.mxu1 %v8402_v20  ;;  %v8440_v22 = vld [vmem:[%s12027_s14 + $0x274] ss:$28 sps:$4 sm:$0xff]   ;;  %v8443_v3 = vld [vmem:[%s12027_s14 + $0x2a4] ss:$28 sps:$4 sm:$0xff]   ;;  %v8446_v60 = vld [vmem:[%s12027_s14 + $0x2ac] ss:$28 sps:$4 sm:$0xff]  }
 0x501   :  { %6249 = vmatprep.subr.bf16.mxu0 %v8407_v2  ;;  %6413 = vmatprep.subr.bf16.mxu1 %v8410_v12  ;;  %v8441_v4 = vld [vmem:[%s12027_s14 + $0x2a0] ss:$28 sps:$4 sm:$0xff]   ;;  %v8444_v33 = vld [vmem:[%s12027_s14 + $0x2a8] ss:$28 sps:$4 sm:$0xff]   ;;  %v8447_v10 = vld [vmem:[%s12027_s14 + $0x2d8] ss:$28 sps:$4 sm:$0xff]  }
 0x502   :  { %v8449_v6 = vld [vmem:[%s12027_s14 + $0x2dc] ss:$28 sps:$4 sm:$0xff]   ;;  %v8452_v8 = vld [vmem:[%s12027_s14 + $0x2e4] ss:$28 sps:$4 sm:$0xff]   ;;  %v8455_v17 = vld [vmem:[%s12027_s14 + $0x314] ss:$28 sps:$4 sm:$0xff]  }
 0x503   :  { %v8450_v11 = vld [vmem:[%s12027_s14 + $0x2e0] ss:$28 sps:$4 sm:$0xff]   ;;  %v8453_v19 = vld [vmem:[%s12027_s14 + $0x310] ss:$28 sps:$4 sm:$0xff]   ;;  %v8456_v21 = vld [vmem:[%s12027_s14 + $0x318] ss:$28 sps:$4 sm:$0xff]  }
 0x504   :  { %6250 = vmatpush1.bf16.msra.mxu0 %v8405_v29  ;;  %6414 = vmatpush1.bf16.msra.mxu1 %v8408_v32  ;;  %v8458_v18 = vld [vmem:[%s12027_s14 + $0x31c] ss:$28 sps:$4 sm:$0xff]   ;;  %v8459_v24 = vld [vmem:[%s12027_s14 + $0x348] ss:$28 sps:$4 sm:$0xff]   ;;  %v8462_v26 = vld [vmem:[%s12027_s14 + $0x350] ss:$28 sps:$4 sm:$0xff]  }
 0x505   :  { %6251 = vmatprep.subr.bf16.mxu0 %v8413_v40  ;;  %6415 = vmatprep.subr.bf16.mxu1 %v8416_v41  ;;  %v8461_v25 = vld [vmem:[%s12027_s14 + $0x34c] ss:$28 sps:$4 sm:$0xff]   ;;  %v8464_v23 = vld [vmem:[%s12027_s14 + $0x354] ss:$28 sps:$4 sm:$0xff]   ;;  %v8467_v20 = vld [vmem:[%s12027_s14 + $0x384] ss:$28 sps:$4 sm:$0xff]  }
 0x507   :  { %v9022_v46 = vpop.eup %9021 }
 0x508   :  { %v9024_v44 = vpop.eup %9023  ;;  %6252 = vmatpush1.bf16.msra.mxu0 %v8411_v42  ;;  %6416 = vmatpush1.bf16.msra.mxu1 %v8414_v43 }
 0x509   :  { %v9026_v48 = vpop.eup %9025  ;;  %6253 = vmatprep.subr.bf16.mxu0 %v8419_v49  ;;  %6417 = vmatprep.subr.bf16.mxu1 %v8422_v50 }
 0x50a   :  { %v9028_v9 = vpop.eup %9027  ;;  %v3180_v61 = vcombine.low %v9022_v46, %v9026_v48  ;;  %v8470_v46 = vld [vmem:[%s12027_s14 + $0x38c] ss:$28 sps:$4 sm:$0xff]  }
 0x50b   :  { %v3181_v34 = vcombine.low %v9024_v44, %v9028_v9 }
 0x50c   :  { %v10463_v36 = vrot.slane %v3180_v61, %v9344_v1  ;;  %6254 = vmatpush1.bf16.msra.mxu0 %v8417_v51  ;;  %6418 = vmatpush1.bf16.msra.mxu1 %v8420_v52 }
 0x50d   :  { %v10466_v39 = vrot.slane %v3181_v34, %v9344_v1  ;;  %6255 = vmatprep.subr.bf16.mxu0 %v8425_v53  ;;  %6419 = vmatprep.subr.bf16.mxu1 %v8428_v55 }
 0x50f   :  { %v3212_v47 = vcombine.low %v10463_v36, %v10466_v39 }
 0x510   :  { %6256 = vmatpush1.bf16.msra.mxu0 %v8423_v56  ;;  %6420 = vmatpush1.bf16.msra.mxu1 %v8426_v57 }
 0x511   :  { %6257 = vmatprep.subr.bf16.mxu0 %v8431_v58  ;;  %6421 = vmatprep.subr.bf16.mxu1 %v8434_v0 }
 0x514   :  { %6258 = vmatpush1.bf16.msra.mxu0 %v8429_v13  ;;  %6422 = vmatpush1.bf16.msra.mxu1 %v8432_v14 }
 0x515   :  { %6259 = vmatprep.subr.bf16.mxu0 %v8437_v15  ;;  %6423 = vmatprep.subr.bf16.mxu1 %v8440_v22 }
 0x518   :  { %6260 = vmatpush1.bf16.msra.mxu0 %v8435_v27  ;;  %6424 = vmatpush1.bf16.msra.mxu1 %v8438_v28 }
 0x519   :  { %6261 = vmatprep.subr.bf16.mxu0 %v8443_v3  ;;  %6425 = vmatprep.subr.bf16.mxu1 %v8446_v60 }
 0x51c   :  { %6262 = vmatpush1.bf16.msra.mxu0 %v8441_v4  ;;  %6426 = vmatpush1.bf16.msra.mxu1 %v8444_v33 }
 0x51d   :  { %6263 = vmatprep.subr.bf16.mxu0 %v8449_v6  ;;  %6427 = vmatprep.subr.bf16.mxu1 %v8452_v8 }
 0x520   :  { %6264 = vmatpush1.bf16.msra.mxu0 %v8447_v10  ;;  %6428 = vmatpush1.bf16.msra.mxu1 %v8450_v11 }
 0x521   :  { %6265 = vmatprep.subr.bf16.mxu0 %v8455_v17  ;;  %6429 = vmatprep.subr.bf16.mxu1 %v8458_v18 }
 0x524   :  { %6266 = vmatpush1.bf16.msra.mxu0 %v8453_v19  ;;  %6430 = vmatpush1.bf16.msra.mxu1 %v8456_v21 }
 0x525   :  { %6267 = vmatprep.subr.bf16.mxu0 %v8461_v25  ;;  %6431 = vmatprep.subr.bf16.mxu1 %v8464_v23 }
 0x528   :  { %6268 = vmatpush1.bf16.msra.mxu0 %v8459_v24  ;;  %6432 = vmatpush1.bf16.msra.mxu1 %v8462_v26 }
 0x529   :  { %6278 = vmatprep.subr.bf16.mxu0 %v8467_v20  ;;  %6442 = vmatprep.subr.bf16.mxu1 %v8470_v46 }
 0x568   :  { %v10584_v44 = vpop.f32.mrb[8].mxu0 }
 0x569   :  { %v3043_v48 = vrot.slane %v10584_v44, 4  ;;  %v3079_v2 = vmul.f32 %v10584_v44, %v10584_v44  ;;  %v10589_v12 = vpop.f32.mrb[20].mxu1  ;;  %v10591_v9 = vpop.f32.mrb[9].mxu0 }
 0x56a   :  { %v3055_v61 = vrot.slane %v10589_v12, 4  ;;  %v3081_v29 = vmul.f32 %v10589_v12, %v10589_v12  ;;  %v3049_v32 = vrot.slane %v10591_v9, 4  ;;  %v3080_v34 = vmul.f32 %v10591_v9, %v10591_v9  ;;  %v10599_v40 = vpop.f32.mrb[21].mxu1  ;;  %v2934_v41 = vpop.f32.mrb[10].mxu0 }
 0x56b   :  { %v3044_v42 = vadd.f32 %v3043_v48, %v10584_v44  ;;  %v3107_v43 = vrot.slane %v3079_v2, 4  ;;  %v3061_v49 = vrot.slane %v10599_v40, 4  ;;  %v3082_v50 = vmul.f32 %v10599_v40, %v10599_v40  ;;  %v3016_v51 = vpop.f32.mrb[22].mxu1  ;;  %v2935_v52 = vpop.f32.mrb[11].mxu0 }
 0x56c   :  { %v3056_v53 = vadd.f32 %v3055_v61, %v10589_v12  ;;  %v3119_v55 = vrot.slane %v3081_v29, 4  ;;  %v3050_v56 = vadd.f32 %v3049_v32, %v10591_v9  ;;  %v3113_v57 = vrot.slane %v3080_v34, 4  ;;  %v3017_v58 = vpop.f32.mrb[23].mxu1 }
 0x56d   :  { %v3045_v0 = vrot.slane %v3044_v42, 2  ;;  %v3108_v13 = vadd.f32 %v3107_v43, %v3079_v2  ;;  %v3062_v14 = vadd.f32 %v3061_v49, %v10599_v40  ;;  %v3125_v15 = vrot.slane %v3082_v50, 4 }
 0x56e   :  { %v3057_v22 = vrot.slane %v3056_v53, 2  ;;  %v3120_v27 = vadd.f32 %v3119_v55, %v3081_v29  ;;  %v3051_v28 = vrot.slane %v3050_v56, 2  ;;  %v3114_v3 = vadd.f32 %v3113_v57, %v3080_v34 }
 0x56f   :  { %v3046_v60 = vadd.f32 %v3045_v0, %v3044_v42  ;;  %v3109_v4 = vrot.slane %v3108_v13, 2  ;;  %v3063_v33 = vrot.slane %v3062_v14, 2  ;;  %v3126_v6 = vadd.f32 %v3125_v15, %v3082_v50 }
 0x570   :  { %v3058_v8 = vadd.f32 %v3057_v22, %v3056_v53  ;;  %v3121_v10 = vrot.slane %v3120_v27, 2  ;;  %v3052_v11 = vadd.f32 %v3051_v28, %v3050_v56  ;;  %v3115_v17 = vrot.slane %v3114_v3, 2 }
 0x571   :  { %v3047_v18 = vrot.slane %v3046_v60, 1  ;;  %v3110_v19 = vadd.f32 %v3109_v4, %v3108_v13  ;;  %v3064_v21 = vadd.f32 %v3063_v33, %v3062_v14  ;;  %v3127_v24 = vrot.slane %v3126_v6, 2 }
 0x572   :  { %v3059_v25 = vrot.slane %v3058_v8, 1  ;;  %v3122_v26 = vadd.f32 %v3121_v10, %v3120_v27  ;;  %v3053_v23 = vrot.slane %v3052_v11, 1  ;;  %v3116_v20 = vadd.f32 %v3115_v17, %v3114_v3 }
 0x573   :  { %v3048_v46 = vadd.f32 %v3047_v18, %v3046_v60  ;;  %v3111_v48 = vrot.slane %v3110_v19, 1  ;;  %v3065_v2 = vrot.slane %v3064_v21, 1  ;;  %v3128_v61 = vadd.f32 %v3127_v24, %v3126_v6 }
 0x574   :  { %v3060_v29 = vadd.f32 %v3059_v25, %v3058_v8  ;;  %v3123_v32 = vrot.slane %v3122_v26, 1  ;;  %v3054_v34 = vadd.f32 %v3053_v23, %v3052_v11  ;;  %v3117_v41 = vrot.slane %v3116_v20, 1 }
 0x575   :  { %v3071_v42 = vmul.f32 0.125, %v3048_v46  ;;  %v3112_v43 = vadd.f32 %v3111_v48, %v3110_v19  ;;  %v3066_v49 = vadd.f32 %v3065_v2, %v3064_v21  ;;  %v3129_v50 = vrot.slane %v3128_v61, 1  ;;  %v3155_v48 = vld [vmem:[%s12028_s12] sm:$0xff] }
 0x576   :  { %v3073_v51 = vmul.f32 0.125, %v3060_v29  ;;  %v3124_v52 = vadd.f32 %v3123_v32, %v3122_v26  ;;  %v3072_v53 = vmul.f32 0.125, %v3054_v34  ;;  %v3118_v55 = vadd.f32 %v3117_v41, %v3116_v20 }
 0x577   :  { %v3135_v56 = vmul.f32 0.125, %v3112_v43  ;;  %v3143_v57 = vmul.f32 %v3071_v42, %v3071_v42  ;;  %v3074_v58 = vmul.f32 0.125, %v3066_v49  ;;  %v3130_v0 = vadd.f32 %v3129_v50, %v3128_v61 }
 0x578   :  { %v3137_v13 = vmul.f32 0.125, %v3124_v52  ;;  %v3145_v14 = vmul.f32 %v3073_v51, %v3073_v51  ;;  %v3136_v15 = vmul.f32 0.125, %v3118_v55  ;;  %v3144_v22 = vmul.f32 %v3072_v53, %v3072_v53 }
 0x579   :  { %v3151_v27 = vsub.f32 %v3135_v56, %v3143_v57  ;;  %v3138_v28 = vmul.f32 0.125, %v3130_v0  ;;  %v3146_v3 = vmul.f32 %v3074_v58, %v3074_v58  ;;  %v3220_v46 = vrot.slane %v3212_v47, %v9344_v1 }
 0x57a   :  { %v3153_v60 = vsub.f32 %v3137_v13, %v3145_v14  ;;  %v3152_v4 = vsub.f32 %v3136_v15, %v3144_v22  ;;  %v10619_v61 = vsub.s32 4, %v9341_v63  ;;  %v10622_v29 = vsub.s32 5, %v9341_v63 }
 0x57b   :  { %v3160_v33 = vadd.f32 0.8, %v3151_v27  ;;  %v3154_v6 = vsub.f32 %v3138_v28, %v3146_v3  ;;  %v10625_v34 = vsub.s32 6, %v9341_v63  ;;  %v3263_v41 = vsub.s32 7, %v9341_v63 }
 0x57c   :  { %v3162_v8 = vadd.f32 0.8, %v3153_v60  ;;  %v3161_v10 = vadd.f32 0.8, %v3152_v4 }
 0x57d   :  { %9029 = vrsqrt.f32 %v3160_v33  ;;  %v3163_v11 = vadd.f32 0.8, %v3154_v6 }
 0x57e   :  { %9031 = vrsqrt.f32 %v3162_v8 }
 0x57f   :  { %9033 = vrsqrt.f32 %v3161_v10  ;;  %v3231_v10 = vld [vmem:[%s12029_s13] sm:$0xff] }
 0x580   :  { %9035 = vrsqrt.f32 %v3163_v11 }
 0x587   :  { %v9030_v17 = vpop.eup %9029 }
 0x588   :  { %v9032_v18 = vpop.eup %9031 }
 0x589   :  { %v9034_v19 = vpop.eup %9033 }
 0x58a   :  { %v9036_v21 = vpop.eup %9035  ;;  %v3182_v24 = vcombine.low %v9030_v17, %v9034_v19 }
 0x58b   :  { %v3183_v25 = vcombine.low %v9032_v18, %v9036_v21 }
 0x58c   :  { %v3204_v26 = vrot.slane %v3182_v24, %v9344_v1 }
 0x58d   :  { %v3211_v23 = vrot.slane %v3183_v25, %v9344_v1 }
 0x58f   :  { %v3213_v20 = vcombine.low %v3204_v26, %v3211_v23 }
 0x591   :  { %v3227_v2 = vrot.slane %v3213_v20, %v9344_v1 }
 0x593   :  { %v3228_v32 = vcombine.low %v3220_v46, %v3227_v2 }
 0x595   :  { %v3230_v36 = vmul.f32 %v3228_v32, %v3155_v48 }
 0x597   :  { %v3236_v39 = vrot.slane %v3230_v36, %v9352_v7  ;;  %v3240_v47 = vrot.slane %v3230_v36, %v9355_v16  ;;  %v3244_v43 = vrot.slane %v3230_v36, %v9716_v59  ;;  %v3248_v49 = vrot.slane %v3230_v36, %v9719_v62 }
 0x598   :  { %v3252_v50 = vrot.slane %v3230_v36, %v10619_v61  ;;  %v3256_v52 = vrot.slane %v3230_v36, %v10622_v29  ;;  %v3260_v55 = vrot.slane %v3230_v36, %v10625_v34  ;;  %v3264_v56 = vrot.slane %v3230_v36, %v3263_v41 }
 0x599   :  { %v3273_v57 = vmul.f32 %v3236_v39, %v10374_v35  ;;  %v3274_v63 = vmul.f32 %v3240_v47, %v10381_v45  ;;  %v3275_v0 = vmul.f32 %v3244_v43, %v10376_v5  ;;  %v3276_v13 = vmul.f32 %v3248_v49, %v10383_v54 }
 0x59a   :  { %v3277_v14 = vmul.f32 %v3252_v50, %v3071_v42  ;;  %v3278_v15 = vmul.f32 %v3256_v52, %v3072_v53  ;;  %v3279_v22 = vmul.f32 %v3260_v55, %v3073_v51  ;;  %v3280_v27 = vmul.f32 %v3264_v56, %v3074_v58 }
 0x59b   :  { %v3289_v28 = vcombine.low %v3273_v57, %v3274_v63  ;;  %v3290_v3 = vcombine.low %v3275_v0, %v3276_v13  ;;  %v3347_v60 = vmul.f32 %v3264_v56, %v10599_v40  ;;  %v3341_v4 = vmul.f32 %v3240_v47, %v10348_v37  ;;  %v8473_v63 = vld [vmem:[%s12027_s14 + $0x3bc] ss:$28 sps:$4 sm:$0xff]   ;;  %v8476_v0 = vld [vmem:[%s12027_s14 + $0x3c4] ss:$28 sps:$4 sm:$0xff]  }
 0x59c   :  { %v3291_v33 = vcombine.low %v3277_v14, %v3278_v15  ;;  %v3292_v6 = vcombine.low %v3279_v22, %v3280_v27  ;;  %v3340_v35 = vmul.f32 %v3236_v39, %v10338_v30  ;;  %v3343_v45 = vmul.f32 %v3248_v49, %v10350_v38  ;;  %v8465_v49 = vld [vmem:[%s12027_s14 + $0x380] ss:$28 sps:$4 sm:$0xff]   ;;  %v8471_v14 = vld [vmem:[%s12027_s14 + $0x3b8] ss:$28 sps:$4 sm:$0xff]  }
 0x59d   :  { %v3299_v5 = vrot.slane %v3289_v28, %v9344_v1  ;;  %v3306_v54 = vrot.slane %v3290_v3, %v9344_v1  ;;  %v3342_v42 = vmul.f32 %v3244_v43, %v10340_v31  ;;  %v3345_v51 = vmul.f32 %v3256_v52, %v10591_v9  ;;  %v8468_v52 = vld [vmem:[%s12027_s14 + $0x388] ss:$28 sps:$4 sm:$0xff]   ;;  %v8474_v15 = vld [vmem:[%s12027_s14 + $0x3c0] ss:$28 sps:$4 sm:$0xff]   ;;  %v8479_v22 = vld [vmem:[%s12027_s14 + $0x3f4] ss:$28 sps:$4 sm:$0xff]  }
 0x59e   :  { %v3313_v53 = vrot.slane %v3291_v33, %v9344_v1  ;;  %v3320_v40 = vrot.slane %v3292_v6, %v9344_v1  ;;  %v3344_v37 = vmul.f32 %v3252_v50, %v10584_v44  ;;  %v3346_v58 = vmul.f32 %v3260_v55, %v10589_v12  ;;  %v8482_v27 = vld [vmem:[%s12027_s14 + $0x3fc] ss:$28 sps:$4 sm:$0xff]   ;;  %v8477_v28 = vld [vmem:[%s12027_s14 + $0x3f0] ss:$28 sps:$4 sm:$0xff]   ;;  %v8483_v33 = vld [vmem:[%s12027_s14 + $0x428] ss:$28 sps:$4 sm:$0xff]  }
 0x59f   :  { %v3321_v8 = vcombine.low %v3299_v5, %v3306_v54  ;;  %v8480_v3 = vld [vmem:[%s12027_s14 + $0x3f8] ss:$28 sps:$4 sm:$0xff]   ;;  %v8486_v6 = vld [vmem:[%s12027_s14 + $0x430] ss:$28 sps:$4 sm:$0xff]   ;;  %v8489_v5 = vld [vmem:[%s12027_s14 + $0x460] ss:$28 sps:$4 sm:$0xff]  }
 0x5a0   :  { %v3322_v30 = vcombine.low %v3313_v53, %v3320_v40  ;;  %v8492_v54 = vld [vmem:[%s12027_s14 + $0x468] ss:$28 sps:$4 sm:$0xff]   ;;  %v8495_v53 = vld [vmem:[%s12027_s14 + $0x498] ss:$28 sps:$4 sm:$0xff]   ;;  %v8498_v40 = vld [vmem:[%s12027_s14 + $0x4a0] ss:$28 sps:$4 sm:$0xff]  }
 0x5a1   :  { %v3329_v38 = vrot.slane %v3321_v8, %v9344_v1  ;;  %v8501_v8 = vld [vmem:[%s12027_s14 + $0x4d0] ss:$28 sps:$4 sm:$0xff]  }
 0x5a2   :  { %v3336_v31 = vrot.slane %v3322_v30, %v9344_v1  ;;  %v8504_v30 = vld [vmem:[%s12027_s14 + $0x4d8] ss:$28 sps:$4 sm:$0xff]  }
 0x5a4   :  { %v3337_v11 = vcombine.low %v3329_v38, %v3336_v31  ;;  %v8509_v38 = vld [vmem:[%s12027_s14 + $0x50c] ss:$28 sps:$4 sm:$0xff]  }
 0x5a5   :  { %v8507_v31 = vld [vmem:[%s12027_s14 + $0x508] ss:$28 sps:$4 sm:$0xff]  }
 0x5a6   :  { %v3339_v9 = vsub.f32 %v3231_v10, %v3337_v11  ;;  %v8512_v10 = vld [vmem:[%s12027_s14 + $0x514] ss:$28 sps:$4 sm:$0xff]  }
 0x5a7   :  { %v8510_v11 = vld [vmem:[%s12027_s14 + $0x510] ss:$28 sps:$4 sm:$0xff]  }
 0x5a8   :  { %v3380_v17 = vrot.slane %v3339_v9, %v3263_v41  ;;  %v3356_v18 = vrot.slane %v3339_v9, %v9355_v16  ;;  %v3352_v19 = vrot.slane %v3339_v9, %v9352_v7  ;;  %v3364_v44 = vrot.slane %v3339_v9, %v9719_v62 }
 0x5a9   :  { %v3360_v12 = vrot.slane %v3339_v9, %v9716_v59  ;;  %v3372_v21 = vrot.slane %v3339_v9, %v10622_v29  ;;  %v3368_v24 = vrot.slane %v3339_v9, %v10619_v61  ;;  %v3376_v25 = vrot.slane %v3339_v9, %v10625_v34  ;;  %v8515_v9 = vld [vmem:[%s12027_s14 + $0x544] ss:$28 sps:$4 sm:$0xff]  }
 0x5aa   :  { %v10663_v26 = vadd.f32 %v3380_v17, %v3347_v60  ;;  %v3390_v23 = vadd.f32 %v3356_v18, %v3341_v4  ;;  %v3389_v20 = vadd.f32 %v3352_v19, %v3340_v35  ;;  %v3392_v46 = vadd.f32 %v3364_v44, %v3343_v45  ;;  %v8485_v60 = vld [vmem:[%s12027_s14 + $0x42c] ss:$28 sps:$4 sm:$0xff]   ;;  %v8488_v4 = vld [vmem:[%s12027_s14 + $0x434] ss:$28 sps:$4 sm:$0xff]   ;;  %v8491_v35 = vld [vmem:[%s12027_s14 + $0x464] ss:$28 sps:$4 sm:$0xff]  }
 0x5ab   :  { %v10665_v48 = vadd.f32 %v3360_v12, %v3342_v42  ;;  %v10667_v2 = vadd.f32 %v3372_v21, %v3345_v51  ;;  %v10669_v32 = vadd.f32 %v3368_v24, %v3344_v37  ;;  %v10671_v41 = vadd.f32 %v3376_v25, %v3346_v58  ;;  %v8494_v45 = vld [vmem:[%s12027_s14 + $0x46c] ss:$28 sps:$4 sm:$0xff]   ;;  %v8497_v42 = vld [vmem:[%s12027_s14 + $0x49c] ss:$28 sps:$4 sm:$0xff]   ;;  %v8500_v51 = vld [vmem:[%s12027_s14 + $0x4a4] ss:$28 sps:$4 sm:$0xff]  }
 0x5ac   :  { %v3398_v36 = vmul.f32 0.2, %v3390_v23  ;;  %v3397_v39 = vmul.f32 0.2, %v3389_v20  ;;  %v3400_v47 = vmul.f32 0.2, %v3392_v46 }
 0x5ad   :  { %v8503_v37 = vld [vmem:[%s12027_s14 + $0x4d4] ss:$28 sps:$4 sm:$0xff]   ;;  %v8506_v58 = vld [vmem:[%s12027_s14 + $0x4dc] ss:$28 sps:$4 sm:$0xff]   ;;  %v8518_v17 = vld [vmem:[%s12027_s14 + $0x54c] ss:$28 sps:$4 sm:$0xff]  }
 0x5ae   :  { %v3406_v43 = vmax.f32 %v3390_v23, %v3398_v36  ;;  %v3405_v50 = vmax.f32 %v3389_v20, %v3397_v39  ;;  %v3408_v55 = vmax.f32 %v3392_v46, %v3400_v47  ;;  %v8513_v18 = vld [vmem:[%s12027_s14 + $0x540] ss:$28 sps:$4 sm:$0xff]   ;;  %v8516_v19 = vld [vmem:[%s12027_s14 + $0x548] ss:$28 sps:$4 sm:$0xff]   ;;  %v8519_v21 = vld [vmem:[%s12027_s14 + $0x578] ss:$28 sps:$4 sm:$0xff]  }
 0x5af   :  { %v8521_v44 = vld [vmem:[%s12027_s14 + $0x57c] ss:$28 sps:$4 sm:$0xff]   ;;  %v8524_v12 = vld [vmem:[%s12027_s14 + $0x584] ss:$28 sps:$4 sm:$0xff]   ;;  %v8527_v25 = vld [vmem:[%s12027_s14 + $0x5b4] ss:$28 sps:$4 sm:$0xff]  }
 0x5b0   :  { %v10679_v56 = vpack.c.bf16 %v3406_v43, %v3406_v43  ;;  %v10681_v57 = vpack.c.bf16 %v3405_v50, %v3405_v50  ;;  %v10693_v13 = vpack.c.bf16 %v3408_v55, %v3408_v55  ;;  %v8522_v24 = vld [vmem:[%s12027_s14 + $0x580] ss:$28 sps:$4 sm:$0xff]   ;;  %v8525_v20 = vld [vmem:[%s12027_s14 + $0x5b0] ss:$28 sps:$4 sm:$0xff]   ;;  %v8528_v46 = vld [vmem:[%s12027_s14 + $0x5b8] ss:$28 sps:$4 sm:$0xff]  }
 0x5b1   :  { %v8530_v23 = vld [vmem:[%s12027_s14 + $0x5bc] ss:$28 sps:$4 sm:$0xff]   ;;  %v8533_v36 = vld [vmem:[%s12027_s14 + $0x5ec] ss:$28 sps:$4 sm:$0xff]   ;;  %v8536_v39 = vld [vmem:[%s12027_s14 + $0x5f4] ss:$28 sps:$4 sm:$0xff]  }
 0x5b2   :  { %6269 = vmatprep.mubr.bf16.mxu0 %v10679_v56  ;;  %6433 = vmatprep.mubr.bf16.mxu1 %v10679_v56  ;;  %v8531_v47 = vld [vmem:[%s12027_s14 + $0x5e8] ss:$28 sps:$4 sm:$0xff]   ;;  %v8534_v43 = vld [vmem:[%s12027_s14 + $0x5f0] ss:$28 sps:$4 sm:$0xff]  }
 0x5b3   :  { %6270 = vmatmul.mubr.bf16.vlgmr.msra.gmra.mrb[12].mxu0 %v10681_v57  ;;  %6434 = vmatmul.mubr.bf16.vlgmr.msra.gmra.mrb[24].mxu1 %v10681_v57  ;;  %v8542_v50 = vld [vmem:[%s12027_s14 + $0x62c] ss:$28 sps:$4 sm:$0xff]  }
 0x5b4   :  { %6279 = vmatpush1.bf16.msra.mxu0 %v8465_v49  ;;  %6443 = vmatpush1.bf16.msra.mxu1 %v8468_v52  ;;  %v8539_v49 = vld [vmem:[%s12027_s14 + $0x624] ss:$28 sps:$4 sm:$0xff]  }
 0x5b5   :  { %6310 = vmatprep.mubr.bf16.mxu0 %v10693_v13  ;;  %6474 = vmatprep.mubr.bf16.mxu1 %v10693_v13  ;;  %v8537_v52 = vld [vmem:[%s12027_s14 + $0x620] ss:$28 sps:$4 sm:$0xff]   ;;  %v8540_v55 = vld [vmem:[%s12027_s14 + $0x628] ss:$28 sps:$4 sm:$0xff]  }
 0x5b6   :  { %6280 = vmatprep.subr.bf16.mxu0 %v8473_v63  ;;  %6444 = vmatprep.subr.bf16.mxu1 %v8476_v0  ;;  %v8545_v63 = vld [vmem:[%s12027_s14 + $0x65c] ss:$28 sps:$4 sm:$0xff]   ;;  %v8548_v0 = vld [vmem:[%s12027_s14 + $0x664] ss:$28 sps:$4 sm:$0xff]  }
 0x5b8   :  { %6281 = vmatpush1.bf16.msra.mxu0 %v8471_v14  ;;  %6445 = vmatpush1.bf16.msra.mxu1 %v8474_v15  ;;  %v8543_v14 = vld [vmem:[%s12027_s14 + $0x658] ss:$28 sps:$4 sm:$0xff]   ;;  %v8546_v15 = vld [vmem:[%s12027_s14 + $0x660] ss:$28 sps:$4 sm:$0xff]  }
 0x5b9   :  { %6282 = vmatprep.subr.bf16.mxu0 %v8479_v22  ;;  %6446 = vmatprep.subr.bf16.mxu1 %v8482_v27  ;;  %v8551_v22 = vld [vmem:[%s12027_s14 + $0x694] ss:$28 sps:$4 sm:$0xff]   ;;  %v8554_v27 = vld [vmem:[%s12027_s14 + $0x69c] ss:$28 sps:$4 sm:$0xff]  }
 0x5bc   :  { %6283 = vmatpush1.bf16.msra.mxu0 %v8477_v28  ;;  %6447 = vmatpush1.bf16.msra.mxu1 %v8480_v3  ;;  %v8549_v28 = vld [vmem:[%s12027_s14 + $0x690] ss:$28 sps:$4 sm:$0xff]   ;;  %v8552_v3 = vld [vmem:[%s12027_s14 + $0x698] ss:$28 sps:$4 sm:$0xff]  }
 0x5bd   :  { %6284 = vmatprep.subr.bf16.mxu0 %v8485_v60  ;;  %6448 = vmatprep.subr.bf16.mxu1 %v8488_v4  ;;  %v8557_v60 = vld [vmem:[%s12027_s14 + $0x6cc] ss:$28 sps:$4 sm:$0xff]   ;;  %v8560_v4 = vld [vmem:[%s12027_s14 + $0x6d4] ss:$28 sps:$4 sm:$0xff]  }
 0x5c0   :  { %6285 = vmatpush1.bf16.msra.mxu0 %v8483_v33  ;;  %6449 = vmatpush1.bf16.msra.mxu1 %v8486_v6  ;;  %v3399_v33 = vmul.f32 0.2, %v10665_v48  ;;  %v8555_v6 = vld [vmem:[%s12027_s14 + $0x6c8] ss:$28 sps:$4 sm:$0xff]  }
 0x5c1   :  { %6286 = vmatprep.subr.bf16.mxu0 %v8491_v35  ;;  %6450 = vmatprep.subr.bf16.mxu1 %v8494_v45  ;;  %v8558_v35 = vld [vmem:[%s12027_s14 + $0x6d0] ss:$28 sps:$4 sm:$0xff]   ;;  %v3402_v45 = vmul.f32 0.2, %v10667_v2 }
 0x5c4   :  { %6287 = vmatpush1.bf16.msra.mxu0 %v8489_v5  ;;  %6451 = vmatpush1.bf16.msra.mxu1 %v8492_v54  ;;  %v3407_v5 = vmax.f32 %v10665_v48, %v3399_v33  ;;  %v8563_v54 = vld [vmem:[%s12027_s14 + $0x704] ss:$28 sps:$4 sm:$0xff]   ;;  %v8569_v48 = vld [vmem:[%s12027_s14 + $0x73c] ss:$28 sps:$4 sm:$0xff]   ;;  %v8621_v33 = vld [vmem:[%s12027_s14 + $0x930] ss:$28 sps:$4 sm:$0xff]  }
 0x5c5   :  { %6288 = vmatprep.subr.bf16.mxu0 %v8497_v42  ;;  %6452 = vmatprep.subr.bf16.mxu1 %v8500_v51  ;;  %v8566_v42 = vld [vmem:[%s12027_s14 + $0x70c] ss:$28 sps:$4 sm:$0xff]   ;;  %v8561_v51 = vld [vmem:[%s12027_s14 + $0x700] ss:$28 sps:$4 sm:$0xff]  }
 0x5c8   :  { %6289 = vmatpush1.bf16.msra.mxu0 %v8495_v53  ;;  %6453 = vmatpush1.bf16.msra.mxu1 %v8498_v40  ;;  %v3410_v53 = vmax.f32 %v10667_v2, %v3402_v45  ;;  %v8564_v40 = vld [vmem:[%s12027_s14 + $0x708] ss:$28 sps:$4 sm:$0xff]   ;;  %v8567_v2 = vld [vmem:[%s12027_s14 + $0x738] ss:$28 sps:$4 sm:$0xff]  }
 0x5c9   :  { %6290 = vmatprep.subr.bf16.mxu0 %v8503_v37  ;;  %6454 = vmatprep.subr.bf16.mxu1 %v8506_v58  ;;  %v8572_v37 = vld [vmem:[%s12027_s14 + $0x744] ss:$28 sps:$4 sm:$0xff]   ;;  %v10893_v58 = vpack.c.bf16 %v3407_v5, %v3407_v5  ;;  %v8632_v45 = vld [vmem:[%s12027_s14 + $0x974] ss:$28 sps:$4 sm:$0xff]  }
 0x5ca   :  { %v8627_v5 = vld [vmem:[%s12027_s14 + $0x968] ss:$28 sps:$4 sm:$0xff]  }
 0x5cc   :  { %6291 = vmatpush1.bf16.msra.mxu0 %v8501_v8  ;;  %6455 = vmatpush1.bf16.msra.mxu1 %v8504_v30  ;;  %v10895_v8 = vpack.c.bf16 %v3410_v53, %v3410_v53  ;;  %v8570_v30 = vld [vmem:[%s12027_s14 + $0x740] ss:$28 sps:$4 sm:$0xff]  }
 0x5cd   :  { %6292 = vmatprep.subr.bf16.mxu0 %v8509_v38  ;;  %6456 = vmatprep.subr.bf16.mxu1 %v8512_v10  ;;  %v8575_v38 = vld [vmem:[%s12027_s14 + $0x774] ss:$28 sps:$4 sm:$0xff]   ;;  %v8578_v10 = vld [vmem:[%s12027_s14 + $0x77c] ss:$28 sps:$4 sm:$0xff]  }
 0x5ce   :  { %v8633_v53 = vld [vmem:[%s12027_s14 + $0x9a0] ss:$28 sps:$4 sm:$0xff]  }
 0x5d0   :  { %6293 = vmatpush1.bf16.msra.mxu0 %v8507_v31  ;;  %6457 = vmatpush1.bf16.msra.mxu1 %v8510_v11  ;;  %v8573_v31 = vld [vmem:[%s12027_s14 + $0x770] ss:$28 sps:$4 sm:$0xff]   ;;  %v8576_v11 = vld [vmem:[%s12027_s14 + $0x778] ss:$28 sps:$4 sm:$0xff]  }
 0x5d1   :  { %6294 = vmatprep.subr.bf16.mxu0 %v8515_v9  ;;  %6458 = vmatprep.subr.bf16.mxu1 %v8518_v17  ;;  %v8581_v9 = vld [vmem:[%s12027_s14 + $0x7ac] ss:$28 sps:$4 sm:$0xff]   ;;  %v8584_v17 = vld [vmem:[%s12027_s14 + $0x7b4] ss:$28 sps:$4 sm:$0xff]  }
 0x5d4   :  { %6295 = vmatpush1.bf16.msra.mxu0 %v8513_v18  ;;  %6459 = vmatpush1.bf16.msra.mxu1 %v8516_v19  ;;  %v8579_v18 = vld [vmem:[%s12027_s14 + $0x7a8] ss:$28 sps:$4 sm:$0xff]   ;;  %v8582_v19 = vld [vmem:[%s12027_s14 + $0x7b0] ss:$28 sps:$4 sm:$0xff]  }
 0x5d5   :  { %6296 = vmatprep.subr.bf16.mxu0 %v8521_v44  ;;  %6460 = vmatprep.subr.bf16.mxu1 %v8524_v12  ;;  %v8587_v44 = vld [vmem:[%s12027_s14 + $0x7e4] ss:$28 sps:$4 sm:$0xff]   ;;  %v8590_v12 = vld [vmem:[%s12027_s14 + $0x7ec] ss:$28 sps:$4 sm:$0xff]  }
 0x5d8   :  { %6297 = vmatpush1.bf16.msra.mxu0 %v8519_v21  ;;  %6461 = vmatpush1.bf16.msra.mxu1 %v8522_v24  ;;  %v8585_v21 = vld [vmem:[%s12027_s14 + $0x7e0] ss:$28 sps:$4 sm:$0xff]   ;;  %v8588_v24 = vld [vmem:[%s12027_s14 + $0x7e8] ss:$28 sps:$4 sm:$0xff]  }
 0x5d9   :  { %6298 = vmatprep.subr.bf16.mxu0 %v8527_v25  ;;  %6462 = vmatprep.subr.bf16.mxu1 %v8530_v23  ;;  %v8593_v25 = vld [vmem:[%s12027_s14 + $0x81c] ss:$28 sps:$4 sm:$0xff]   ;;  %v8596_v23 = vld [vmem:[%s12027_s14 + $0x824] ss:$28 sps:$4 sm:$0xff]  }
 0x5dc   :  { %6299 = vmatpush1.bf16.msra.mxu0 %v8525_v20  ;;  %6463 = vmatpush1.bf16.msra.mxu1 %v8528_v46  ;;  %v8591_v20 = vld [vmem:[%s12027_s14 + $0x818] ss:$28 sps:$4 sm:$0xff]   ;;  %v8594_v46 = vld [vmem:[%s12027_s14 + $0x820] ss:$28 sps:$4 sm:$0xff]  }
 0x5dd   :  { %6300 = vmatprep.subr.bf16.mxu0 %v8533_v36  ;;  %6464 = vmatprep.subr.bf16.mxu1 %v8536_v39  ;;  %v8599_v36 = vld [vmem:[%s12027_s14 + $0x854] ss:$28 sps:$4 sm:$0xff]   ;;  %v8602_v39 = vld [vmem:[%s12027_s14 + $0x85c] ss:$28 sps:$4 sm:$0xff]  }
 0x5e0   :  { %6301 = vmatpush1.bf16.msra.mxu0 %v8531_v47  ;;  %6465 = vmatpush1.bf16.msra.mxu1 %v8534_v43  ;;  %v8597_v47 = vld [vmem:[%s12027_s14 + $0x850] ss:$28 sps:$4 sm:$0xff]   ;;  %v8600_v43 = vld [vmem:[%s12027_s14 + $0x858] ss:$28 sps:$4 sm:$0xff]  }
 0x5e1   :  { %6302 = vmatprep.subr.bf16.mxu0 %v8539_v49  ;;  %6466 = vmatprep.subr.bf16.mxu1 %v8542_v50  ;;  %v8605_v49 = vld [vmem:[%s12027_s14 + $0x88c] ss:$28 sps:$4 sm:$0xff]   ;;  %v8608_v50 = vld [vmem:[%s12027_s14 + $0x894] ss:$28 sps:$4 sm:$0xff]  }
 0x5e4   :  { %6303 = vmatpush1.bf16.msra.mxu0 %v8537_v52  ;;  %6467 = vmatpush1.bf16.msra.mxu1 %v8540_v55  ;;  %v8603_v52 = vld [vmem:[%s12027_s14 + $0x888] ss:$28 sps:$4 sm:$0xff]   ;;  %v8606_v55 = vld [vmem:[%s12027_s14 + $0x890] ss:$28 sps:$4 sm:$0xff]  }
 0x5e5   :  { %6304 = vmatprep.subr.bf16.mxu0 %v8545_v63  ;;  %6468 = vmatprep.subr.bf16.mxu1 %v8548_v0  ;;  %v8611_v63 = vld [vmem:[%s12027_s14 + $0x8c4] ss:$28 sps:$4 sm:$0xff]   ;;  %v8614_v0 = vld [vmem:[%s12027_s14 + $0x8cc] ss:$28 sps:$4 sm:$0xff]  }
 0x5e8   :  { %6305 = vmatpush1.bf16.msra.mxu0 %v8543_v14  ;;  %6469 = vmatpush1.bf16.msra.mxu1 %v8546_v15  ;;  %v8609_v14 = vld [vmem:[%s12027_s14 + $0x8c0] ss:$28 sps:$4 sm:$0xff]   ;;  %v8612_v15 = vld [vmem:[%s12027_s14 + $0x8c8] ss:$28 sps:$4 sm:$0xff]  }
 0x5e9   :  { %6306 = vmatprep.subr.bf16.mxu0 %v8551_v22  ;;  %6470 = vmatprep.subr.bf16.mxu1 %v8554_v27  ;;  %v8617_v22 = vld [vmem:[%s12027_s14 + $0x8fc] ss:$28 sps:$4 sm:$0xff]   ;;  %v8620_v27 = vld [vmem:[%s12027_s14 + $0x904] ss:$28 sps:$4 sm:$0xff]  }
 0x5ec   :  { %6307 = vmatpush1.bf16.msra.mxu0 %v8549_v28  ;;  %6471 = vmatpush1.bf16.msra.mxu1 %v8552_v3  ;;  %v8615_v28 = vld [vmem:[%s12027_s14 + $0x8f8] ss:$28 sps:$4 sm:$0xff]   ;;  %v8618_v3 = vld [vmem:[%s12027_s14 + $0x900] ss:$28 sps:$4 sm:$0xff]  }
 0x5ed   :  { %6308 = vmatprep.subr.bf16.mxu0 %v8557_v60  ;;  %6472 = vmatprep.subr.bf16.mxu1 %v8560_v4  ;;  %v8623_v60 = vld [vmem:[%s12027_s14 + $0x934] ss:$28 sps:$4 sm:$0xff]   ;;  %v8626_v4 = vld [vmem:[%s12027_s14 + $0x93c] ss:$28 sps:$4 sm:$0xff]  }
 0x5f0   :  { %6309 = vmatpush1.bf16.msra.mxu0 %v8555_v6  ;;  %6473 = vmatpush1.bf16.msra.mxu1 %v8558_v35  ;;  %v8624_v6 = vld [vmem:[%s12027_s14 + $0x938] ss:$28 sps:$4 sm:$0xff]   ;;  %v8629_v35 = vld [vmem:[%s12027_s14 + $0x96c] ss:$28 sps:$4 sm:$0xff]  }
 0x5f1   :  { %6319 = vmatprep.subr.bf16.mxu0 %v8563_v54  ;;  %6483 = vmatprep.subr.bf16.mxu1 %v8566_v42  ;;  %v8630_v54 = vld [vmem:[%s12027_s14 + $0x970] ss:$28 sps:$4 sm:$0xff]   ;;  %v8635_v42 = vld [vmem:[%s12027_s14 + $0x9a4] ss:$28 sps:$4 sm:$0xff]  }
 0x5f3   :  { %6311 = vmatmul.mubr.bf16.vlgmr.msra.gmra.mrb[12].mxu0 %v10893_v58  ;;  %6475 = vmatmul.mubr.bf16.vlgmr.msra.gmra.mrb[24].mxu1 %v10893_v58 }
 0x5f4   :  { %6320 = vmatpush1.bf16.msra.mxu0 %v8561_v51  ;;  %6351 = vmatprep.mubr.bf16.mxu0 %v10895_v8  ;;  %v8638_v51 = vld [vmem:[%s12027_s14 + $0x9ac] ss:$28 sps:$4 sm:$0xff]  }
 0x5f5   :  { %6484 = vmatpush1.bf16.msra.mxu1 %v8564_v40  ;;  %6515 = vmatprep.mubr.bf16.mxu1 %v10895_v8  ;;  %v8636_v40 = vld [vmem:[%s12027_s14 + $0x9a8] ss:$28 sps:$4 sm:$0xff]  }
 0x5f6   :  { %6321 = vmatprep.subr.bf16.mxu0 %v8569_v48  ;;  %6485 = vmatprep.subr.bf16.mxu1 %v8572_v37  ;;  %v8641_v48 = vld [vmem:[%s12027_s14 + $0x9dc] ss:$28 sps:$4 sm:$0xff]   ;;  %v8644_v37 = vld [vmem:[%s12027_s14 + $0x9e4] ss:$28 sps:$4 sm:$0xff]  }
 0x5f8   :  { %6322 = vmatpush1.bf16.msra.mxu0 %v8567_v2  ;;  %v8639_v2 = vld [vmem:[%s12027_s14 + $0x9d8] ss:$28 sps:$4 sm:$0xff]  }
 0x5f9   :  { %6486 = vmatpush1.bf16.msra.mxu1 %v8570_v30  ;;  %6323 = vmatprep.subr.bf16.mxu0 %v8575_v38  ;;  %v8642_v30 = vld [vmem:[%s12027_s14 + $0x9e0] ss:$28 sps:$4 sm:$0xff]   ;;  %v8647_v38 = vld [vmem:[%s12027_s14 + $0xa14] ss:$28 sps:$4 sm:$0xff]  }
 0x5fa   :  { %6487 = vmatprep.subr.bf16.mxu1 %v8578_v10  ;;  %v8650_v10 = vld [vmem:[%s12027_s14 + $0xa1c] ss:$28 sps:$4 sm:$0xff]  }
 0x5fc   :  { %6324 = vmatpush1.bf16.msra.mxu0 %v8573_v31  ;;  %v8645_v31 = vld [vmem:[%s12027_s14 + $0xa10] ss:$28 sps:$4 sm:$0xff]  }
 0x5fd   :  { %6488 = vmatpush1.bf16.msra.mxu1 %v8576_v11  ;;  %6325 = vmatprep.subr.bf16.mxu0 %v8581_v9  ;;  %v8648_v11 = vld [vmem:[%s12027_s14 + $0xa18] ss:$28 sps:$4 sm:$0xff]   ;;  %v8653_v9 = vld [vmem:[%s12027_s14 + $0xa4c] ss:$28 sps:$4 sm:$0xff]  }
 0x5fe   :  { %6489 = vmatprep.subr.bf16.mxu1 %v8584_v17  ;;  %v3401_v17 = vmul.f32 0.2, %v10669_v32 }
 0x600   :  { %6326 = vmatpush1.bf16.msra.mxu0 %v8579_v18  ;;  %v8656_v18 = vld [vmem:[%s12027_s14 + $0xa54] ss:$28 sps:$4 sm:$0xff]  }
 0x601   :  { %6490 = vmatpush1.bf16.msra.mxu1 %v8582_v19  ;;  %6327 = vmatprep.subr.bf16.mxu0 %v8587_v44  ;;  %v3404_v19 = vmul.f32 0.2, %v10663_v26  ;;  %v8651_v44 = vld [vmem:[%s12027_s14 + $0xa48] ss:$28 sps:$4 sm:$0xff]  }
 0x602   :  { %6491 = vmatprep.subr.bf16.mxu1 %v8590_v12  ;;  %v8654_v12 = vld [vmem:[%s12027_s14 + $0xa50] ss:$28 sps:$4 sm:$0xff]  }
 0x604   :  { %6328 = vmatpush1.bf16.msra.mxu0 %v8585_v21  ;;  %v3409_v21 = vmax.f32 %v10669_v32, %v3401_v17  ;;  %v8660_v32 = vld [vmem:[%s12027_s14 + $0xa88] ss:$28 sps:$4 sm:$0xff]   ;;  %v8722_v17 = vld [vmem:[%s12027_s14 + $0xcbc] ss:$28 sps:$4 sm:$0xff]  }
 0x605   :  { %6492 = vmatpush1.bf16.msra.mxu1 %v8588_v24  ;;  %6329 = vmatprep.subr.bf16.mxu0 %v8593_v25  ;;  %v8659_v24 = vld [vmem:[%s12027_s14 + $0xa84] ss:$28 sps:$4 sm:$0xff]   ;;  %v8662_v25 = vld [vmem:[%s12027_s14 + $0xa8c] ss:$28 sps:$4 sm:$0xff]  }
 0x606   :  { %6493 = vmatprep.subr.bf16.mxu1 %v8596_v23  ;;  %v3412_v23 = vmax.f32 %v10663_v26, %v3404_v19  ;;  %v8720_v19 = vld [vmem:[%s12027_s14 + $0xcb8] ss:$28 sps:$4 sm:$0xff]  }
 0x608   :  { %6330 = vmatpush1.bf16.msra.mxu0 %v8591_v20  ;;  %v8657_v20 = vld [vmem:[%s12027_s14 + $0xa80] ss:$28 sps:$4 sm:$0xff]   ;;  %v11097_v26 = vpack.c.bf16 %v3412_v23, %v3412_v23  ;;  %v8734_v23 = vld [vmem:[%s12027_s14 + $0xd2c] ss:$28 sps:$4 sm:$0xff]  }
 0x609   :  { %6494 = vmatpush1.bf16.msra.mxu1 %v8594_v46  ;;  %6331 = vmatprep.subr.bf16.mxu0 %v8599_v36  ;;  %v11088_v46 = vpack.c.bf16 %v3409_v21, %v3409_v21  ;;  %v8665_v36 = vld [vmem:[%s12027_s14 + $0xabc] ss:$28 sps:$4 sm:$0xff]   ;;  %v8723_v21 = vld [vmem:[%s12027_s14 + $0xce8] ss:$28 sps:$4 sm:$0xff]  }
 0x60a   :  { %6495 = vmatprep.subr.bf16.mxu1 %v8602_v39  ;;  %v8668_v39 = vld [vmem:[%s12027_s14 + $0xac4] ss:$28 sps:$4 sm:$0xff]  }
 0x60c   :  { %6332 = vmatpush1.bf16.msra.mxu0 %v8597_v47  ;;  %v8663_v47 = vld [vmem:[%s12027_s14 + $0xab8] ss:$28 sps:$4 sm:$0xff]  }
 0x60d   :  { %6496 = vmatpush1.bf16.msra.mxu1 %v8600_v43  ;;  %6333 = vmatprep.subr.bf16.mxu0 %v8605_v49  ;;  %v8666_v43 = vld [vmem:[%s12027_s14 + $0xac0] ss:$28 sps:$4 sm:$0xff]   ;;  %v8671_v49 = vld [vmem:[%s12027_s14 + $0xaf4] ss:$28 sps:$4 sm:$0xff]  }
 0x60e   :  { %6497 = vmatprep.subr.bf16.mxu1 %v8608_v50  ;;  %v8674_v50 = vld [vmem:[%s12027_s14 + $0xafc] ss:$28 sps:$4 sm:$0xff]  }
 0x610   :  { %6334 = vmatpush1.bf16.msra.mxu0 %v8603_v52  ;;  %v8669_v52 = vld [vmem:[%s12027_s14 + $0xaf0] ss:$28 sps:$4 sm:$0xff]  }
 0x611   :  { %6498 = vmatpush1.bf16.msra.mxu1 %v8606_v55  ;;  %6335 = vmatprep.subr.bf16.mxu0 %v8611_v63  ;;  %v8672_v55 = vld [vmem:[%s12027_s14 + $0xaf8] ss:$28 sps:$4 sm:$0xff]   ;;  %v8677_v63 = vld [vmem:[%s12027_s14 + $0xb2c] ss:$28 sps:$4 sm:$0xff]  }
 0x612   :  { %6499 = vmatprep.subr.bf16.mxu1 %v8614_v0  ;;  %v8680_v0 = vld [vmem:[%s12027_s14 + $0xb34] ss:$28 sps:$4 sm:$0xff]  }
 0x614   :  { %6336 = vmatpush1.bf16.msra.mxu0 %v8609_v14  ;;  %v8675_v14 = vld [vmem:[%s12027_s14 + $0xb28] ss:$28 sps:$4 sm:$0xff]  }
 0x615   :  { %6500 = vmatpush1.bf16.msra.mxu1 %v8612_v15  ;;  %6337 = vmatprep.subr.bf16.mxu0 %v8617_v22  ;;  %v8678_v15 = vld [vmem:[%s12027_s14 + $0xb30] ss:$28 sps:$4 sm:$0xff]   ;;  %v8683_v22 = vld [vmem:[%s12027_s14 + $0xb64] ss:$28 sps:$4 sm:$0xff]  }
 0x616   :  { %6501 = vmatprep.subr.bf16.mxu1 %v8620_v27  ;;  %v8686_v27 = vld [vmem:[%s12027_s14 + $0xb6c] ss:$28 sps:$4 sm:$0xff]  }
 0x618   :  { %6338 = vmatpush1.bf16.msra.mxu0 %v8615_v28  ;;  %v8681_v28 = vld [vmem:[%s12027_s14 + $0xb60] ss:$28 sps:$4 sm:$0xff]  }
 0x619   :  { %6502 = vmatpush1.bf16.msra.mxu1 %v8618_v3  ;;  %6339 = vmatprep.subr.bf16.mxu0 %v8623_v60  ;;  %v8684_v3 = vld [vmem:[%s12027_s14 + $0xb68] ss:$28 sps:$4 sm:$0xff]   ;;  %v8689_v60 = vld [vmem:[%s12027_s14 + $0xb9c] ss:$28 sps:$4 sm:$0xff]  }
 0x61a   :  { %6503 = vmatprep.subr.bf16.mxu1 %v8626_v4  ;;  %v8692_v4 = vld [vmem:[%s12027_s14 + $0xba4] ss:$28 sps:$4 sm:$0xff]  }
 0x61c   :  { %6340 = vmatpush1.bf16.msra.mxu0 %v8621_v33  ;;  %v8687_v33 = vld [vmem:[%s12027_s14 + $0xb98] ss:$28 sps:$4 sm:$0xff]  }
 0x61d   :  { %6504 = vmatpush1.bf16.msra.mxu1 %v8624_v6  ;;  %6341 = vmatprep.subr.bf16.mxu0 %v8629_v35  ;;  %v8690_v6 = vld [vmem:[%s12027_s14 + $0xba0] ss:$28 sps:$4 sm:$0xff]   ;;  %v8695_v35 = vld [vmem:[%s12027_s14 + $0xbd4] ss:$28 sps:$4 sm:$0xff]  }
 0x61e   :  { %6505 = vmatprep.subr.bf16.mxu1 %v8632_v45  ;;  %v8698_v45 = vld [vmem:[%s12027_s14 + $0xbdc] ss:$28 sps:$4 sm:$0xff]  }
 0x620   :  { %6342 = vmatpush1.bf16.msra.mxu0 %v8627_v5  ;;  %v8693_v5 = vld [vmem:[%s12027_s14 + $0xbd0] ss:$28 sps:$4 sm:$0xff]  }
 0x621   :  { %6506 = vmatpush1.bf16.msra.mxu1 %v8630_v54  ;;  %6343 = vmatprep.subr.bf16.mxu0 %v8635_v42  ;;  %v8696_v54 = vld [vmem:[%s12027_s14 + $0xbd8] ss:$28 sps:$4 sm:$0xff]   ;;  %v8701_v42 = vld [vmem:[%s12027_s14 + $0xc0c] ss:$28 sps:$4 sm:$0xff]  }
 0x622   :  { %6507 = vmatprep.subr.bf16.mxu1 %v8638_v51  ;;  %v8704_v51 = vld [vmem:[%s12027_s14 + $0xc14] ss:$28 sps:$4 sm:$0xff]  }
 0x624   :  { %6344 = vmatpush1.bf16.msra.mxu0 %v8633_v53  ;;  %v8699_v53 = vld [vmem:[%s12027_s14 + $0xc08] ss:$28 sps:$4 sm:$0xff]  }
 0x625   :  { %6508 = vmatpush1.bf16.msra.mxu1 %v8636_v40  ;;  %6345 = vmatprep.subr.bf16.mxu0 %v8641_v48  ;;  %v8702_v40 = vld [vmem:[%s12027_s14 + $0xc10] ss:$28 sps:$4 sm:$0xff]   ;;  %v8707_v48 = vld [vmem:[%s12027_s14 + $0xc44] ss:$28 sps:$4 sm:$0xff]  }
 0x626   :  { %6509 = vmatprep.subr.bf16.mxu1 %v8644_v37  ;;  %v8710_v37 = vld [vmem:[%s12027_s14 + $0xc4c] ss:$28 sps:$4 sm:$0xff]  }
 0x628   :  { %6346 = vmatpush1.bf16.msra.mxu0 %v8639_v2  ;;  %v8705_v2 = vld [vmem:[%s12027_s14 + $0xc40] ss:$28 sps:$4 sm:$0xff]  }
 0x629   :  { %6510 = vmatpush1.bf16.msra.mxu1 %v8642_v30  ;;  %6347 = vmatprep.subr.bf16.mxu0 %v8647_v38  ;;  %v8708_v30 = vld [vmem:[%s12027_s14 + $0xc48] ss:$28 sps:$4 sm:$0xff]   ;;  %v8713_v38 = vld [vmem:[%s12027_s14 + $0xc7c] ss:$28 sps:$4 sm:$0xff]  }
 0x62a   :  { %6511 = vmatprep.subr.bf16.mxu1 %v8650_v10  ;;  %v8716_v10 = vld [vmem:[%s12027_s14 + $0xc84] ss:$28 sps:$4 sm:$0xff]  }
 0x62c   :  { %6348 = vmatpush1.bf16.msra.mxu0 %v8645_v31  ;;  %v8711_v31 = vld [vmem:[%s12027_s14 + $0xc78] ss:$28 sps:$4 sm:$0xff]  }
 0x62d   :  { %6512 = vmatpush1.bf16.msra.mxu1 %v8648_v11  ;;  %6349 = vmatprep.subr.bf16.mxu0 %v8653_v9  ;;  %v8714_v11 = vld [vmem:[%s12027_s14 + $0xc80] ss:$28 sps:$4 sm:$0xff]   ;;  %v8719_v9 = vld [vmem:[%s12027_s14 + $0xcb4] ss:$28 sps:$4 sm:$0xff]  }
 0x62e   :  { %6513 = vmatprep.subr.bf16.mxu1 %v8656_v18  ;;  %v8717_v18 = vld [vmem:[%s12027_s14 + $0xcb0] ss:$28 sps:$4 sm:$0xff]  }
 0x630   :  { %6350 = vmatpush1.bf16.msra.mxu0 %v8651_v44  ;;  %v8725_v44 = vld [vmem:[%s12027_s14 + $0xcec] ss:$28 sps:$4 sm:$0xff]  }
 0x631   :  { %6514 = vmatpush1.bf16.msra.mxu1 %v8654_v12  ;;  %6360 = vmatprep.subr.bf16.mxu0 %v8659_v24  ;;  %v8728_v12 = vld [vmem:[%s12027_s14 + $0xcf4] ss:$28 sps:$4 sm:$0xff]  }
 0x632   :  { %6524 = vmatprep.subr.bf16.mxu1 %v8662_v25  ;;  %v8726_v24 = vld [vmem:[%s12027_s14 + $0xcf0] ss:$28 sps:$4 sm:$0xff]   ;;  %v8731_v25 = vld [vmem:[%s12027_s14 + $0xd24] ss:$28 sps:$4 sm:$0xff]  }
 0x633   :  { %6352 = vmatmul.mubr.bf16.vlgmr.msra.gmra.mrb[12].mxu0 %v11088_v46 }
 0x634   :  { %6516 = vmatmul.mubr.bf16.vlgmr.msra.gmra.mrb[24].mxu1 %v11088_v46  ;;  %6361 = vmatpush1.bf16.msra.mxu0 %v8657_v20  ;;  %v8729_v20 = vld [vmem:[%s12027_s14 + $0xd20] ss:$28 sps:$4 sm:$0xff]  }
 0x635   :  { %6392 = vmatprep.mubr.bf16.mxu0 %v11097_v26  ;;  %6525 = vmatpush1.bf16.msra.mxu1 %v8660_v32  ;;  %v8732_v32 = vld [vmem:[%s12027_s14 + $0xd28] ss:$28 sps:$4 sm:$0xff]  }
 0x636   :  { %6556 = vmatprep.mubr.bf16.mxu1 %v11097_v26  ;;  %6362 = vmatprep.subr.bf16.mxu0 %v8665_v36  ;;  %v8737_v36 = vld [vmem:[%s12027_s14 + $0xd5c] ss:$28 sps:$4 sm:$0xff]  }
 0x637   :  { %6526 = vmatprep.subr.bf16.mxu1 %v8668_v39  ;;  %v8740_v39 = vld [vmem:[%s12027_s14 + $0xd64] ss:$28 sps:$4 sm:$0xff]  }
 0x638   :  { %6363 = vmatpush1.bf16.msra.mxu0 %v8663_v47  ;;  %v8735_v47 = vld [vmem:[%s12027_s14 + $0xd58] ss:$28 sps:$4 sm:$0xff]  }
 0x639   :  { %6527 = vmatpush1.bf16.msra.mxu1 %v8666_v43  ;;  %6364 = vmatprep.subr.bf16.mxu0 %v8671_v49  ;;  %v8738_v43 = vld [vmem:[%s12027_s14 + $0xd60] ss:$28 sps:$4 sm:$0xff]   ;;  %v8743_v49 = vld [vmem:[%s12027_s14 + $0xd94] ss:$28 sps:$4 sm:$0xff]  }
 0x63a   :  { %6528 = vmatprep.subr.bf16.mxu1 %v8674_v50  ;;  %v8746_v50 = vld [vmem:[%s12027_s14 + $0xd9c] ss:$28 sps:$4 sm:$0xff]  }
 0x63c   :  { %6365 = vmatpush1.bf16.msra.mxu0 %v8669_v52  ;;  %v8741_v52 = vld [vmem:[%s12027_s14 + $0xd90] ss:$28 sps:$4 sm:$0xff]  }
 0x63d   :  { %6529 = vmatpush1.bf16.msra.mxu1 %v8672_v55  ;;  %6366 = vmatprep.subr.bf16.mxu0 %v8677_v63  ;;  %v8744_v55 = vld [vmem:[%s12027_s14 + $0xd98] ss:$28 sps:$4 sm:$0xff]   ;;  %v8749_v63 = vld [vmem:[%s12027_s14 + $0xdcc] ss:$28 sps:$4 sm:$0xff]  }
 0x63e   :  { %6530 = vmatprep.subr.bf16.mxu1 %v8680_v0  ;;  %v3403_v0 = vmul.f32 0.2, %v10671_v41 }
 0x640   :  { %6367 = vmatpush1.bf16.msra.mxu0 %v8675_v14  ;;  %v8752_v14 = vld [vmem:[%s12027_s14 + $0xdd4] ss:$28 sps:$4 sm:$0xff]  }
 0x641   :  { %6531 = vmatpush1.bf16.msra.mxu1 %v8678_v15  ;;  %6368 = vmatprep.subr.bf16.mxu0 %v8683_v22  ;;  %v8747_v15 = vld [vmem:[%s12027_s14 + $0xdc8] ss:$28 sps:$4 sm:$0xff]   ;;  %v8750_v22 = vld [vmem:[%s12027_s14 + $0xdd0] ss:$28 sps:$4 sm:$0xff]  }
 0x642   :  { %6532 = vmatprep.subr.bf16.mxu1 %v8686_v27  ;;  %v3411_v27 = vmax.f32 %v10671_v41, %v3403_v0  ;;  %v8757_v41 = vld [vmem:[%s12027_s14 + $0x18] ss:$28 sps:$4 sm:$0xff]  }
 0x643   :  { %v8810_v0 = vld [vmem:[%s12027_s14 + $0x27c] ss:$28 sps:$4 sm:$0xff]  }
 0x644   :  { %6369 = vmatpush1.bf16.msra.mxu0 %v8681_v28  ;;  %v8755_v28 = vld [vmem:[%s12027_s14 + $0x14] ss:$28 sps:$4 sm:$0xff]  }
 0x645   :  { %6533 = vmatpush1.bf16.msra.mxu1 %v8684_v3  ;;  %6370 = vmatprep.subr.bf16.mxu0 %v8689_v60  ;;  %v8756_v3 = vld [vmem:[%s12027_s14 + $0x1d8] ss:$28 sps:$4 sm:$0xff]   ;;  %v8753_v60 = vld [vmem:[%s12027_s14 + $0x10] ss:$28 sps:$4 sm:$0xff]  }
 0x646   :  { %6534 = vmatprep.subr.bf16.mxu1 %v8692_v4  ;;  %v11290_v4 = vpack.c.bf16 %v3411_v27, %v3411_v27  ;;  %v8815_v27 = vld [vmem:[%s12027_s14 + $0x2b4] ss:$28 sps:$4 sm:$0xff]  }
 0x648   :  { %6371 = vmatpush1.bf16.msra.mxu0 %v8687_v33  ;;  %v8760_v33 = vld [vmem:[%s12027_s14 + $0x4c] ss:$28 sps:$4 sm:$0xff]  }
 0x649   :  { %6535 = vmatpush1.bf16.msra.mxu1 %v8690_v6  ;;  %6372 = vmatprep.subr.bf16.mxu0 %v8695_v35  ;;  %v8761_v6 = vld [vmem:[%s12027_s14 + $0x210] ss:$28 sps:$4 sm:$0xff]   ;;  %v8758_v35 = vld [vmem:[%s12027_s14 + $0x48] ss:$28 sps:$4 sm:$0xff]  }
 0x64a   :  { %6536 = vmatprep.subr.bf16.mxu1 %v8698_v45  ;;  %v8762_v45 = vld [vmem:[%s12027_s14 + $0x50] ss:$28 sps:$4 sm:$0xff]  }
 0x64c   :  { %6373 = vmatpush1.bf16.msra.mxu0 %v8693_v5  ;;  %v8765_v5 = vld [vmem:[%s12027_s14 + $0x84] ss:$28 sps:$4 sm:$0xff]  }
 0x64d   :  { %6537 = vmatpush1.bf16.msra.mxu1 %v8696_v54  ;;  %6374 = vmatprep.subr.bf16.mxu0 %v8701_v42  ;;  %v8766_v54 = vld [vmem:[%s12027_s14 + $0x248] ss:$28 sps:$4 sm:$0xff]   ;;  %v8763_v42 = vld [vmem:[%s12027_s14 + $0x80] ss:$28 sps:$4 sm:$0xff]  }
 0x64e   :  { %6538 = vmatprep.subr.bf16.mxu1 %v8704_v51  ;;  %v8767_v51 = vld [vmem:[%s12027_s14 + $0x88] ss:$28 sps:$4 sm:$0xff]  }
 0x650   :  { %6375 = vmatpush1.bf16.msra.mxu0 %v8699_v53  ;;  %v8771_v53 = vld [vmem:[%s12027_s14 + $0x280] ss:$28 sps:$4 sm:$0xff]  }
 0x651   :  { %6539 = vmatpush1.bf16.msra.mxu1 %v8702_v40  ;;  %6376 = vmatprep.subr.bf16.mxu0 %v8707_v48  ;;  %v8768_v40 = vld [vmem:[%s12027_s14 + $0xb8] ss:$28 sps:$4 sm:$0xff]   ;;  %v8772_v48 = vld [vmem:[%s12027_s14 + $0xc0] ss:$28 sps:$4 sm:$0xff]  }
 0x652   :  { %6540 = vmatprep.subr.bf16.mxu1 %v8710_v37  ;;  %v8775_v37 = vld [vmem:[%s12027_s14 + $0xf4] ss:$28 sps:$4 sm:$0xff]  }
 0x654   :  { %6377 = vmatpush1.bf16.msra.mxu0 %v8705_v2  ;;  %v8776_v2 = vld [vmem:[%s12027_s14 + $0x2b8] ss:$28 sps:$4 sm:$0xff]  }
 0x655   :  { %6541 = vmatpush1.bf16.msra.mxu1 %v8708_v30  ;;  %6378 = vmatprep.subr.bf16.mxu0 %v8713_v38  ;;  %v8773_v30 = vld [vmem:[%s12027_s14 + $0xf0] ss:$28 sps:$4 sm:$0xff]   ;;  %v8777_v38 = vld [vmem:[%s12027_s14 + $0xf8] ss:$28 sps:$4 sm:$0xff]  }
 0x656   :  { %6542 = vmatprep.subr.bf16.mxu1 %v8716_v10  ;;  %v8780_v10 = vld [vmem:[%s12027_s14 + $0x12c] ss:$28 sps:$4 sm:$0xff]  }
 0x658   :  { %6379 = vmatpush1.bf16.msra.mxu0 %v8711_v31  ;;  %v8781_v31 = vld [vmem:[%s12027_s14 + $0x2f0] ss:$28 sps:$4 sm:$0xff]  }
 0x659   :  { %6543 = vmatpush1.bf16.msra.mxu1 %v8714_v11  ;;  %6380 = vmatprep.subr.bf16.mxu0 %v8719_v9  ;;  %v8778_v11 = vld [vmem:[%s12027_s14 + $0x128] ss:$28 sps:$4 sm:$0xff]   ;;  %v8782_v9 = vld [vmem:[%s12027_s14 + $0x130] ss:$28 sps:$4 sm:$0xff]  }
 0x65a   :  { %6544 = vmatprep.subr.bf16.mxu1 %v8722_v17  ;;  %v8785_v17 = vld [vmem:[%s12027_s14 + $0x164] ss:$28 sps:$4 sm:$0xff]  }
 0x65c   :  { %6381 = vmatpush1.bf16.msra.mxu0 %v8717_v18  ;;  %v8786_v18 = vld [vmem:[%s12027_s14 + $0x328] ss:$28 sps:$4 sm:$0xff]  }
 0x65d   :  { %6545 = vmatpush1.bf16.msra.mxu1 %v8720_v19  ;;  %6382 = vmatprep.subr.bf16.mxu0 %v8725_v44  ;;  %v8783_v19 = vld [vmem:[%s12027_s14 + $0x160] ss:$28 sps:$4 sm:$0xff]   ;;  %v8787_v44 = vld [vmem:[%s12027_s14 + $0x168] ss:$28 sps:$4 sm:$0xff]  }
 0x65e   :  { %6546 = vmatprep.subr.bf16.mxu1 %v8728_v12  ;;  %v8790_v12 = vld [vmem:[%s12027_s14 + $0x19c] ss:$28 sps:$4 sm:$0xff]  }
 0x660   :  { %6383 = vmatpush1.bf16.msra.mxu0 %v8723_v21  ;;  %v8791_v21 = vld [vmem:[%s12027_s14 + $0x360] ss:$28 sps:$4 sm:$0xff]  }
 0x661   :  { %6547 = vmatpush1.bf16.msra.mxu1 %v8726_v24  ;;  %6384 = vmatprep.subr.bf16.mxu0 %v8731_v25  ;;  %v8788_v24 = vld [vmem:[%s12027_s14 + $0x198] ss:$28 sps:$4 sm:$0xff]   ;;  %v8792_v25 = vld [vmem:[%s12027_s14 + $0x1a0] ss:$28 sps:$4 sm:$0xff]  }
 0x662   :  { %6548 = vmatprep.subr.bf16.mxu1 %v8734_v23  ;;  %v8795_v23 = vld [vmem:[%s12027_s14 + $0x1d4] ss:$28 sps:$4 sm:$0xff]  }
 0x664   :  { %6385 = vmatpush1.bf16.msra.mxu0 %v8729_v20  ;;  %v8796_v20 = vld [vmem:[%s12027_s14 + $0x558] ss:$28 sps:$4 sm:$0xff]  }
 0x665   :  { %6549 = vmatpush1.bf16.msra.mxu1 %v8732_v32  ;;  %6386 = vmatprep.subr.bf16.mxu0 %v8737_v36  ;;  %v8793_v32 = vld [vmem:[%s12027_s14 + $0x1d0] ss:$28 sps:$4 sm:$0xff]   ;;  %v8797_v36 = vld [vmem:[%s12027_s14 + $0x398] ss:$28 sps:$4 sm:$0xff]  }
 0x666   :  { %6550 = vmatprep.subr.bf16.mxu1 %v8740_v39  ;;  %v8800_v39 = vld [vmem:[%s12027_s14 + $0x20c] ss:$28 sps:$4 sm:$0xff]  }
 0x668   :  { %6387 = vmatpush1.bf16.msra.mxu0 %v8735_v47  ;;  %v8801_v47 = vld [vmem:[%s12027_s14 + $0x590] ss:$28 sps:$4 sm:$0xff]  }
 0x669   :  { %6551 = vmatpush1.bf16.msra.mxu1 %v8738_v43  ;;  %6388 = vmatprep.subr.bf16.mxu0 %v8743_v49  ;;  %v8798_v43 = vld [vmem:[%s12027_s14 + $0x208] ss:$28 sps:$4 sm:$0xff]   ;;  %v8802_v49 = vld [vmem:[%s12027_s14 + $0x3d0] ss:$28 sps:$4 sm:$0xff]  }
 0x66a   :  { %6552 = vmatprep.subr.bf16.mxu1 %v8746_v50  ;;  %v8805_v50 = vld [vmem:[%s12027_s14 + $0x244] ss:$28 sps:$4 sm:$0xff]  }
 0x66c   :  { %6389 = vmatpush1.bf16.msra.mxu0 %v8741_v52  ;;  %v8806_v52 = vld [vmem:[%s12027_s14 + $0x5c8] ss:$28 sps:$4 sm:$0xff]  }
 0x66d   :  { %6553 = vmatpush1.bf16.msra.mxu1 %v8744_v55  ;;  %6390 = vmatprep.subr.bf16.mxu0 %v8749_v63  ;;  %v8803_v55 = vld [vmem:[%s12027_s14 + $0x240] ss:$28 sps:$4 sm:$0xff]   ;;  %v8807_v63 = vld [vmem:[%s12027_s14 + $0x408] ss:$28 sps:$4 sm:$0xff]  }
 0x66e   :  { %6554 = vmatprep.subr.bf16.mxu1 %v8752_v14  ;;  %v8811_v14 = vld [vmem:[%s12027_s14 + $0x600] ss:$28 sps:$4 sm:$0xff]  }
 0x670   :  { %6391 = vmatpush1.bf16.msra.mxu0 %v8747_v15  ;;  %v8808_v15 = vld [vmem:[%s12027_s14 + $0x278] ss:$28 sps:$4 sm:$0xff]  }
 0x671   :  { %6555 = vmatpush1.bf16.msra.mxu1 %v8750_v22  ;;  %6565 = vmatprep.subr.bf16.mxu0 %v8755_v28  ;;  %v8812_v22 = vld [vmem:[%s12027_s14 + $0x440] ss:$28 sps:$4 sm:$0xff]   ;;  %v8816_v28 = vld [vmem:[%s12027_s14 + $0x638] ss:$28 sps:$4 sm:$0xff]  }
 0x672   :  { %8072 = vmatprep.subr.bf16.mxu1 %v8756_v3  ;;  %v8813_v3 = vld [vmem:[%s12027_s14 + $0x2b0] ss:$28 sps:$4 sm:$0xff]  }
 0x673   :  { %6393 = vmatmul.mubr.bf16.vlgmr.msra.gmra.mrb[12].mxu0 %v11290_v4 }
 0x674   :  { %6557 = vmatmul.mubr.bf16.vlgmr.msra.gmra.mrb[24].mxu1 %v11290_v4  ;;  %6566 = vmatpush1.bf16.msra.mxu0 %v8753_v60  ;;  %v8817_v60 = vld [vmem:[%s12027_s14 + $0x478] ss:$28 sps:$4 sm:$0xff]  }
 0x675   :  { %6597 = vmatprep.mubr.bf16.mxu0 %v10679_v56  ;;  %8073 = vmatpush3.bf16.msra.mxu1 %v8757_v41  ;;  %v8820_v41 = vld [vmem:[%s12027_s14 + $0x2ec] ss:$28 sps:$4 sm:$0xff]  }
 0x676   :  { %6761 = vmatprep.mubr.bf16.mxu1 %v10679_v56  ;;  %6567 = vmatprep.subr.bf16.mxu0 %v8760_v33  ;;  %v8770_v56 = vld [vmem:[%s12027_s14 + $0xbc] ss:$28 sps:$4 sm:$0xff]   ;;  %v8821_v33 = vld [vmem:[%s12027_s14 + $0x670] ss:$28 sps:$4 sm:$0xff]  }
 0x677   :  { %8074 = vmatprep.subr.bf16.mxu1 %v8761_v6  ;;  %v8818_v6 = vld [vmem:[%s12027_s14 + $0x2e8] ss:$28 sps:$4 sm:$0xff]  }
 0x678   :  { %6568 = vmatpush1.bf16.msra.mxu0 %v8758_v35  ;;  %v8822_v35 = vld [vmem:[%s12027_s14 + $0x4b0] ss:$28 sps:$4 sm:$0xff]  }
 0x679   :  { %8075 = vmatpush3.bf16.msra.mxu1 %v8762_v45  ;;  %6569 = vmatprep.subr.bf16.mxu0 %v8765_v5  ;;  %v8825_v45 = vld [vmem:[%s12027_s14 + $0x324] ss:$28 sps:$4 sm:$0xff]  }
 0x67a   :  { %8076 = vmatprep.subr.bf16.mxu1 %v8766_v54  ;;  %v8826_v5 = vld [vmem:[%s12027_s14 + $0x6a8] ss:$28 sps:$4 sm:$0xff]   ;;  %v8823_v54 = vld [vmem:[%s12027_s14 + $0x320] ss:$28 sps:$4 sm:$0xff]  }
 0x67c   :  { %6570 = vmatpush1.bf16.msra.mxu0 %v8763_v42  ;;  %v8827_v42 = vld [vmem:[%s12027_s14 + $0x4e8] ss:$28 sps:$4 sm:$0xff]  }
 0x67d   :  { %8077 = vmatpush3.bf16.msra.mxu1 %v8767_v51  ;;  %6571 = vmatprep.subr.bf16.mxu0 %v8770_v56  ;;  %v8830_v51 = vld [vmem:[%s12027_s14 + $0x35c] ss:$28 sps:$4 sm:$0xff]  }
 0x67e   :  { %8078 = vmatprep.subr.bf16.mxu1 %v8771_v53  ;;  %v8831_v56 = vld [vmem:[%s12027_s14 + $0x6e0] ss:$28 sps:$4 sm:$0xff]   ;;  %v8828_v53 = vld [vmem:[%s12027_s14 + $0x358] ss:$28 sps:$4 sm:$0xff]  }
 0x680   :  { %6572 = vmatpush1.bf16.msra.mxu0 %v8768_v40  ;;  %v8832_v40 = vld [vmem:[%s12027_s14 + $0x520] ss:$28 sps:$4 sm:$0xff]  }
 0x681   :  { %8079 = vmatpush3.bf16.msra.mxu1 %v8772_v48  ;;  %6573 = vmatprep.subr.bf16.mxu0 %v8775_v37  ;;  %v8835_v48 = vld [vmem:[%s12027_s14 + $0x394] ss:$28 sps:$4 sm:$0xff]  }
 0x682   :  { %8080 = vmatprep.subr.bf16.mxu1 %v8776_v2  ;;  %v8836_v37 = vld [vmem:[%s12027_s14 + $0x8d8] ss:$28 sps:$4 sm:$0xff]   ;;  %v8833_v2 = vld [vmem:[%s12027_s14 + $0x390] ss:$28 sps:$4 sm:$0xff]  }
 0x684   :  { %6574 = vmatpush1.bf16.msra.mxu0 %v8773_v30  ;;  %v8837_v30 = vld [vmem:[%s12027_s14 + $0x718] ss:$28 sps:$4 sm:$0xff]  }
 0x685   :  { %8081 = vmatpush3.bf16.msra.mxu1 %v8777_v38  ;;  %6575 = vmatprep.subr.bf16.mxu0 %v8780_v10  ;;  %v8840_v38 = vld [vmem:[%s12027_s14 + $0x3cc] ss:$28 sps:$4 sm:$0xff]  }
 0x686   :  { %8082 = vmatprep.subr.bf16.mxu1 %v8781_v31  ;;  %v8841_v10 = vld [vmem:[%s12027_s14 + $0x910] ss:$28 sps:$4 sm:$0xff]   ;;  %v8838_v31 = vld [vmem:[%s12027_s14 + $0x3c8] ss:$28 sps:$4 sm:$0xff]  }
 0x688   :  { %6576 = vmatpush1.bf16.msra.mxu0 %v8778_v11  ;;  %v8842_v11 = vld [vmem:[%s12027_s14 + $0x750] ss:$28 sps:$4 sm:$0xff]  }
 0x689   :  { %8083 = vmatpush3.bf16.msra.mxu1 %v8782_v9  ;;  %6577 = vmatprep.subr.bf16.mxu0 %v8785_v17  ;;  %v8846_v9 = vld [vmem:[%s12027_s14 + $0x948] ss:$28 sps:$4 sm:$0xff]  }
 0x68a   :  { %8084 = vmatprep.subr.bf16.mxu1 %v8786_v18  ;;  %v8847_v17 = vld [vmem:[%s12027_s14 + $0x788] ss:$28 sps:$4 sm:$0xff]   ;;  %v8850_v18 = vld [vmem:[%s12027_s14 + $0x43c] ss:$28 sps:$4 sm:$0xff]  }
 0x68c   :  { %6578 = vmatpush1.bf16.msra.mxu0 %v8783_v19  ;;  %v8851_v19 = vld [vmem:[%s12027_s14 + $0x980] ss:$28 sps:$4 sm:$0xff]  }
 0x68d   :  { %8085 = vmatpush3.bf16.msra.mxu1 %v8787_v44  ;;  %6579 = vmatprep.subr.bf16.mxu0 %v8790_v12  ;;  %v8848_v44 = vld [vmem:[%s12027_s14 + $0x438] ss:$28 sps:$4 sm:$0xff]   ;;  %v8852_v12 = vld [vmem:[%s12027_s14 + $0x7c0] ss:$28 sps:$4 sm:$0xff]  }
 0x68e   :  { %8086 = vmatprep.subr.bf16.mxu1 %v8791_v21  ;;  %v8855_v21 = vld [vmem:[%s12027_s14 + $0x474] ss:$28 sps:$4 sm:$0xff]  }
 0x690   :  { %6580 = vmatpush1.bf16.msra.mxu0 %v8788_v24  ;;  %v8856_v24 = vld [vmem:[%s12027_s14 + $0x9b8] ss:$28 sps:$4 sm:$0xff]  }
 0x691   :  { %8087 = vmatpush3.bf16.msra.mxu1 %v8792_v25  ;;  %6581 = vmatprep.subr.bf16.mxu0 %v8795_v23  ;;  %v8853_v25 = vld [vmem:[%s12027_s14 + $0x470] ss:$28 sps:$4 sm:$0xff]   ;;  %v8857_v23 = vld [vmem:[%s12027_s14 + $0x7f8] ss:$28 sps:$4 sm:$0xff]  }
 0x692   :  { %8094 = vmatprep.subr.bf16.mxu1 %v8796_v20  ;;  %v8860_v20 = vld [vmem:[%s12027_s14 + $0x4ac] ss:$28 sps:$4 sm:$0xff]  }
 0x694   :  { %6762 = vmatmul.mubr.bf16.vlgmr.msra.gmra.mrb[28].mxu1 %v10681_v57  ;;  %6582 = vmatpush1.bf16.msra.mxu0 %v8793_v32  ;;  %v8861_v32 = vld [vmem:[%s12027_s14 + $0x9f0] ss:$28 sps:$4 sm:$0xff]  }
 0x695   :  { %8095 = vmatpush3.bf16.msra.mxu1 %v8797_v36  ;;  %6801 = vmatprep.mubr.bf16.mxu1 %v10693_v13  ;;  %v8858_v36 = vld [vmem:[%s12027_s14 + $0x4a8] ss:$28 sps:$4 sm:$0xff]  }
 0x696   :  { %6583 = vmatprep.subr.bf16.mxu0 %v8800_v39  ;;  %8096 = vmatprep.subr.bf16.mxu1 %v8801_v47  ;;  %v8862_v39 = vld [vmem:[%s12027_s14 + $0x830] ss:$28 sps:$4 sm:$0xff]   ;;  %v8865_v47 = vld [vmem:[%s12027_s14 + $0x4e4] ss:$28 sps:$4 sm:$0xff]  }
 0x698   :  { %6584 = vmatpush1.bf16.msra.mxu0 %v8798_v43  ;;  %v8866_v43 = vld [vmem:[%s12027_s14 + $0xa28] ss:$28 sps:$4 sm:$0xff]  }
 0x699   :  { %8097 = vmatpush3.bf16.msra.mxu1 %v8802_v49  ;;  %6585 = vmatprep.subr.bf16.mxu0 %v8805_v50  ;;  %v8863_v49 = vld [vmem:[%s12027_s14 + $0x4e0] ss:$28 sps:$4 sm:$0xff]   ;;  %v8867_v50 = vld [vmem:[%s12027_s14 + $0x868] ss:$28 sps:$4 sm:$0xff]  }
 0x69a   :  { %8098 = vmatprep.subr.bf16.mxu1 %v8806_v52  ;;  %v8870_v52 = vld [vmem:[%s12027_s14 + $0x51c] ss:$28 sps:$4 sm:$0xff]  }
 0x69c   :  { %6586 = vmatpush1.bf16.msra.mxu0 %v8803_v55  ;;  %v8871_v55 = vld [vmem:[%s12027_s14 + $0xa60] ss:$28 sps:$4 sm:$0xff]  }
 0x69d   :  { %8099 = vmatpush3.bf16.msra.mxu1 %v8807_v63  ;;  %6587 = vmatprep.subr.bf16.mxu0 %v8810_v0  ;;  %v8868_v63 = vld [vmem:[%s12027_s14 + $0x518] ss:$28 sps:$4 sm:$0xff]   ;;  %v8872_v0 = vld [vmem:[%s12027_s14 + $0x8a0] ss:$28 sps:$4 sm:$0xff]  }
 0x69e   :  { %8100 = vmatprep.subr.bf16.mxu1 %v8811_v14  ;;  %v8875_v14 = vld [vmem:[%s12027_s14 + $0x554] ss:$28 sps:$4 sm:$0xff]  }
 0x6a0   :  { %6588 = vmatpush1.bf16.msra.mxu0 %v8808_v15  ;;  %v8876_v15 = vld [vmem:[%s12027_s14 + $0xc58] ss:$28 sps:$4 sm:$0xff]  }
 0x6a1   :  { %8101 = vmatpush3.bf16.msra.mxu1 %v8812_v22  ;;  %6589 = vmatprep.subr.bf16.mxu0 %v8815_v27  ;;  %v8873_v22 = vld [vmem:[%s12027_s14 + $0x550] ss:$28 sps:$4 sm:$0xff]   ;;  %v8877_v27 = vld [vmem:[%s12027_s14 + $0xa98] ss:$28 sps:$4 sm:$0xff]  }
 0x6a2   :  { %8102 = vmatprep.subr.bf16.mxu1 %v8816_v28  ;;  %v8880_v28 = vld [vmem:[%s12027_s14 + $0x58c] ss:$28 sps:$4 sm:$0xff]  }
 0x6a4   :  { %6590 = vmatpush1.bf16.msra.mxu0 %v8813_v3  ;;  %v8881_v3 = vld [vmem:[%s12027_s14 + $0xc90] ss:$28 sps:$4 sm:$0xff]  }
 0x6a5   :  { %8103 = vmatpush3.bf16.msra.mxu1 %v8817_v60  ;;  %6591 = vmatprep.subr.bf16.mxu0 %v8820_v41  ;;  %v8878_v60 = vld [vmem:[%s12027_s14 + $0x588] ss:$28 sps:$4 sm:$0xff]   ;;  %v8882_v41 = vld [vmem:[%s12027_s14 + $0xad0] ss:$28 sps:$4 sm:$0xff]  }
 0x6a6   :  { %8104 = vmatprep.subr.bf16.mxu1 %v8821_v33  ;;  %v8885_v33 = vld [vmem:[%s12027_s14 + $0x5c4] ss:$28 sps:$4 sm:$0xff]  }
 0x6a8   :  { %6592 = vmatpush1.bf16.msra.mxu0 %v8818_v6  ;;  %v8886_v6 = vld [vmem:[%s12027_s14 + $0xcc8] ss:$28 sps:$4 sm:$0xff]  }
 0x6a9   :  { %8105 = vmatpush3.bf16.msra.mxu1 %v8822_v35  ;;  %6593 = vmatprep.subr.bf16.mxu0 %v8825_v45  ;;  %v8883_v35 = vld [vmem:[%s12027_s14 + $0x5c0] ss:$28 sps:$4 sm:$0xff]   ;;  %v8887_v45 = vld [vmem:[%s12027_s14 + $0xb08] ss:$28 sps:$4 sm:$0xff]  }
 0x6aa   :  { %8106 = vmatprep.subr.bf16.mxu1 %v8826_v5  ;;  %v8890_v5 = vld [vmem:[%s12027_s14 + $0x5fc] ss:$28 sps:$4 sm:$0xff]  }
 0x6ac   :  { %6594 = vmatpush1.bf16.msra.mxu0 %v8823_v54  ;;  %v8891_v54 = vld [vmem:[%s12027_s14 + $0xd00] ss:$28 sps:$4 sm:$0xff]  }
 0x6ad   :  { %8107 = vmatpush3.bf16.msra.mxu1 %v8827_v42  ;;  %6595 = vmatprep.subr.bf16.mxu0 %v8830_v51  ;;  %v8888_v42 = vld [vmem:[%s12027_s14 + $0x5f8] ss:$28 sps:$4 sm:$0xff]   ;;  %v8892_v51 = vld [vmem:[%s12027_s14 + $0xb40] ss:$28 sps:$4 sm:$0xff]  }
 0x6ae   :  { %8108 = vmatprep.subr.bf16.mxu1 %v8831_v56  ;;  %v8895_v56 = vld [vmem:[%s12027_s14 + $0x634] ss:$28 sps:$4 sm:$0xff]  }
 0x6b0   :  { %6596 = vmatpush1.bf16.msra.mxu0 %v8828_v53  ;;  %v8896_v53 = vld [vmem:[%s12027_s14 + $0xd38] ss:$28 sps:$4 sm:$0xff]  }
 0x6b1   :  { %8109 = vmatpush3.bf16.msra.mxu1 %v8832_v40  ;;  %6606 = vmatprep.subr.bf16.mxu0 %v8835_v48  ;;  %v8893_v40 = vld [vmem:[%s12027_s14 + $0x630] ss:$28 sps:$4 sm:$0xff]   ;;  %v8897_v48 = vld [vmem:[%s12027_s14 + $0xb78] ss:$28 sps:$4 sm:$0xff]  }
 0x6b2   :  { %8116 = vmatprep.subr.bf16.mxu1 %v8836_v37  ;;  %v8900_v37 = vld [vmem:[%s12027_s14 + $0x66c] ss:$28 sps:$4 sm:$0xff]  }
 0x6b3   :  { %6598 = vmatmul.mubr.bf16.vlgmr.msra.gmra.mrb[16].mxu0 %v10681_v57  ;;  %v8845_v57 = vld [vmem:[%s12027_s14 + $0x404] ss:$28 sps:$4 sm:$0xff]  }
 0x6b4   :  { %6802 = vmatmul.mubr.bf16.vlgmr.msra.gmra.mrb[32].mxu1 %v10893_v58  ;;  %6607 = vmatpush1.bf16.msra.mxu0 %v8833_v2  ;;  %v8901_v2 = vld [vmem:[%s12027_s14 + $0xd70] ss:$28 sps:$4 sm:$0xff]  }
 0x6b5   :  { %6638 = vmatprep.mubr.bf16.mxu0 %v10693_v13  ;;  %8117 = vmatpush3.bf16.msra.mxu1 %v8837_v30  ;;  %v8843_v13 = vld [vmem:[%s12027_s14 + $0x400] ss:$28 sps:$4 sm:$0xff]   ;;  %v8898_v30 = vld [vmem:[%s12027_s14 + $0x668] ss:$28 sps:$4 sm:$0xff]  }
 0x6b6   :  { %6841 = vmatprep.mubr.bf16.mxu1 %v10895_v8  ;;  %6608 = vmatprep.subr.bf16.mxu0 %v8840_v38  ;;  %v8902_v38 = vld [vmem:[%s12027_s14 + $0xbb0] ss:$28 sps:$4 sm:$0xff]  }
 0x6b7   :  { %8118 = vmatprep.subr.bf16.mxu1 %v8841_v10  ;;  %v8905_v10 = vld [vmem:[%s12027_s14 + $0x6a4] ss:$28 sps:$4 sm:$0xff]  }
 0x6b8   :  { %6609 = vmatpush1.bf16.msra.mxu0 %v8838_v31  ;;  %v8906_v31 = vld [vmem:[%s12027_s14 + $0xda8] ss:$28 sps:$4 sm:$0xff]  }
 0x6b9   :  { %8119 = vmatpush3.bf16.msra.mxu1 %v8842_v11  ;;  %6610 = vmatprep.subr.bf16.mxu0 %v8845_v57  ;;  %v8903_v11 = vld [vmem:[%s12027_s14 + $0x6a0] ss:$28 sps:$4 sm:$0xff]   ;;  %v8907_v57 = vld [vmem:[%s12027_s14 + $0xbe8] ss:$28 sps:$4 sm:$0xff]  }
 0x6ba   :  { %8120 = vmatprep.subr.bf16.mxu1 %v8846_v9  ;;  %v8910_v9 = vld [vmem:[%s12027_s14 + $0x6dc] ss:$28 sps:$4 sm:$0xff]  }
 0x6bc   :  { %6611 = vmatpush1.bf16.msra.mxu0 %v8843_v13  ;;  %v8911_v13 = vld [vmem:[%s12027_s14 + $0xde0] ss:$28 sps:$4 sm:$0xff]  }
 0x6bd   :  { %8121 = vmatpush3.bf16.msra.mxu1 %v8847_v17  ;;  %6612 = vmatprep.subr.bf16.mxu0 %v8850_v18  ;;  %v8908_v17 = vld [vmem:[%s12027_s14 + $0x6d8] ss:$28 sps:$4 sm:$0xff]   ;;  %v8912_v18 = vld [vmem:[%s12027_s14 + $0xc20] ss:$28 sps:$4 sm:$0xff]  }
 0x6be   :  { %8122 = vmatprep.subr.bf16.mxu1 %v8851_v19  ;;  %v8915_v19 = vld [vmem:[%s12027_s14 + $0x714] ss:$28 sps:$4 sm:$0xff]  }
 0x6c0   :  { %6613 = vmatpush1.bf16.msra.mxu0 %v8848_v44  ;;  %v8913_v44 = vld [vmem:[%s12027_s14 + $0x710] ss:$28 sps:$4 sm:$0xff]  }
 0x6c1   :  { %8123 = vmatpush3.bf16.msra.mxu1 %v8852_v12  ;;  %6614 = vmatprep.subr.bf16.mxu0 %v8855_v21  ;;  %v8918_v12 = vld [vmem:[%s12027_s14 + $0x74c] ss:$28 sps:$4 sm:$0xff]  }
 0x6c2   :  { %8124 = vmatprep.subr.bf16.mxu1 %v8856_v24  ;;  %v8916_v21 = vld [vmem:[%s12027_s14 + $0x748] ss:$28 sps:$4 sm:$0xff]  }
 0x6c3   :  { %v8921_v24 = vld [vmem:[%s12027_s14 + $0x784] ss:$28 sps:$4 sm:$0xff]  }
 0x6c4   :  { %6615 = vmatpush1.bf16.msra.mxu0 %v8853_v25  ;;  %v8919_v25 = vld [vmem:[%s12027_s14 + $0x780] ss:$28 sps:$4 sm:$0xff]  }
 0x6c5   :  { %8125 = vmatpush3.bf16.msra.mxu1 %v8857_v23  ;;  %6616 = vmatprep.subr.bf16.mxu0 %v8860_v20  ;;  %v8927_v23 = vld [vmem:[%s12027_s14 + $0x7f4] ss:$28 sps:$4 sm:$0xff]  }
 0x6c6   :  { %8126 = vmatprep.subr.bf16.mxu1 %v8861_v32  ;;  %v8925_v20 = vld [vmem:[%s12027_s14 + $0x7f0] ss:$28 sps:$4 sm:$0xff]  }
 0x6c7   :  { %v8930_v32 = vld [vmem:[%s12027_s14 + $0x82c] ss:$28 sps:$4 sm:$0xff]  }
 0x6c8   :  { %6617 = vmatpush1.bf16.msra.mxu0 %v8858_v36  ;;  %v8928_v36 = vld [vmem:[%s12027_s14 + $0x828] ss:$28 sps:$4 sm:$0xff]  }
 0x6c9   :  { %8127 = vmatpush3.bf16.msra.mxu1 %v8862_v39  ;;  %6618 = vmatprep.subr.bf16.mxu0 %v8865_v47  ;;  %v8933_v39 = vld [vmem:[%s12027_s14 + $0x864] ss:$28 sps:$4 sm:$0xff]  }
 0x6ca   :  { %8128 = vmatprep.subr.bf16.mxu1 %v8866_v43  ;;  %v8931_v47 = vld [vmem:[%s12027_s14 + $0x860] ss:$28 sps:$4 sm:$0xff]  }
 0x6cb   :  { %v8936_v43 = vld [vmem:[%s12027_s14 + $0x89c] ss:$28 sps:$4 sm:$0xff]  }
 0x6cc   :  { %6619 = vmatpush1.bf16.msra.mxu0 %v8863_v49  ;;  %v8934_v49 = vld [vmem:[%s12027_s14 + $0x898] ss:$28 sps:$4 sm:$0xff]  }
 0x6cd   :  { %8129 = vmatpush3.bf16.msra.mxu1 %v8867_v50  ;;  %6620 = vmatprep.subr.bf16.mxu0 %v8870_v52  ;;  %v8939_v50 = vld [vmem:[%s12027_s14 + $0x8d4] ss:$28 sps:$4 sm:$0xff]  }
 0x6ce   :  { %8130 = vmatprep.subr.bf16.mxu1 %v8871_v55  ;;  %v8937_v52 = vld [vmem:[%s12027_s14 + $0x8d0] ss:$28 sps:$4 sm:$0xff]  }
 0x6cf   :  { %v8942_v55 = vld [vmem:[%s12027_s14 + $0x90c] ss:$28 sps:$4 sm:$0xff]  }
 0x6d0   :  { %6621 = vmatpush1.bf16.msra.mxu0 %v8868_v63  ;;  %v8940_v63 = vld [vmem:[%s12027_s14 + $0x908] ss:$28 sps:$4 sm:$0xff]  }
 0x6d1   :  { %8131 = vmatpush3.bf16.msra.mxu1 %v8872_v0  ;;  %6622 = vmatprep.subr.bf16.mxu0 %v8875_v14  ;;  %v8945_v0 = vld [vmem:[%s12027_s14 + $0x944] ss:$28 sps:$4 sm:$0xff]  }
 0x6d2   :  { %8138 = vmatprep.subr.bf16.mxu1 %v8876_v15  ;;  %v8943_v14 = vld [vmem:[%s12027_s14 + $0x940] ss:$28 sps:$4 sm:$0xff]  }
 0x6d3   :  { %v8948_v15 = vld [vmem:[%s12027_s14 + $0x97c] ss:$28 sps:$4 sm:$0xff]  }
 0x6d4   :  { %6842 = vmatmul.mubr.bf16.vlgmr.msra.gmra.mrb[36].mxu1 %v11088_v46  ;;  %6623 = vmatpush1.bf16.msra.mxu0 %v8873_v22  ;;  %v8946_v22 = vld [vmem:[%s12027_s14 + $0x978] ss:$28 sps:$4 sm:$0xff]  }
 0x6d5   :  { %8139 = vmatpush3.bf16.msra.mxu1 %v8877_v27  ;;  %6881 = vmatprep.mubr.bf16.mxu1 %v11097_v26  ;;  %v8951_v27 = vld [vmem:[%s12027_s14 + $0x9b4] ss:$28 sps:$4 sm:$0xff]  }
 0x6d6   :  { %6624 = vmatprep.subr.bf16.mxu0 %v8880_v28  ;;  %8140 = vmatprep.subr.bf16.mxu1 %v8881_v3  ;;  %v8949_v28 = vld [vmem:[%s12027_s14 + $0x9b0] ss:$28 sps:$4 sm:$0xff]  }
 0x6d7   :  { %v8954_v3 = vld [vmem:[%s12027_s14 + $0x9ec] ss:$28 sps:$4 sm:$0xff]  }
 0x6d8   :  { %6625 = vmatpush1.bf16.msra.mxu0 %v8878_v60  ;;  %v8952_v60 = vld [vmem:[%s12027_s14 + $0x9e8] ss:$28 sps:$4 sm:$0xff]  }
 0x6d9   :  { %8141 = vmatpush3.bf16.msra.mxu1 %v8882_v41  ;;  %6626 = vmatprep.subr.bf16.mxu0 %v8885_v33  ;;  %v8957_v41 = vld [vmem:[%s12027_s14 + $0xa24] ss:$28 sps:$4 sm:$0xff]  }
 0x6da   :  { %8142 = vmatprep.subr.bf16.mxu1 %v8886_v6  ;;  %v8955_v33 = vld [vmem:[%s12027_s14 + $0xa20] ss:$28 sps:$4 sm:$0xff]  }
 0x6db   :  { %v8960_v6 = vld [vmem:[%s12027_s14 + $0xa5c] ss:$28 sps:$4 sm:$0xff]  }
 0x6dc   :  { %6627 = vmatpush1.bf16.msra.mxu0 %v8883_v35  ;;  %v8958_v35 = vld [vmem:[%s12027_s14 + $0xa58] ss:$28 sps:$4 sm:$0xff]  }
 0x6dd   :  { %8143 = vmatpush3.bf16.msra.mxu1 %v8887_v45  ;;  %6628 = vmatprep.subr.bf16.mxu0 %v8890_v5  ;;  %v8963_v45 = vld [vmem:[%s12027_s14 + $0xa94] ss:$28 sps:$4 sm:$0xff]  }
 0x6de   :  { %8144 = vmatprep.subr.bf16.mxu1 %v8891_v54  ;;  %v8961_v5 = vld [vmem:[%s12027_s14 + $0xa90] ss:$28 sps:$4 sm:$0xff]  }
 0x6df   :  { %v8966_v54 = vld [vmem:[%s12027_s14 + $0xacc] ss:$28 sps:$4 sm:$0xff]  }
 0x6e0   :  { %6629 = vmatpush1.bf16.msra.mxu0 %v8888_v42  ;;  %v8964_v42 = vld [vmem:[%s12027_s14 + $0xac8] ss:$28 sps:$4 sm:$0xff]  }
 0x6e1   :  { %8145 = vmatpush3.bf16.msra.mxu1 %v8892_v51  ;;  %6630 = vmatprep.subr.bf16.mxu0 %v8895_v56  ;;  %v8969_v51 = vld [vmem:[%s12027_s14 + $0xb04] ss:$28 sps:$4 sm:$0xff]  }
 0x6e2   :  { %8146 = vmatprep.subr.bf16.mxu1 %v8896_v53  ;;  %v8967_v56 = vld [vmem:[%s12027_s14 + $0xb00] ss:$28 sps:$4 sm:$0xff]   ;;  %v8975_v53 = vld [vmem:[%s12027_s14 + $0xb74] ss:$28 sps:$4 sm:$0xff]  }
 0x6e4   :  { %6631 = vmatpush1.bf16.msra.mxu0 %v8893_v40  ;;  %v8973_v40 = vld [vmem:[%s12027_s14 + $0xb70] ss:$28 sps:$4 sm:$0xff]  }
 0x6e5   :  { %8147 = vmatpush3.bf16.msra.mxu1 %v8897_v48  ;;  %6632 = vmatprep.subr.bf16.mxu0 %v8900_v37  ;;  %v8978_v48 = vld [vmem:[%s12027_s14 + $0xbac] ss:$28 sps:$4 sm:$0xff]  }
 0x6e6   :  { %8148 = vmatprep.subr.bf16.mxu1 %v8901_v2  ;;  %v8976_v37 = vld [vmem:[%s12027_s14 + $0xba8] ss:$28 sps:$4 sm:$0xff]  }
 0x6e7   :  { %v8981_v2 = vld [vmem:[%s12027_s14 + $0xbe4] ss:$28 sps:$4 sm:$0xff]  }
 0x6e8   :  { %6633 = vmatpush1.bf16.msra.mxu0 %v8898_v30 }
 0x6e9   :  { %8149 = vmatpush3.bf16.msra.mxu1 %v8902_v38  ;;  %6634 = vmatprep.subr.bf16.mxu0 %v8905_v10 }
 0x6ea   :  { %8150 = vmatprep.subr.bf16.mxu1 %v8906_v31 }
 0x6ec   :  { %6635 = vmatpush1.bf16.msra.mxu0 %v8903_v11 }
 0x6ed   :  { %8151 = vmatpush3.bf16.msra.mxu1 %v8907_v57  ;;  %6636 = vmatprep.subr.bf16.mxu0 %v8910_v9 }
 0x6ee   :  { %8152 = vmatprep.subr.bf16.mxu1 %v8911_v13 }
 0x6f0   :  { %6637 = vmatpush1.bf16.msra.mxu0 %v8908_v17 }
 0x6f1   :  { %8153 = vmatpush3.bf16.msra.mxu1 %v8912_v18  ;;  %6647 = vmatprep.subr.bf16.mxu0 %v8915_v19 }
 0x6f3   :  { %6639 = vmatmul.mubr.bf16.vlgmr.msra.gmra.mrb[16].mxu0 %v10893_v58  ;;  %v8924_v58 = vld [vmem:[%s12027_s14 + $0x7bc] ss:$28 sps:$4 sm:$0xff]  }
 0x6f4   :  { %6882 = vmatmul.mubr.bf16.vlgmr.msra.gmra.mrb[40].mxu1 %v11290_v4  ;;  %6648 = vmatpush1.bf16.msra.mxu0 %v8913_v44  ;;  %v8979_v44 = vld [vmem:[%s12027_s14 + $0xbe0] ss:$28 sps:$4 sm:$0xff]  }
 0x6f5   :  { %6679 = vmatprep.mubr.bf16.mxu0 %v10895_v8  ;;  %6649 = vmatprep.subr.bf16.mxu0 %v8918_v12  ;;  %v8922_v8 = vld [vmem:[%s12027_s14 + $0x7b8] ss:$28 sps:$4 sm:$0xff]  }
 0x6f8   :  { %6650 = vmatpush1.bf16.msra.mxu0 %v8916_v21 }
 0x6f9   :  { %6651 = vmatprep.subr.bf16.mxu0 %v8921_v24 }
 0x6fc   :  { %6652 = vmatpush1.bf16.msra.mxu0 %v8919_v25 }
 0x6fd   :  { %6653 = vmatprep.subr.bf16.mxu0 %v8924_v58 }
 0x700   :  { %6654 = vmatpush1.bf16.msra.mxu0 %v8922_v8 }
 0x701   :  { %6655 = vmatprep.subr.bf16.mxu0 %v8927_v23  ;;  %v8984_v23 = vld [vmem:[%s12027_s14 + $0xc1c] ss:$28 sps:$4 sm:$0xff]  }
 0x704   :  { %6656 = vmatpush1.bf16.msra.mxu0 %v8925_v20 }
 0x705   :  { %6657 = vmatprep.subr.bf16.mxu0 %v8930_v32 }
 0x708   :  { %6658 = vmatpush1.bf16.msra.mxu0 %v8928_v36 }
 0x709   :  { %6659 = vmatprep.subr.bf16.mxu0 %v8933_v39 }
 0x70c   :  { %6660 = vmatpush1.bf16.msra.mxu0 %v8931_v47 }
 0x70d   :  { %6661 = vmatprep.subr.bf16.mxu0 %v8936_v43 }
 0x710   :  { %6662 = vmatpush1.bf16.msra.mxu0 %v8934_v49 }
 0x711   :  { %6663 = vmatprep.subr.bf16.mxu0 %v8939_v50 }
 0x714   :  { %6664 = vmatpush1.bf16.msra.mxu0 %v8937_v52 }
 0x715   :  { %6665 = vmatprep.subr.bf16.mxu0 %v8942_v55 }
 0x718   :  { %6666 = vmatpush1.bf16.msra.mxu0 %v8940_v63 }
 0x719   :  { %6667 = vmatprep.subr.bf16.mxu0 %v8945_v0 }
 0x71c   :  { %6668 = vmatpush1.bf16.msra.mxu0 %v8943_v14 }
 0x71d   :  { %6669 = vmatprep.subr.bf16.mxu0 %v8948_v15  ;;  %v8982_v15 = vld [vmem:[%s12027_s14 + $0xc18] ss:$28 sps:$4 sm:$0xff]  }
 0x720   :  { %6670 = vmatpush1.bf16.msra.mxu0 %v8946_v22 }
 0x721   :  { %6671 = vmatprep.subr.bf16.mxu0 %v8951_v27 }
 0x724   :  { %6672 = vmatpush1.bf16.msra.mxu0 %v8949_v28 }
 0x725   :  { %6673 = vmatprep.subr.bf16.mxu0 %v8954_v3 }
 0x728   :  { %6674 = vmatpush1.bf16.msra.mxu0 %v8952_v60  ;;  %v8987_v60 = vld [vmem:[%s12027_s14 + $0xc54] ss:$28 sps:$4 sm:$0xff]  }
 0x729   :  { %6675 = vmatprep.subr.bf16.mxu0 %v8957_v41 }
 0x72c   :  { %6676 = vmatpush1.bf16.msra.mxu0 %v8955_v33 }
 0x72d   :  { %6677 = vmatprep.subr.bf16.mxu0 %v8960_v6 }
 0x730   :  { %6678 = vmatpush1.bf16.msra.mxu0 %v8958_v35 }
 0x731   :  { %6688 = vmatprep.subr.bf16.mxu0 %v8963_v45 }
 0x733   :  { %6680 = vmatmul.mubr.bf16.vlgmr.msra.gmra.mrb[16].mxu0 %v11088_v46  ;;  %v8972_v46 = vld [vmem:[%s12027_s14 + $0xb3c] ss:$28 sps:$4 sm:$0xff]  }
 0x734   :  { %6689 = vmatpush1.bf16.msra.mxu0 %v8961_v5  ;;  %6720 = vmatprep.mubr.bf16.mxu0 %v11097_v26  ;;  %v8970_v26 = vld [vmem:[%s12027_s14 + $0xb38] ss:$28 sps:$4 sm:$0xff]  }
 0x735   :  { %6690 = vmatprep.subr.bf16.mxu0 %v8966_v54 }
 0x738   :  { %6691 = vmatpush1.bf16.msra.mxu0 %v8964_v42 }
 0x739   :  { %6692 = vmatprep.subr.bf16.mxu0 %v8969_v51 }
 0x73c   :  { %6693 = vmatpush1.bf16.msra.mxu0 %v8967_v56 }
 0x73d   :  { %6694 = vmatprep.subr.bf16.mxu0 %v8972_v46 }
 0x740   :  { %6695 = vmatpush1.bf16.msra.mxu0 %v8970_v26 }
 0x741   :  { %6696 = vmatprep.subr.bf16.mxu0 %v8975_v53  ;;  %v8985_v53 = vld [vmem:[%s12027_s14 + $0xc50] ss:$28 sps:$4 sm:$0xff]  }
 0x744   :  { %6697 = vmatpush1.bf16.msra.mxu0 %v8973_v40 }
 0x745   :  { %6698 = vmatprep.subr.bf16.mxu0 %v8978_v48 }
 0x746   :  { %v11819_v30 = vpop.f32.mrb[12].mxu0 }
 0x747   :  { %v6889_v38 = vrot.slane %v11819_v30, 4  ;;  %v6940_v10 = vmul.f32 %v11819_v30, %v11819_v30  ;;  %v11824_v31 = vpop.f32.mrb[24].mxu1  ;;  %v11826_v11 = vpop.f32.mrb[13].mxu0 }
 0x748   :  { %v6901_v57 = vrot.slane %v11824_v31, 4  ;;  %v6942_v9 = vmul.f32 %v11824_v31, %v11824_v31  ;;  %v6895_v13 = vrot.slane %v11826_v11, 4  ;;  %v6941_v17 = vmul.f32 %v11826_v11, %v11826_v11  ;;  %v11834_v18 = vpop.f32.mrb[25].mxu1  ;;  %v6398_v19 = vpop.f32.mrb[14].mxu0  ;;  %6699 = vmatpush1.bf16.msra.mxu0 %v8976_v37 }
 0x749   :  { %v6890_v12 = vadd.f32 %v6889_v38, %v11819_v30  ;;  %v6947_v21 = vrot.slane %v6940_v10, 4  ;;  %v6907_v24 = vrot.slane %v11834_v18, 4  ;;  %v6943_v25 = vmul.f32 %v11834_v18, %v11834_v18  ;;  %v6562_v58 = vpop.f32.mrb[26].mxu1  ;;  %v6399_v8 = vpop.f32.mrb[15].mxu0  ;;  %6700 = vmatprep.subr.bf16.mxu0 %v8981_v2  ;;  %v8990_v38 = vld [vmem:[%s12027_s14 + $0xc8c] ss:$28 sps:$4 sm:$0xff]  }
 0x74a   :  { %v6902_v20 = vadd.f32 %v6901_v57, %v11824_v31  ;;  %v6959_v32 = vrot.slane %v6942_v9, 4  ;;  %v6896_v36 = vadd.f32 %v6895_v13, %v11826_v11  ;;  %v6953_v39 = vrot.slane %v6941_v17, 4  ;;  %v6563_v47 = vpop.f32.mrb[27].mxu1  ;;  %v8988_v8 = vld [vmem:[%s12027_s14 + $0xc88] ss:$28 sps:$4 sm:$0xff]  }
 0x74b   :  { %v6891_v43 = vrot.slane %v6890_v12, 2  ;;  %v6948_v49 = vadd.f32 %v6947_v21, %v6940_v10  ;;  %v6908_v50 = vadd.f32 %v6907_v24, %v11834_v18  ;;  %v6965_v52 = vrot.slane %v6943_v25, 4 }
 0x74c   :  { %v6903_v55 = vrot.slane %v6902_v20, 2  ;;  %v6960_v63 = vadd.f32 %v6959_v32, %v6942_v9  ;;  %v6897_v0 = vrot.slane %v6896_v36, 2  ;;  %v6954_v14 = vadd.f32 %v6953_v39, %v6941_v17  ;;  %6701 = vmatpush1.bf16.msra.mxu0 %v8979_v44  ;;  %v8993_v39 = vld [vmem:[%s12027_s14 + $0xcc4] ss:$28 sps:$4 sm:$0xff]  }
 0x74d   :  { %v6892_v22 = vadd.f32 %v6891_v43, %v6890_v12  ;;  %v6949_v27 = vrot.slane %v6948_v49, 2  ;;  %v6909_v28 = vrot.slane %v6908_v50, 2  ;;  %v6966_v3 = vadd.f32 %v6965_v52, %v6943_v25  ;;  %6702 = vmatprep.subr.bf16.mxu0 %v8984_v23 }
 0x74e   :  { %v6904_v41 = vadd.f32 %v6903_v55, %v6902_v20  ;;  %v6961_v33 = vrot.slane %v6960_v63, 2  ;;  %v6898_v6 = vadd.f32 %v6897_v0, %v6896_v36  ;;  %v6955_v35 = vrot.slane %v6954_v14, 2 }
 0x74f   :  { %v6893_v45 = vrot.slane %v6892_v22, 1  ;;  %v6950_v5 = vadd.f32 %v6949_v27, %v6948_v49  ;;  %v6910_v54 = vadd.f32 %v6909_v28, %v6908_v50  ;;  %v6967_v42 = vrot.slane %v6966_v3, 2  ;;  %v8996_v28 = vld [vmem:[%s12027_s14 + $0xcfc] ss:$28 sps:$4 sm:$0xff]  }
 0x750   :  { %v6905_v51 = vrot.slane %v6904_v41, 1  ;;  %v6962_v56 = vadd.f32 %v6961_v33, %v6960_v63  ;;  %v6899_v46 = vrot.slane %v6898_v6, 1  ;;  %v6956_v26 = vadd.f32 %v6955_v35, %v6954_v14  ;;  %6703 = vmatpush1.bf16.msra.mxu0 %v8982_v15  ;;  %v8991_v15 = vld [vmem:[%s12027_s14 + $0xcc0] ss:$28 sps:$4 sm:$0xff]   ;;  %v8994_v33 = vld [vmem:[%s12027_s14 + $0xcf8] ss:$28 sps:$4 sm:$0xff]  }
 0x751   :  { %v6894_v40 = vadd.f32 %v6893_v45, %v6892_v22  ;;  %v6951_v48 = vrot.slane %v6950_v5, 1  ;;  %v6911_v37 = vrot.slane %v6910_v54, 1  ;;  %v6968_v2 = vadd.f32 %v6967_v42, %v6966_v3  ;;  %6704 = vmatprep.subr.bf16.mxu0 %v8987_v60  ;;  %v8997_v35 = vld [vmem:[%s12027_s14 + $0xd30] ss:$28 sps:$4 sm:$0xff]   ;;  %v9005_v42 = vld [vmem:[%s12027_s14 + $0xda4] ss:$28 sps:$4 sm:$0xff]  }
 0x752   :  { %v6906_v10 = vadd.f32 %v6905_v51, %v6904_v41  ;;  %v6963_v57 = vrot.slane %v6962_v56, 1  ;;  %v6900_v9 = vadd.f32 %v6899_v46, %v6898_v6  ;;  %v6957_v13 = vrot.slane %v6956_v26, 1  ;;  %v8999_v6 = vld [vmem:[%s12027_s14 + $0xd34] ss:$28 sps:$4 sm:$0xff]   ;;  %v9002_v45 = vld [vmem:[%s12027_s14 + $0xd6c] ss:$28 sps:$4 sm:$0xff]  }
 0x753   :  { %v11861_v17 = vmul.f32 0.125, %v6894_v40  ;;  %v6952_v19 = vadd.f32 %v6951_v48, %v6950_v5  ;;  %v6912_v44 = vadd.f32 %v6911_v37, %v6910_v54  ;;  %v6969_v12 = vrot.slane %v6968_v2, 1  ;;  %v9000_v5 = vld [vmem:[%s12027_s14 + $0xd68] ss:$28 sps:$4 sm:$0xff]   ;;  %v9003_v48 = vld [vmem:[%s12027_s14 + $0xda0] ss:$28 sps:$4 sm:$0xff]  }
 0x754   :  { %v11863_v21 = vmul.f32 0.125, %v6906_v10  ;;  %v6964_v24 = vadd.f32 %v6963_v57, %v6962_v56  ;;  %v11865_v25 = vmul.f32 0.125, %v6900_v9  ;;  %v6958_v58 = vadd.f32 %v6957_v13, %v6956_v26  ;;  %6705 = vmatpush1.bf16.msra.mxu0 %v8985_v53  ;;  %v9008_v10 = vld [vmem:[%s12027_s14 + $0xddc] ss:$28 sps:$4 sm:$0xff]  }
 0x755   :  { %v6990_v23 = vmul.f32 0.125, %v6952_v19  ;;  %v6997_v20 = vmul.f32 %v11861_v17, %v11861_v17  ;;  %v11872_v32 = vmul.f32 0.125, %v6912_v44  ;;  %v6970_v36 = vadd.f32 %v6969_v12, %v6968_v2  ;;  %6706 = vmatprep.subr.bf16.mxu0 %v8990_v38  ;;  %v9006_v19 = vld [vmem:[%s12027_s14 + $0xdd8] ss:$28 sps:$4 sm:$0xff]  }
 0x756   :  { %v6992_v47 = vmul.f32 0.125, %v6964_v24  ;;  %v6999_v43 = vmul.f32 %v11863_v21, %v11863_v21  ;;  %v6991_v49 = vmul.f32 0.125, %v6958_v58  ;;  %v6998_v50 = vmul.f32 %v11865_v25, %v11865_v25 }
 0x757   :  { %v7004_v52 = vsub.f32 %v6990_v23, %v6997_v20  ;;  %v6993_v55 = vmul.f32 0.125, %v6970_v36  ;;  %v7000_v63 = vmul.f32 %v11872_v32, %v11872_v32 }
 0x758   :  { %v7006_v0 = vsub.f32 %v6992_v47, %v6999_v43  ;;  %v7005_v14 = vsub.f32 %v6991_v49, %v6998_v50  ;;  %6707 = vmatpush1.bf16.msra.mxu0 %v8988_v8 }
 0x759   :  { %v7012_v22 = vadd.f32 0.8, %v7004_v52  ;;  %v7007_v27 = vsub.f32 %v6993_v55, %v7000_v63  ;;  %6708 = vmatprep.subr.bf16.mxu0 %v8993_v39 }
 0x75a   :  { %v7014_v3 = vadd.f32 0.8, %v7006_v0  ;;  %v7013_v60 = vadd.f32 0.8, %v7005_v14 }
 0x75b   :  { %9037 = vrsqrt.f32 %v7012_v22  ;;  %v7015_v41 = vadd.f32 0.8, %v7007_v27 }
 0x75c   :  { %9039 = vrsqrt.f32 %v7014_v3  ;;  %6709 = vmatpush1.bf16.msra.mxu0 %v8991_v15 }
 0x75d   :  { %9041 = vrsqrt.f32 %v7013_v60  ;;  %6710 = vmatprep.subr.bf16.mxu0 %v8996_v28 }
 0x75e   :  { %9043 = vrsqrt.f32 %v7015_v41 }
 0x760   :  { %6711 = vmatpush1.bf16.msra.mxu0 %v8994_v33 }
 0x761   :  { %6712 = vmatprep.subr.bf16.mxu0 %v8999_v6 }
 0x764   :  { %6713 = vmatpush1.bf16.msra.mxu0 %v8997_v35 }
 0x765   :  { %v9038_v54 = vpop.eup %9037  ;;  %6714 = vmatprep.subr.bf16.mxu0 %v9002_v45 }
 0x766   :  { %v9040_v51 = vpop.eup %9039 }
 0x767   :  { %v9042_v56 = vpop.eup %9041  ;;  %v8088_v46 = vpop.f32.mrb[28].mxu1 }
 0x768   :  { %v9044_v26 = vpop.eup %9043  ;;  %v7033_v53 = vcombine.low %v9038_v54, %v9042_v56  ;;  %v8089_v40 = vpop.f32.mrb[29].mxu1  ;;  %6715 = vmatpush1.bf16.msra.mxu0 %v9000_v5 }
 0x769   :  { %v7034_v37 = vcombine.low %v9040_v51, %v9044_v26  ;;  %v8090_v2 = vadd.f32 %v8089_v40, %v8088_v46  ;;  %v8091_v38 = vpop.f32.mrb[30].mxu1  ;;  %6716 = vmatprep.subr.bf16.mxu0 %v9005_v42 }
 0x76a   :  { %v11914_v57 = vrot.slane %v7033_v53, %v9344_v1  ;;  %v8092_v9 = vpop.f32.mrb[31].mxu1 }
 0x76b   :  { %v11917_v13 = vrot.slane %v7034_v37, %v9344_v1 }
 0x76c   :  { %6717 = vmatpush1.bf16.msra.mxu0 %v9003_v48 }
 0x76d   :  { %v7064_v44 = vcombine.low %v11914_v57, %v11917_v13  ;;  %6718 = vmatprep.subr.bf16.mxu0 %v9008_v10 }
 0x770   :  { %6719 = vmatpush1.bf16.msra.mxu0 %v9006_v19 }
 0x773   :  { %6721 = vmatmul.mubr.bf16.vlgmr.msra.gmra.mrb[16].mxu0 %v11290_v4 }
 0x787   :  { %v8110_v12 = vpop.f32.mrb[32].mxu1 }
 0x788   :  { %v8111_v24 = vpop.f32.mrb[33].mxu1 }
 0x789   :  { %v8112_v58 = vadd.f32 %v8111_v24, %v8110_v12  ;;  %v8113_v8 = vpop.f32.mrb[34].mxu1 }
 0x78a   :  { %v8114_v23 = vpop.f32.mrb[35].mxu1 }
 0x78b   :  { %v6804_v20 = vadd.f32 %v8112_v58, %v8090_v2 }
 0x7a7   :  { %v8132_v36 = vpop.f32.mrb[36].mxu1 }
 0x7a8   :  { %v8133_v39 = vpop.f32.mrb[37].mxu1 }
 0x7a9   :  { %v8134_v47 = vadd.f32 %v8133_v39, %v8132_v36  ;;  %v8135_v43 = vpop.f32.mrb[38].mxu1 }
 0x7aa   :  { %v8136_v49 = vpop.f32.mrb[39].mxu1 }
 0x7ab   :  { %v6844_v50 = vadd.f32 %v8134_v47, %v6804_v20 }
 0x7c7   :  { %v8154_v52 = vpop.f32.mrb[40].mxu1 }
 0x7c8   :  { %v8155_v55 = vpop.f32.mrb[41].mxu1 }
 0x7c9   :  { %v8156_v63 = vadd.f32 %v8155_v55, %v8154_v52  ;;  %v8157_v0 = vpop.f32.mrb[42].mxu1 }
 0x7ca   :  { %v8158_v14 = vpop.f32.mrb[43].mxu1 }
 0x7cb   :  { %v11925_v15 = vadd.f32 %v8156_v63, %v6844_v50 }
 0x7cd   :  { %v6926_v4 = vsel %vm6925_vm6, %v11925_v15, 0.0  ;;  %v6946_v22 = vmul.f32 %v11925_v15, %v11925_v15 }
 0x7ce   :  { %v6927_v27 = vrot.slane %v6926_v4, 4 }
 0x7cf   :  { %v6983_v28 = vsel %vm6925_vm6, %v6946_v22, 0.0 }
 0x7d0   :  { %v6928_v3 = vadd.f32 %v6927_v27, %v6926_v4  ;;  %v6984_v60 = vrot.slane %v6983_v28, 4 }
 0x7d2   :  { %v6929_v41 = vrot.slane %v6928_v3, 2  ;;  %v6985_v33 = vadd.f32 %v6984_v60, %v6983_v28 }
 0x7d4   :  { %v6930_v6 = vadd.f32 %v6929_v41, %v6928_v3  ;;  %v6986_v35 = vrot.slane %v6985_v33, 2 }
 0x7d6   :  { %v6931_v45 = vrot.slane %v6930_v6, 1  ;;  %v6987_v5 = vadd.f32 %v6986_v35, %v6985_v33 }
 0x7d8   :  { %v6932_v54 = vadd.f32 %v6931_v45, %v6930_v6  ;;  %v6988_v42 = vrot.slane %v6987_v5, 1 }
 0x7da   :  { %v11943_v10 = vmul.f32 0.125, %v6932_v54  ;;  %v6989_v9 = vadd.f32 %v6988_v42, %v6987_v5 }
 0x7dc   :  { %v6996_v39 = vmul.f32 0.125, %v6989_v9  ;;  %v7003_v47 = vmul.f32 %v11943_v10, %v11943_v10 }
 0x7de   :  { %v7010_v4 = vsub.f32 %v6996_v39, %v7003_v47 }
 0x7e0   :  { %v7018_v35 = vadd.f32 0.8, %v7010_v4 }
 0x7e2   :  { %9045 = vrsqrt.f32 %v7018_v35 }
 0x846   :  { %v11932_v51 = vpop.f32.mrb[16].mxu0 }
 0x847   :  { %v6913_v56 = vrot.slane %v11932_v51, 4  ;;  %v6944_v46 = vmul.f32 %v11932_v51, %v11932_v51  ;;  %v11937_v26 = vpop.f32.mrb[17].mxu0 }
 0x848   :  { %v6919_v53 = vrot.slane %v11937_v26, 4  ;;  %v6945_v40 = vmul.f32 %v11937_v26, %v11937_v26  ;;  %v6726_v48 = vpop.f32.mrb[18].mxu0 }
 0x849   :  { %v6914_v37 = vadd.f32 %v6913_v56, %v11932_v51  ;;  %v6971_v2 = vrot.slane %v6944_v46, 4  ;;  %v6727_v38 = vpop.f32.mrb[19].mxu0 }
 0x84a   :  { %v6920_v19 = vadd.f32 %v6919_v53, %v11937_v26  ;;  %v6977_v12 = vrot.slane %v6945_v40, 4  ;;  %v9046_v53 = vpop.eup %9045 }
 0x84b   :  { %v6915_v24 = vrot.slane %v6914_v37, 2  ;;  %v6972_v58 = vadd.f32 %v6971_v2, %v6944_v46  ;;  %v7063_v2 = vrot.slane %v9046_v53, %v9344_v1 }
 0x84c   :  { %v6921_v8 = vrot.slane %v6920_v19, 2  ;;  %v6978_v23 = vadd.f32 %v6977_v12, %v6945_v40 }
 0x84d   :  { %v6916_v20 = vadd.f32 %v6915_v24, %v6914_v37  ;;  %v6973_v36 = vrot.slane %v6972_v58, 2  ;;  %v7011_v24 = vld [vmem:[%s12030_s15] sm:$0x7f] }
 0x84e   :  { %v6922_v43 = vadd.f32 %v6921_v8, %v6920_v19  ;;  %v6979_v49 = vrot.slane %v6978_v23, 2  ;;  %v7072_v19 = vrot.slane %v7064_v44, %v9344_v1 }
 0x84f   :  { %v6917_v50 = vrot.slane %v6916_v20, 1  ;;  %v6974_v52 = vadd.f32 %v6973_v36, %v6972_v58 }
 0x850   :  { %v6923_v55 = vrot.slane %v6922_v43, 1  ;;  %v6980_v63 = vadd.f32 %v6979_v49, %v6978_v23 }
 0x851   :  { %v6918_v0 = vadd.f32 %v6917_v50, %v6916_v20  ;;  %v6975_v14 = vrot.slane %v6974_v52, 1 }
 0x852   :  { %v6924_v22 = vadd.f32 %v6923_v55, %v6922_v43  ;;  %v6981_v27 = vrot.slane %v6980_v63, 1 }
 0x853   :  { %v6937_v28 = vmul.f32 0.125, %v6918_v0  ;;  %v6976_v3 = vadd.f32 %v6975_v14, %v6974_v52 }
 0x854   :  { %v6938_v60 = vmul.f32 0.125, %v6924_v22  ;;  %v6982_v41 = vadd.f32 %v6981_v27, %v6980_v63 }
 0x855   :  { %v6994_v33 = vmul.f32 0.125, %v6976_v3  ;;  %v7001_v6 = vmul.f32 %v6937_v28, %v6937_v28 }
 0x856   :  { %v6995_v45 = vmul.f32 0.125, %v6982_v41  ;;  %v7002_v5 = vmul.f32 %v6938_v60, %v6938_v60 }
 0x857   :  { %v7008_v54 = vsub.f32 %v6994_v33, %v7001_v6 }
 0x858   :  { %v7009_v42 = vsub.f32 %v6995_v45, %v7002_v5 }
 0x859   :  { %v7016_v56 = vadd.f32 0.8, %v7008_v54 }
 0x85a   :  { %v7017_v46 = vadd.f32 0.8, %v7009_v42 }
 0x85b   :  { %9047 = vrsqrt.f32 %v7016_v56 }
 0x85c   :  { %9049 = vrsqrt.f32 %v7017_v46 }
 0x865   :  { %v9048_v40 = vpop.eup %9047 }
 0x866   :  { %v9050_v48 = vpop.eup %9049 }
 0x867   :  { %v7035_v37 = vcombine.low %v9048_v40, %v9050_v48 }
 0x869   :  { %v7056_v38 = vrot.slane %v7035_v37, %v9344_v1 }
 0x86b   :  { %v7065_v9 = vcombine.low %v7056_v38, %v7063_v2 }
 0x86d   :  { %v7079_v12 = vrot.slane %v7065_v9, %v9344_v1 }
 0x86f   :  { %v7080_v58 = vcombine.low %v7072_v19, %v7079_v12 }
 0x871   :  { %v7082_v8 = vmul.f32 %v7080_v58, %v7011_v24 }
 0x873   :  { %v7088_v23 = vrot.slane %v7082_v8, %v9352_v7  ;;  %v7092_v20 = vrot.slane %v7082_v8, %v9355_v16  ;;  %v7096_v36 = vrot.slane %v7082_v8, %v9716_v59  ;;  %v7100_v39 = vrot.slane %v7082_v8, %v9719_v62 }
 0x874   :  { %v7104_v47 = vrot.slane %v7082_v8, %v10619_v61  ;;  %v7108_v57 = vrot.slane %v7082_v8, %v10622_v29  ;;  %v7112_v13 = vrot.slane %v7082_v8, %v10625_v34 }
 0x875   :  { %v7120_v44 = vmul.f32 %v7088_v23, %v11861_v17  ;;  %v7121_v43 = vmul.f32 %v7092_v20, %v11865_v25  ;;  %v7122_v49 = vmul.f32 %v7096_v36, %v11863_v21  ;;  %v7123_v50 = vmul.f32 %v7100_v39, %v11872_v32 }
 0x876   :  { %v7124_v52 = vmul.f32 %v7104_v47, %v6937_v28  ;;  %v7125_v55 = vmul.f32 %v7108_v57, %v6938_v60  ;;  %v7126_v63 = vmul.f32 %v7112_v13, %v11943_v10  ;;  %v7184_v0 = vmul.f32 %v7088_v23, %v11819_v30 }
 0x877   :  { %v7134_v14 = vcombine.low %v7120_v44, %v7121_v43  ;;  %v7135_v4 = vcombine.low %v7122_v49, %v7123_v50  ;;  %v7185_v22 = vmul.f32 %v7092_v20, %v11826_v11  ;;  %v7186_v27 = vmul.f32 %v7096_v36, %v11824_v31 }
 0x878   :  { %v7136_v3 = vcombine.low %v7124_v52, %v7125_v55  ;;  %v7187_v17 = vmul.f32 %v7100_v39, %v11834_v18  ;;  %v7188_v25 = vmul.f32 %v7104_v47, %v11932_v51  ;;  %v7189_v28 = vmul.f32 %v7108_v57, %v11937_v26  ;;  %v7083_v51 = vld [vmem:[%s12031_s16] sm:$0x7f] }
 0x879   :  { %v7143_v21 = vrot.slane %v7134_v14, %v9344_v1  ;;  %v7150_v32 = vrot.slane %v7135_v4, %v9344_v1  ;;  %v7190_v10 = vmul.f32 %v7112_v13, %v11925_v15  ;;  %v7164_v60 = vrot.slane %v7126_v63, %v9344_v1 }
 0x87a   :  { %v7157_v30 = vrot.slane %v7136_v3, %v9344_v1 }
 0x87b   :  { %v7165_v11 = vcombine.low %v7143_v21, %v7150_v32 }
 0x87c   :  { %v7166_v41 = vcombine.low %v7157_v30, %v7164_v60 }
 0x87d   :  { %v7173_v31 = vrot.slane %v7165_v11, %v9344_v1 }
 0x87e   :  { %v7180_v18 = vrot.slane %v7166_v41, %v9344_v1 }
 0x880   :  { %v7181_v33 = vcombine.low %v7173_v31, %v7180_v18 }
 0x882   :  { %v7183_v6 = vsub.f32 %v7083_v51, %v7181_v33 }
 0x884   :  { %v7195_v26 = vrot.slane %v7183_v6, %v9352_v7  ;;  %v7199_v15 = vrot.slane %v7183_v6, %v9355_v16  ;;  %v7203_v35 = vrot.slane %v7183_v6, %v9716_v59  ;;  %v7207_v45 = vrot.slane %v7183_v6, %v9719_v62 }
 0x885   :  { %v7211_v5 = vrot.slane %v7183_v6, %v10619_v61  ;;  %v7215_v54 = vrot.slane %v7183_v6, %v10622_v29  ;;  %v7219_v1 = vrot.slane %v7183_v6, %v10625_v34 }
 0x886   :  { %v7227_v42 = vadd.f32 %v7195_v26, %v7184_v0  ;;  %v7228_v56 = vadd.f32 %v7199_v15, %v7185_v22  ;;  %v7229_v46 = vadd.f32 %v7203_v35, %v7186_v27  ;;  %v7230_v53 = vadd.f32 %v7207_v45, %v7187_v17 }
 0x887   :  { %v7231_v40 = vadd.f32 %v7211_v5, %v7188_v25  ;;  %v7232_v48 = vadd.f32 %v7215_v54, %v7189_v28  ;;  %v7233_v37 = vadd.f32 %v7219_v1, %v7190_v10 }
 0x888   :  { %v7234_v7 = vmul.f32 0.2, %v7227_v42  ;;  %v7235_v2 = vmul.f32 0.2, %v7228_v56  ;;  %v7236_v16 = vmul.f32 0.2, %v7229_v46 }
 0x889   :  { %v7237_v38 = vmul.f32 0.2, %v7230_v53  ;;  %v7238_v59 = vmul.f32 0.2, %v7231_v40  ;;  %v7239_v9 = vmul.f32 0.2, %v7232_v48 }
 0x88a   :  { %v7240_v62 = vmul.f32 0.2, %v7233_v37  ;;  %v7241_v19 = vmax.f32 %v7227_v42, %v7234_v7  ;;  %v7242_v61 = vmax.f32 %v7228_v56, %v7235_v2  ;;  %v7243_v12 = vmax.f32 %v7229_v46, %v7236_v16 }
 0x88b   :  { %v7244_v29 = vmax.f32 %v7230_v53, %v7237_v38  ;;  %v7245_v24 = vmax.f32 %v7231_v40, %v7238_v59  ;;  %v7246_v34 = vmax.f32 %v7232_v48, %v7239_v9 }
 0x88c   :  { %9051 = vtanh.f32 %v7241_v19  ;;  %v7247_v58 = vmax.f32 %v7233_v37, %v7240_v62 }
 0x88d   :  { %9053 = vtanh.f32 %v7242_v61 }
 0x88e   :  { %9055 = vtanh.f32 %v7243_v12 }
 0x88f   :  { %9057 = vtanh.f32 %v7244_v29 }
 0x890   :  { %9059 = vtanh.f32 %v7245_v24 }
 0x891   :  { %9061 = vtanh.f32 %v7246_v34 }
 0x892   :  { %9063 = vtanh.f32 %v7247_v58 }
 0x896   :  { %v9052_v8 = vpop.eup %9051 }
 0x897   :  { %v9054_v23 = vpop.eup %9053  ;;  %7255 = vst [vmem:[%s12032_s17] sm:$0xff] %v9052_v8 }
 0x898   :  { %v9056_v20 = vpop.eup %9055  ;;  %7256 = vst [vmem:[%s12032_s17 + $0x8] sm:$0xff] %v9054_v23 }
 0x899   :  { %v9058_v36 = vpop.eup %9057  ;;  %7257 = vst [vmem:[%s12032_s17 + $0x10] sm:$0xff] %v9056_v20 }
 0x89a   :  { %v9060_v39 = vpop.eup %9059  ;;  %7258 = vst [vmem:[%s12032_s17 + $0x18] sm:$0xff] %v9058_v36 }
 0x89b   :  { %v9062_v47 = vpop.eup %9061  ;;  %7259 = vst [vmem:[%s12032_s17 + $0x20] sm:$0xff] %v9060_v39 }
 0x89c   :  { %v9064_v57 = vpop.eup %9063  ;;  %7260 = vst [vmem:[%s12032_s17 + $0x28] sm:$0xff] %v9062_v47 }
 0x89d   :  { %7261 = vst.msk [vmem:[%s12032_s17 + $0x30] sm:$0xff] %vm6925_vm6, %v9064_v57 }

</bundles_post_ra>
